<compile_context>
chip_gen: v6e
topology: v6e:2x2x1
jax: 0.10.0
libtpu: 0.0.40
codegen_flags: <defaults>
</compile_context>

<pallas_src>
import jax
import jax.numpy as jnp
from jax.experimental import pallas as pl
from jax.experimental.pallas import tpu as pltpu

# ----- small, module-consistent hyper-parameters -----
B, M, D, N = 2, 4, 16, 16          # batch, nvars, dmodel, num patches
FFN_RATIO = 2
NUM_BLOCKS = 2
LARGE_K, SMALL_K = 5, 3            # large_size / small_size (depthwise kernels)
DFF = D * FFN_RATIO                # d_ffn
MR = (M * DFF) // D                # out-channels per group of ffn2pw1
NF = N // 2 + 1                    # rfft length along N
NFP = 16                           # rfft length padded per segment (lane-dense)
EPS = 1e-5

BN = B * N                         # lanes per nvars-group          (32)
L = M * BN                         # total lane width of the spine  (128)
G = M * B                          # independent DFT segments       (8)
GNFP = G * NFP                     # padded frequency lanes         (128)
MP = 8                             # group-selector rows, padded 4 -> 8
CONV_ROWS = (LARGE_K + SMALL_K) * D  # rows of compact conv weights (128)


def _gelu(x):
    # tanh-form GELU (EUP tanh + a few VPU ops); ~1e-3-level deviation from
    # PyTorch's exact-erf nn.GELU().
    c = 0.7978845608028654  # sqrt(2/pi)
    return 0.5 * x * (1.0 + jnp.tanh(c * (x + 0.044715 * x * x * x)))


# ---------------------------------------------------------------------------
# fused Stage kernel (whole activation + all weights resident in VMEM)
# ---------------------------------------------------------------------------
def stage_kernel(x_ref, sel_ref, selT_ref, wf_ref, wb_ref,
                 wcb_ref, bnn_ref, frw_ref, frb_ref,
                 w1a_ref, b1a_ref, w21_ref, b21_ref, w2b_ref, b2b_ref,
                 o_ref):
    f32 = jnp.float32
    bf16 = jnp.bfloat16

    # ---- (B, M, D, N) -> lane-dense spine (D, L), lanes ordered (m, b, n) ----
    xv = x_ref[...]                                   # (B, M, D, N)
    x = jnp.concatenate([xv[b, m] for m in range(M) for b in range(B)], axis=1)

    # ---- hoisted constants: within-segment masks for the conv lane rolls ----
    lane_n = jax.lax.broadcasted_iota(jnp.int32, (1, L), 1) % N
    padL, padS = LARGE_K // 2, SMALL_K // 2
    shifts = [s for s in range(-padL, padL + 1) if s != 0]
    masks = {s: jnp.logical_and(lane_n >= s, lane_n < N + s).astype(f32)
             for s in shifts}

    for blk in range(NUM_BLOCKS):
        # ---- FreTS block: x = x + irDFT( relu(W (*) rDFT(x) + b) ), 3 dots ---
        xf = jnp.dot(x.astype(bf16), wf_ref[...],
                     preferred_element_type=f32)            # (D, 2*GNFP) = [xr | xi]
        xr_p = xf[:, :GNFP]
        xi_p = xf[:, GNFP:]
        xf2 = jnp.concatenate(
            [xf, jnp.concatenate([-xi_p, xr_p], axis=1)], axis=0)   # (2D, 2*GNFP)
        fbias = jnp.concatenate(
            [jnp.broadcast_to(frb_ref[blk, 0], (D, GNFP)),
             jnp.broadcast_to(frb_ref[blk, 1], (D, GNFP))], axis=1)
        o_ri = jnp.maximum(
            jnp.dot(frw_ref[blk], xf2, preferred_element_type=f32) + fbias, 0.0)
        x = x + jnp.dot(o_ri.astype(bf16), wb_ref[...],
                        preferred_element_type=f32)          # (D, L)
        resid = x                                            # Block residual source

        # ---- expand compact depthwise/BN weights onto the lane layout -------
        # rows 0:80 large taps, 80:128 small taps, 128:160 gammas, 160:192 betas
        planes = jnp.dot(wcb_ref[blk], sel_ref[...],
                         preferred_element_type=f32)         # (192, L)

        # ---- depthwise large + small conv along N ("same" padding) ----------
        yl = planes[padL * D:(padL + 1) * D] * x             # s = 0 taps
        ysm = planes[LARGE_K * D + padS * D:
                     LARGE_K * D + (padS + 1) * D] * x
        for s in shifts:                                     # y[n] += w[pad-s]*x[n-s]
            xs = pltpu.roll(x, shift=s % L, axis=1) * masks[s]
            kL = padL - s
            yl = yl + planes[kL * D:(kL + 1) * D] * xs
            if -padS <= s <= padS:
                kS = padS - s
                ysm = ysm + planes[LARGE_K * D + kS * D:
                                   LARGE_K * D + (kS + 1) * D] * xs

        # ---- conv_bn: BatchNorm1d(M*D), per-(m,d) stats over (B, N) ---------
        y2 = jnp.concatenate([yl, ysm], axis=0)              # (2D, L)
        stat = jnp.concatenate([y2, y2 * y2], axis=0)        # (4D, L)
        gsum = jnp.dot(stat, selT_ref[...], preferred_element_type=f32)   # (4D, MP)
        gexp = jnp.dot(gsum, sel_ref[...],
                       preferred_element_type=f32) * (1.0 / BN)           # (4D, L)
        mean = gexp[:2 * D]
        var = gexp[2 * D:] - mean * mean                     # E[y^2] - mean^2
        gscale = planes[CONV_ROWS:CONV_ROWS + 2 * D]
        gbias = planes[CONV_ROWS + 2 * D:]
        yn = (y2 - mean) * (gscale * jax.lax.rsqrt(var + EPS)) + gbias
        y = yn[:D] + yn[D:]                                  # large + small branch

        # ---- Block.norm: BatchNorm1d(D), per-d stats over (B, M, N) ---------
        bm = jnp.sum(y, axis=1, keepdims=True) * (1.0 / L)
        dl = y - bm
        bv = jnp.sum(dl * dl, axis=1, keepdims=True) * (1.0 / L)
        z = dl * (bnn_ref[blk, 0] * jax.lax.rsqrt(bv + EPS)) + bnn_ref[blk, 1]

        # ---- grouped FFNs as dense block-diagonal matmuls (3 dots) ----------
        # channel-major view: rows (m, d), lanes (b, n)
        z_bf = z.astype(bf16)
        z_cat = jnp.concatenate(
            [z_bf[:, m * BN:(m + 1) * BN] for m in range(M)], axis=0)  # (M*D, BN)
        # ffn1pw1 (groups=nvars) -> GELU
        h1 = _gelu(jnp.dot(w1a_ref[blk], z_cat,
                           preferred_element_type=f32) + b1a_ref[blk])
        # fused (ffn2pw1 o permute o ffn1pw2) -> GELU
        h2 = _gelu(jnp.dot(w21_ref[blk], h1.astype(bf16),
                           preferred_element_type=f32) + b21_ref[blk])
        # ffn2pw2 (permute back folded into the weights)
        y2m = jnp.dot(w2b_ref[blk], h2.astype(bf16),
                      preferred_element_type=f32) + b2b_ref[blk]        # (M*D, BN)
        # back to the lane-dense spine layout (D, L) and residual add
        y2s = jnp.concatenate(
            [y2m[m * D:(m + 1) * D, :] for m in range(M)], axis=1)
        x = resid + y2s

    # ---- spine (D, L) -> (B, M, D, N) output, done in-kernel -----------------
    for m in range(M):
        for b in range(B):
            o_ref[b, m] = x[:, (m * B + b) * N:(m * B + b + 1) * N]


# ---------------------------------------------------------------------------
# pallas_call wrapper (single call, no wrapper-side relayouts)
# ---------------------------------------------------------------------------
def _fs(shape):
    nd = len(shape)
    return pl.BlockSpec(tuple(shape), lambda i, _nd=nd: (0,) * _nd)


def stage_forward(x, prep):
    args = (x, prep["sel"], prep["selT"], prep["wf"], prep["wb"],
            prep["wcb"], prep["bnn"], prep["frw"], prep["frb"],
            prep["w1a"], prep["b1a"], prep["w21"], prep["b21"],
            prep["w2b"], prep["b2b"])
    return pl.pallas_call(
        stage_kernel,
        grid=(1,),
        in_specs=[_fs(a.shape) for a in args],
        out_specs=_fs((B, M, D, N)),
        out_shape=jax.ShapeDtypeStruct((B, M, D, N), jnp.float32),
        compiler_params=pltpu.CompilerParams(dimension_semantics=("arbitrary",)),
    )(*args)


# ---------------------------------------------------------------------------
# one-time weight preprocessing (plain JAX, outside the jitted forward)
# ---------------------------------------------------------------------------
def prepare_stage_params(raw_params):
    f32 = jnp.float32
    bf16 = jnp.bfloat16

    # 0/1 group selector (M padded to MP rows): sel[m, l] = 1 iff lane l in group m
    sel = jnp.pad(jnp.repeat(jnp.eye(M, dtype=f32), BN, axis=1),
                  ((0, MP - M), (0, 0)))                              # (MP, L)
    selT = jnp.transpose(sel)                                         # (L, MP)

    # exact real-DFT matrices (ortho norm), frequency dim zero-padded NF -> NFP
    eye_n = jnp.eye(N, dtype=f32)
    fwd = jnp.fft.rfft(eye_n, axis=1, norm="ortho")                   # (N, NF) complex
    fr = jnp.pad(jnp.real(fwd).astype(f32), ((0, 0), (0, NFP - NF)))
    fi = jnp.pad(jnp.imag(fwd).astype(f32), ((0, 0), (0, NFP - NF)))
    eye_f = jnp.eye(NF, dtype=jnp.complex64)
    br = jnp.pad(jnp.fft.irfft(eye_f, n=N, axis=1, norm="ortho").astype(f32),
                 ((0, NFP - NF), (0, 0)))
    bi = jnp.pad(jnp.fft.irfft(1j * eye_f, n=N, axis=1, norm="ortho").astype(f32),
                 ((0, NFP - NF), (0, 0)))
    eye_g = jnp.eye(G, dtype=f32)
    wf = jnp.concatenate([jnp.kron(eye_g, fr), jnp.kron(eye_g, fi)],
                         axis=1).astype(bf16)                         # (L, 2*GNFP)
    wb = jnp.concatenate([jnp.kron(eye_g, br), jnp.kron(eye_g, bi)],
                         axis=0).astype(bf16)                         # (2*GNFP, L)

    eye_m = jnp.eye(M, dtype=f32)
    eye_d = jnp.eye(D, dtype=f32)

    def prep_block(p):
        o = {}
        # compact depthwise taps + conv_bn affines (rows: 5 large taps, 3 small
        # taps, [gL; gS], [bL; bS]; cols: nvars group, zero-padded to MP)
        wLt = jnp.transpose(p["wL"], (0, 2, 1)).reshape(LARGE_K * D, M)
        wSt = jnp.transpose(p["wS"], (0, 2, 1)).reshape(SMALL_K * D, M)
        gcat = jnp.concatenate([jnp.transpose(p["gL"]), jnp.transpose(p["gS"])], axis=0)
        bcat = jnp.concatenate([jnp.transpose(p["bL"]), jnp.transpose(p["bS"])], axis=0)
        wcb = jnp.concatenate([wLt, wSt, gcat, bcat], axis=0)         # (192, M)
        o["wcb"] = jnp.pad(wcb, ((0, 0), (0, MP - M)))                # (192, MP)
        o["bnn"] = jnp.stack([p["gN"].reshape(D, 1), p["bN"].reshape(D, 1)])
        # ffn1pw1 (groups = nvars): block-diagonal over m, rows (m,f) / cols (m,d)
        w1a = jnp.einsum("mfd,mk->mfkd", p["w1a"], eye_m).reshape(M * DFF, M * D)
        o["w1a"] = w1a.astype(bf16)
        o["b1a"] = p["b1a"].reshape(M * DFF, 1)
        # fused (ffn2pw1 o M<->D permute o ffn1pw2): one (D*MR, M*DFF) matrix
        w1b = jnp.einsum("mdf,mk->mdkf", p["w1b"], eye_m).reshape(M * D, M * DFF)
        b1b = p["b1b"].reshape(M * D, 1)
        w2a = jnp.einsum("drm,dk->drmk", p["w2a"], eye_d).reshape(D * MR, M * D)
        b2a = p["b2a"].reshape(D * MR, 1)
        o["w21"] = (w2a @ w1b).astype(bf16)
        o["b21"] = w2a @ b1b + b2a
        # ffn2pw2 with the permute back to (m,d) rows folded in
        w2b = jnp.einsum("dmr,dk->mdkr", p["w2b"], eye_d).reshape(M * D, D * MR)
        o["w2b"] = w2b.astype(bf16)
        o["b2b"] = jnp.transpose(p["b2b"]).reshape(M * D, 1)
        # FreTS frequency-domain MLP: [rt | it] and biases
        o["frw"] = jnp.concatenate([p["frt"], p["fit"]], axis=1)      # (D, 2D)
        o["frb"] = jnp.stack([p["frb"].reshape(D, 1), p["fib"].reshape(D, 1)])
        return o

    blocks = [prep_block(p) for p in raw_params]
    stacked = {k: jnp.stack([b[k] for b in blocks]) for k in blocks[0]}
    return {"sel": sel, "selT": selT, "wf": wf, "wb": wb, **stacked}


# ---------------------------------------------------------------------------
# deterministic parameter init (synthetic; no checkpoint loading)
# ---------------------------------------------------------------------------
def init_block_params(key):
    ks = jax.random.split(key, 20)
    nrm = lambda k, s, sc: sc * jax.random.normal(k, s, dtype=jnp.float32)
    p = {}
    # depthwise large / small kernels: torch weight (M*D, 1, K) -> (K, M, D)
    p["wL"] = nrm(ks[0], (LARGE_K, M, D), 0.1)
    p["wS"] = nrm(ks[1], (SMALL_K, M, D), 0.1)
    # conv_bn BatchNorm1d(M*D) affine params -> (M, D)
    p["gL"] = 1.0 + nrm(ks[2], (M, D), 0.1)
    p["bL"] = nrm(ks[3], (M, D), 0.1)
    p["gS"] = 1.0 + nrm(ks[4], (M, D), 0.1)
    p["bS"] = nrm(ks[5], (M, D), 0.1)
    # Block.norm = BatchNorm1d(D) affine params
    p["gN"] = 1.0 + nrm(ks[6], (D,), 0.1)
    p["bN"] = nrm(ks[7], (D,), 0.1)
    # ffn1pw1: torch weight (M*DFF, D, 1), groups=M -> (M, DFF, D)
    p["w1a"] = nrm(ks[8], (M, DFF, D), 0.1)
    p["b1a"] = nrm(ks[9], (M, DFF), 0.1)
    # ffn1pw2: torch weight (M*D, DFF, 1), groups=M -> (M, D, DFF)
    p["w1b"] = nrm(ks[10], (M, D, DFF), 0.1)
    p["b1b"] = nrm(ks[11], (M, D), 0.1)
    # ffn2pw1: torch weight (D*MR, M, 1), groups=D -> (D, MR, M)
    p["w2a"] = nrm(ks[12], (D, MR, M), 0.1)
    p["b2a"] = nrm(ks[13], (D, MR), 0.1)
    # ffn2pw2: torch weight (D*M, MR, 1), groups=D -> (D, M, MR)
    p["w2b"] = nrm(ks[14], (D, M, MR), 0.1)
    p["b2b"] = nrm(ks[15], (D, M), 0.1)
    # FreTS frequency MLP (canonical FreTS init scale 0.02); weights stored
    # pre-transposed so the kernel computes y[e,f] = sum_d r[d,e] * x[d,f].
    p["frt"] = nrm(ks[16], (D, D), 0.02)
    p["fit"] = nrm(ks[17], (D, D), 0.02)
    p["frb"] = nrm(ks[18], (D,), 0.02)
    p["fib"] = nrm(ks[19], (D,), 0.02)
    return p


if __name__ == "__main__":
    root = jax.random.PRNGKey(0)
    kx, kp = jax.random.split(root)
    x = jax.random.normal(kx, (B, M, D, N), dtype=jnp.float32)
    raw_params = [init_block_params(k) for k in jax.random.split(kp, NUM_BLOCKS)]
    prep = prepare_stage_params(raw_params)          # one-time weight preprocessing

    fwd = jax.jit(stage_forward)
    y = fwd(x, prep)
    jax.block_until_ready(y)
    assert y.shape == (B, M, D, N) and y.dtype == jnp.float32
    assert bool(jnp.all(jnp.isfinite(y)))
    print("KERNEL_OK")
</pallas_src>

<mosaic_0001>
module attributes {stable_mosaic.version = 11 : i64} {
  func.func @stage_kernel(%arg0: i32, %arg1: memref<2x4x16x16xf32, #tpu.memory_space<vmem>>, %arg2: memref<8x128xf32, #tpu.memory_space<vmem>>, %arg3: memref<128x8xf32, #tpu.memory_space<vmem>>, %arg4: memref<128x256xbf16, #tpu.memory_space<vmem>>, %arg5: memref<256x128xbf16, #tpu.memory_space<vmem>>, %arg6: memref<2x192x8xf32, #tpu.memory_space<vmem>>, %arg7: memref<2x2x16x1xf32, #tpu.memory_space<vmem>>, %arg8: memref<2x16x32xf32, #tpu.memory_space<vmem>>, %arg9: memref<2x2x16x1xf32, #tpu.memory_space<vmem>>, %arg10: memref<2x128x64xbf16, #tpu.memory_space<vmem>>, %arg11: memref<2x128x1xf32, #tpu.memory_space<vmem>>, %arg12: memref<2x128x128xbf16, #tpu.memory_space<vmem>>, %arg13: memref<2x128x1xf32, #tpu.memory_space<vmem>>, %arg14: memref<2x64x128xbf16, #tpu.memory_space<vmem>>, %arg15: memref<2x64x1xf32, #tpu.memory_space<vmem>>, %arg16: memref<2x4x16x16xf32, #tpu.memory_space<vmem>>) attributes {dimension_semantics = [#tpu.dimension_semantics<arbitrary>], iteration_bounds = array<i64: 1>, scalar_prefetch = 0 : i64, scratch_operands = 0 : i64, tpu.core_type = #tpu.core_type<tc>, window_params = [{pipeline_mode = #tpu.pipeline_mode<synchronous>, transform_indices = @transform_0, window_bounds = array<i64: 2, 4, 16, 16>}, {pipeline_mode = #tpu.pipeline_mode<synchronous>, transform_indices = @transform_1, window_bounds = array<i64: 8, 128>}, {pipeline_mode = #tpu.pipeline_mode<synchronous>, transform_indices = @transform_2, window_bounds = array<i64: 128, 8>}, {pipeline_mode = #tpu.pipeline_mode<synchronous>, transform_indices = @transform_3, window_bounds = array<i64: 128, 256>}, {pipeline_mode = #tpu.pipeline_mode<synchronous>, transform_indices = @transform_4, window_bounds = array<i64: 256, 128>}, {pipeline_mode = #tpu.pipeline_mode<synchronous>, transform_indices = @transform_5, window_bounds = array<i64: 2, 192, 8>}, {pipeline_mode = #tpu.pipeline_mode<synchronous>, transform_indices = @transform_6, window_bounds = array<i64: 2, 2, 16, 1>}, {pipeline_mode = #tpu.pipeline_mode<synchronous>, transform_indices = @transform_7, window_bounds = array<i64: 2, 16, 32>}, {pipeline_mode = #tpu.pipeline_mode<synchronous>, transform_indices = @transform_8, window_bounds = array<i64: 2, 2, 16, 1>}, {pipeline_mode = #tpu.pipeline_mode<synchronous>, transform_indices = @transform_9, window_bounds = array<i64: 2, 128, 64>}, {pipeline_mode = #tpu.pipeline_mode<synchronous>, transform_indices = @transform_10, window_bounds = array<i64: 2, 128, 1>}, {pipeline_mode = #tpu.pipeline_mode<synchronous>, transform_indices = @transform_11, window_bounds = array<i64: 2, 128, 128>}, {pipeline_mode = #tpu.pipeline_mode<synchronous>, transform_indices = @transform_12, window_bounds = array<i64: 2, 128, 1>}, {pipeline_mode = #tpu.pipeline_mode<synchronous>, transform_indices = @transform_13, window_bounds = array<i64: 2, 64, 128>}, {pipeline_mode = #tpu.pipeline_mode<synchronous>, transform_indices = @transform_14, window_bounds = array<i64: 2, 64, 1>}, {pipeline_mode = #tpu.pipeline_mode<synchronous>, transform_indices = @transform_15, window_bounds = array<i64: 2, 4, 16, 16>}]} {
    %c0 = arith.constant 0 : index
    %c0_0 = arith.constant 0 : index
    %c0_1 = arith.constant 0 : index
    %c0_2 = arith.constant 0 : index
    %0 = vector.load %arg1[%c0, %c0_0, %c0_1, %c0_2] : memref<2x4x16x16xf32, #tpu.memory_space<vmem>>, vector<2x4x16x16xf32>
    %1 = vector.extract_strided_slice %0 {offsets = [0, 0, 0, 0], sizes = [1, 1, 16, 16], strides = [1, 1, 1, 1]} : vector<2x4x16x16xf32> to vector<1x1x16x16xf32>
    %2 = vector.shape_cast %1 : vector<1x1x16x16xf32> to vector<16x16xf32>
    %3 = vector.extract_strided_slice %0 {offsets = [1, 0, 0, 0], sizes = [1, 1, 16, 16], strides = [1, 1, 1, 1]} : vector<2x4x16x16xf32> to vector<1x1x16x16xf32>
    %4 = vector.shape_cast %3 : vector<1x1x16x16xf32> to vector<16x16xf32>
    %5 = vector.extract_strided_slice %0 {offsets = [0, 1, 0, 0], sizes = [1, 1, 16, 16], strides = [1, 1, 1, 1]} : vector<2x4x16x16xf32> to vector<1x1x16x16xf32>
    %6 = vector.shape_cast %5 : vector<1x1x16x16xf32> to vector<16x16xf32>
    %7 = vector.extract_strided_slice %0 {offsets = [1, 1, 0, 0], sizes = [1, 1, 16, 16], strides = [1, 1, 1, 1]} : vector<2x4x16x16xf32> to vector<1x1x16x16xf32>
    %8 = vector.shape_cast %7 : vector<1x1x16x16xf32> to vector<16x16xf32>
    %9 = vector.extract_strided_slice %0 {offsets = [0, 2, 0, 0], sizes = [1, 1, 16, 16], strides = [1, 1, 1, 1]} : vector<2x4x16x16xf32> to vector<1x1x16x16xf32>
    %10 = vector.shape_cast %9 : vector<1x1x16x16xf32> to vector<16x16xf32>
    %11 = vector.extract_strided_slice %0 {offsets = [1, 2, 0, 0], sizes = [1, 1, 16, 16], strides = [1, 1, 1, 1]} : vector<2x4x16x16xf32> to vector<1x1x16x16xf32>
    %12 = vector.shape_cast %11 : vector<1x1x16x16xf32> to vector<16x16xf32>
    %13 = vector.extract_strided_slice %0 {offsets = [0, 3, 0, 0], sizes = [1, 1, 16, 16], strides = [1, 1, 1, 1]} : vector<2x4x16x16xf32> to vector<1x1x16x16xf32>
    %14 = vector.shape_cast %13 : vector<1x1x16x16xf32> to vector<16x16xf32>
    %15 = vector.extract_strided_slice %0 {offsets = [1, 3, 0, 0], sizes = [1, 1, 16, 16], strides = [1, 1, 1, 1]} : vector<2x4x16x16xf32> to vector<1x1x16x16xf32>
    %16 = vector.shape_cast %15 : vector<1x1x16x16xf32> to vector<16x16xf32>
    %17 = tpu.concatenate %2, %4, %6, %8, %10, %12, %14, %16 in 1 : vector<16x16xf32>, vector<16x16xf32>, vector<16x16xf32>, vector<16x16xf32>, vector<16x16xf32>, vector<16x16xf32>, vector<16x16xf32>, vector<16x16xf32> -> vector<16x128xf32>
    %18 = tpu.iota {dimensions = array<i32: 1>} : vector<1x128xi32>
    %c16_i32 = arith.constant 16 : i32
    %c0_i32 = arith.constant 0 : i32
    %19 = arith.cmpi eq, %c16_i32, %c0_i32 : i32
    %c1_i32 = arith.constant 1 : i32
    %20 = arith.select %19, %c1_i32, %c16_i32 : i32
    %21 = vector.broadcast %20 : i32 to vector<1x128xi32>
    %22 = arith.remsi %18, %21 : vector<1x128xi32>
    %c0_i32_3 = arith.constant 0 : i32
    %23 = vector.broadcast %c0_i32_3 : i32 to vector<1x128xi32>
    %24 = arith.cmpi ne, %22, %23 : vector<1x128xi32>
    %c0_i32_4 = arith.constant 0 : i32
    %25 = vector.broadcast %c0_i32_4 : i32 to vector<1x128xi32>
    %26 = arith.cmpi slt, %22, %25 : vector<1x128xi32>
    %c0_i32_5 = arith.constant 0 : i32
    %27 = arith.cmpi slt, %20, %c0_i32_5 : i32
    %28 = vector.broadcast %27 : i1 to vector<1x128xi1>
    %29 = vector.broadcast %28 : vector<1x128xi1> to vector<1x128xi1>
    %30 = arith.xori %26, %29 : vector<1x128xi1>
    %31 = arith.andi %30, %24 : vector<1x128xi1>
    %32 = vector.broadcast %20 : i32 to vector<1x128xi32>
    %33 = arith.addi %22, %32 : vector<1x128xi32>
    %34 = arith.select %31, %33, %22 : vector<1x128xi1>, vector<1x128xi32>
    %c-2_i32 = arith.constant -2 : i32
    %35 = vector.broadcast %c-2_i32 : i32 to vector<1x128xi32>
    %36 = arith.cmpi sge, %34, %35 : vector<1x128xi32>
    %c14_i32 = arith.constant 14 : i32
    %37 = vector.broadcast %c14_i32 : i32 to vector<1x128xi32>
    %38 = arith.cmpi slt, %34, %37 : vector<1x128xi32>
    %39 = arith.andi %36, %38 : vector<1x128xi1>
    %40 = arith.extui %39 : vector<1x128xi1> to vector<1x128xi32>
    %41 = arith.sitofp %40 : vector<1x128xi32> to vector<1x128xf32>
    %c-1_i32 = arith.constant -1 : i32
    %42 = vector.broadcast %c-1_i32 : i32 to vector<1x128xi32>
    %43 = arith.cmpi sge, %34, %42 : vector<1x128xi32>
    %c15_i32 = arith.constant 15 : i32
    %44 = vector.broadcast %c15_i32 : i32 to vector<1x128xi32>
    %45 = arith.cmpi slt, %34, %44 : vector<1x128xi32>
    %46 = arith.andi %43, %45 : vector<1x128xi1>
    %47 = arith.extui %46 : vector<1x128xi1> to vector<1x128xi32>
    %48 = arith.sitofp %47 : vector<1x128xi32> to vector<1x128xf32>
    %c1_i32_6 = arith.constant 1 : i32
    %49 = vector.broadcast %c1_i32_6 : i32 to vector<1x128xi32>
    %50 = arith.cmpi sge, %34, %49 : vector<1x128xi32>
    %c17_i32 = arith.constant 17 : i32
    %51 = vector.broadcast %c17_i32 : i32 to vector<1x128xi32>
    %52 = arith.cmpi slt, %34, %51 : vector<1x128xi32>
    %53 = arith.andi %50, %52 : vector<1x128xi1>
    %54 = arith.extui %53 : vector<1x128xi1> to vector<1x128xi32>
    %55 = arith.sitofp %54 : vector<1x128xi32> to vector<1x128xf32>
    %c2_i32 = arith.constant 2 : i32
    %56 = vector.broadcast %c2_i32 : i32 to vector<1x128xi32>
    %57 = arith.cmpi sge, %34, %56 : vector<1x128xi32>
    %c18_i32 = arith.constant 18 : i32
    %58 = vector.broadcast %c18_i32 : i32 to vector<1x128xi32>
    %59 = arith.cmpi slt, %34, %58 : vector<1x128xi32>
    %60 = arith.andi %57, %59 : vector<1x128xi1>
    %61 = arith.extui %60 : vector<1x128xi1> to vector<1x128xi32>
    %62 = arith.sitofp %61 : vector<1x128xi32> to vector<1x128xf32>
    %63 = arith.truncf %17 : vector<16x128xf32> to vector<16x128xbf16>
    %c0_7 = arith.constant 0 : index
    %c0_8 = arith.constant 0 : index
    %64 = vector.load %arg4[%c0_7, %c0_8] : memref<128x256xbf16, #tpu.memory_space<vmem>>, vector<128x256xbf16>
    %cst = arith.constant dense<0.000000e+00> : vector<16x256xf32>
    %65 = tpu.matmul %63, %64, %cst {dimension_numbers = #tpu.dot_dimension_numbers<[1], [0], [0], [1], [0, 0, 1, 1], [], []>} : vector<16x128xbf16>, vector<128x256xbf16>, vector<16x256xf32> -> vector<16x256xf32>
    %66 = vector.extract_strided_slice %65 {offsets = [0, 0], sizes = [16, 128], strides = [1, 1]} : vector<16x256xf32> to vector<16x128xf32>
    %67 = vector.extract_strided_slice %65 {offsets = [0, 128], sizes = [16, 128], strides = [1, 1]} : vector<16x256xf32> to vector<16x128xf32>
    %cst_9 = arith.constant 0.000000e+00 : f32
    %68 = vector.broadcast %cst_9 : f32 to vector<16x128xf32>
    %69 = arith.subf %68, %67 : vector<16x128xf32>
    %70 = tpu.concatenate %69, %66 in 1 : vector<16x128xf32>, vector<16x128xf32> -> vector<16x256xf32>
    %71 = tpu.concatenate %65, %70 in 0 : vector<16x256xf32>, vector<16x256xf32> -> vector<32x256xf32>
    %c0_10 = arith.constant 0 : index
    %c0_11 = arith.constant 0 : index
    %c0_12 = arith.constant 0 : index
    %c0_13 = arith.constant 0 : index
    %72 = vector.load %arg9[%c0_10, %c0_11, %c0_12, %c0_13] : memref<2x2x16x1xf32, #tpu.memory_space<vmem>>, vector<1x1x16x1xf32>
    %73 = vector.shape_cast %72 : vector<1x1x16x1xf32> to vector<16x1xf32>
    %74 = vector.shape_cast %73 : vector<16x1xf32> to vector<16x1xf32>
    %75 = vector.broadcast %74 : vector<16x1xf32> to vector<16x128xf32>
    %c0_14 = arith.constant 0 : index
    %c1 = arith.constant 1 : index
    %c0_15 = arith.constant 0 : index
    %c0_16 = arith.constant 0 : index
    %76 = vector.load %arg9[%c0_14, %c1, %c0_15, %c0_16] : memref<2x2x16x1xf32, #tpu.memory_space<vmem>>, vector<1x1x16x1xf32>
    %77 = vector.shape_cast %76 : vector<1x1x16x1xf32> to vector<16x1xf32>
    %78 = vector.shape_cast %77 : vector<16x1xf32> to vector<16x1xf32>
    %79 = vector.broadcast %78 : vector<16x1xf32> to vector<16x128xf32>
    %80 = tpu.concatenate %75, %79 in 1 : vector<16x128xf32>, vector<16x128xf32> -> vector<16x256xf32>
    %c0_17 = arith.constant 0 : index
    %c0_18 = arith.constant 0 : index
    %c0_19 = arith.constant 0 : index
    %81 = vector.load %arg8[%c0_17, %c0_18, %c0_19] : memref<2x16x32xf32, #tpu.memory_space<vmem>>, vector<1x16x32xf32>
    %82 = vector.shape_cast %81 : vector<1x16x32xf32> to vector<16x32xf32>
    %cst_20 = arith.constant dense<0.000000e+00> : vector<16x256xf32>
    %83 = tpu.matmul %82, %71, %cst_20 {dimension_numbers = #tpu.dot_dimension_numbers<[1], [0], [0], [1], [0, 0, 1, 1], [], []>} : vector<16x32xf32>, vector<32x256xf32>, vector<16x256xf32> -> vector<16x256xf32>
    %84 = arith.addf %83, %80 : vector<16x256xf32>
    %cst_21 = arith.constant 0.000000e+00 : f32
    %85 = vector.broadcast %cst_21 : f32 to vector<16x256xf32>
    %86 = arith.maximumf %84, %85 : vector<16x256xf32>
    %87 = arith.truncf %86 : vector<16x256xf32> to vector<16x256xbf16>
    %c0_22 = arith.constant 0 : index
    %c0_23 = arith.constant 0 : index
    %88 = vector.load %arg5[%c0_22, %c0_23] : memref<256x128xbf16, #tpu.memory_space<vmem>>, vector<256x128xbf16>
    %cst_24 = arith.constant dense<0.000000e+00> : vector<16x128xf32>
    %89 = tpu.matmul %87, %88, %cst_24 {dimension_numbers = #tpu.dot_dimension_numbers<[1], [0], [0], [1], [0, 0, 1, 1], [], []>} : vector<16x256xbf16>, vector<256x128xbf16>, vector<16x128xf32> -> vector<16x128xf32>
    %90 = arith.addf %17, %89 : vector<16x128xf32>
    %c0_25 = arith.constant 0 : index
    %c0_26 = arith.constant 0 : index
    %c0_27 = arith.constant 0 : index
    %91 = vector.load %arg6[%c0_25, %c0_26, %c0_27] : memref<2x192x8xf32, #tpu.memory_space<vmem>>, vector<1x192x8xf32>
    %92 = vector.shape_cast %91 : vector<1x192x8xf32> to vector<192x8xf32>
    %c0_28 = arith.constant 0 : index
    %c0_29 = arith.constant 0 : index
    %93 = vector.load %arg2[%c0_28, %c0_29] : memref<8x128xf32, #tpu.memory_space<vmem>>, vector<8x128xf32>
    %cst_30 = arith.constant dense<0.000000e+00> : vector<192x128xf32>
    %94 = tpu.matmul %92, %93, %cst_30 {dimension_numbers = #tpu.dot_dimension_numbers<[1], [0], [0], [1], [0, 0, 1, 1], [], []>} : vector<192x8xf32>, vector<8x128xf32>, vector<192x128xf32> -> vector<192x128xf32>
    %95 = vector.extract_strided_slice %94 {offsets = [32, 0], sizes = [16, 128], strides = [1, 1]} : vector<192x128xf32> to vector<16x128xf32>
    %96 = arith.mulf %95, %90 : vector<16x128xf32>
    %97 = vector.extract_strided_slice %94 {offsets = [96, 0], sizes = [16, 128], strides = [1, 1]} : vector<192x128xf32> to vector<16x128xf32>
    %98 = arith.mulf %97, %90 : vector<16x128xf32>
    %c126_i32 = arith.constant 126 : i32
    %99 = tpu.dynamic_rotate %90 by %c126_i32 dim 1 : vector<16x128xf32>, i32 -> vector<16x128xf32>
    %100 = vector.broadcast %41 : vector<1x128xf32> to vector<16x128xf32>
    %101 = arith.mulf %99, %100 : vector<16x128xf32>
    %102 = vector.extract_strided_slice %94 {offsets = [64, 0], sizes = [16, 128], strides = [1, 1]} : vector<192x128xf32> to vector<16x128xf32>
    %103 = arith.mulf %102, %101 : vector<16x128xf32>
    %104 = arith.addf %96, %103 : vector<16x128xf32>
    %c127_i32 = arith.constant 127 : i32
    %105 = tpu.dynamic_rotate %90 by %c127_i32 dim 1 : vector<16x128xf32>, i32 -> vector<16x128xf32>
    %106 = vector.broadcast %48 : vector<1x128xf32> to vector<16x128xf32>
    %107 = arith.mulf %105, %106 : vector<16x128xf32>
    %108 = vector.extract_strided_slice %94 {offsets = [48, 0], sizes = [16, 128], strides = [1, 1]} : vector<192x128xf32> to vector<16x128xf32>
    %109 = arith.mulf %108, %107 : vector<16x128xf32>
    %110 = arith.addf %104, %109 : vector<16x128xf32>
    %111 = vector.extract_strided_slice %94 {offsets = [112, 0], sizes = [16, 128], strides = [1, 1]} : vector<192x128xf32> to vector<16x128xf32>
    %112 = arith.mulf %111, %107 : vector<16x128xf32>
    %113 = arith.addf %98, %112 : vector<16x128xf32>
    %c1_i32_31 = arith.constant 1 : i32
    %114 = tpu.dynamic_rotate %90 by %c1_i32_31 dim 1 : vector<16x128xf32>, i32 -> vector<16x128xf32>
    %115 = vector.broadcast %55 : vector<1x128xf32> to vector<16x128xf32>
    %116 = arith.mulf %114, %115 : vector<16x128xf32>
    %117 = vector.extract_strided_slice %94 {offsets = [16, 0], sizes = [16, 128], strides = [1, 1]} : vector<192x128xf32> to vector<16x128xf32>
    %118 = arith.mulf %117, %116 : vector<16x128xf32>
    %119 = arith.addf %110, %118 : vector<16x128xf32>
    %120 = vector.extract_strided_slice %94 {offsets = [80, 0], sizes = [16, 128], strides = [1, 1]} : vector<192x128xf32> to vector<16x128xf32>
    %121 = arith.mulf %120, %116 : vector<16x128xf32>
    %122 = arith.addf %113, %121 : vector<16x128xf32>
    %c2_i32_32 = arith.constant 2 : i32
    %123 = tpu.dynamic_rotate %90 by %c2_i32_32 dim 1 : vector<16x128xf32>, i32 -> vector<16x128xf32>
    %124 = vector.broadcast %62 : vector<1x128xf32> to vector<16x128xf32>
    %125 = arith.mulf %123, %124 : vector<16x128xf32>
    %126 = vector.extract_strided_slice %94 {offsets = [0, 0], sizes = [16, 128], strides = [1, 1]} : vector<192x128xf32> to vector<16x128xf32>
    %127 = arith.mulf %126, %125 : vector<16x128xf32>
    %128 = arith.addf %119, %127 : vector<16x128xf32>
    %129 = tpu.concatenate %128, %122 in 0 : vector<16x128xf32>, vector<16x128xf32> -> vector<32x128xf32>
    %130 = arith.mulf %129, %129 : vector<32x128xf32>
    %131 = tpu.concatenate %129, %130 in 0 : vector<32x128xf32>, vector<32x128xf32> -> vector<64x128xf32>
    %c0_33 = arith.constant 0 : index
    %c0_34 = arith.constant 0 : index
    %132 = vector.load %arg3[%c0_33, %c0_34] : memref<128x8xf32, #tpu.memory_space<vmem>>, vector<128x8xf32>
    %cst_35 = arith.constant dense<0.000000e+00> : vector<64x8xf32>
    %133 = tpu.matmul %131, %132, %cst_35 {dimension_numbers = #tpu.dot_dimension_numbers<[1], [0], [0], [1], [0, 0, 1, 1], [], []>} : vector<64x128xf32>, vector<128x8xf32>, vector<64x8xf32> -> vector<64x8xf32>
    %c0_36 = arith.constant 0 : index
    %c0_37 = arith.constant 0 : index
    %134 = vector.load %arg2[%c0_36, %c0_37] : memref<8x128xf32, #tpu.memory_space<vmem>>, vector<8x128xf32>
    %cst_38 = arith.constant dense<0.000000e+00> : vector<64x128xf32>
    %135 = tpu.matmul %133, %134, %cst_38 {dimension_numbers = #tpu.dot_dimension_numbers<[1], [0], [0], [1], [0, 0, 1, 1], [], []>} : vector<64x8xf32>, vector<8x128xf32>, vector<64x128xf32> -> vector<64x128xf32>
    %cst_39 = arith.constant 3.125000e-02 : f32
    %136 = vector.broadcast %cst_39 : f32 to vector<64x128xf32>
    %137 = arith.mulf %135, %136 : vector<64x128xf32>
    %138 = vector.extract_strided_slice %137 {offsets = [0, 0], sizes = [32, 128], strides = [1, 1]} : vector<64x128xf32> to vector<32x128xf32>
    %139 = vector.extract_strided_slice %137 {offsets = [32, 0], sizes = [32, 128], strides = [1, 1]} : vector<64x128xf32> to vector<32x128xf32>
    %140 = arith.mulf %138, %138 : vector<32x128xf32>
    %141 = arith.subf %139, %140 : vector<32x128xf32>
    %142 = vector.extract_strided_slice %94 {offsets = [128, 0], sizes = [32, 128], strides = [1, 1]} : vector<192x128xf32> to vector<32x128xf32>
    %143 = vector.extract_strided_slice %94 {offsets = [160, 0], sizes = [32, 128], strides = [1, 1]} : vector<192x128xf32> to vector<32x128xf32>
    %144 = arith.subf %129, %138 : vector<32x128xf32>
    %cst_40 = arith.constant 9.99999974E-6 : f32
    %145 = vector.broadcast %cst_40 : f32 to vector<32x128xf32>
    %146 = arith.addf %141, %145 : vector<32x128xf32>
    %147 = math.rsqrt %146 : vector<32x128xf32>
    %148 = arith.mulf %142, %147 : vector<32x128xf32>
    %149 = arith.mulf %144, %148 : vector<32x128xf32>
    %150 = arith.addf %149, %143 : vector<32x128xf32>
    %151 = vector.extract_strided_slice %150 {offsets = [0, 0], sizes = [16, 128], strides = [1, 1]} : vector<32x128xf32> to vector<16x128xf32>
    %152 = vector.extract_strided_slice %150 {offsets = [16, 0], sizes = [16, 128], strides = [1, 1]} : vector<32x128xf32> to vector<16x128xf32>
    %153 = arith.addf %151, %152 : vector<16x128xf32>
    %cst_41 = arith.constant dense<0.000000e+00> : vector<16xf32>
    %154 = vector.multi_reduction <add>, %153, %cst_41 [1] : vector<16x128xf32> to vector<16xf32>
    %155 = vector.shape_cast %154 : vector<16xf32> to vector<16x1xf32>
    %cst_42 = arith.constant 7.812500e-03 : f32
    %156 = vector.broadcast %cst_42 : f32 to vector<16x1xf32>
    %157 = arith.mulf %155, %156 : vector<16x1xf32>
    %158 = vector.broadcast %157 : vector<16x1xf32> to vector<16x128xf32>
    %159 = arith.subf %153, %158 : vector<16x128xf32>
    %160 = arith.mulf %159, %159 : vector<16x128xf32>
    %cst_43 = arith.constant dense<0.000000e+00> : vector<16xf32>
    %161 = vector.multi_reduction <add>, %160, %cst_43 [1] : vector<16x128xf32> to vector<16xf32>
    %162 = vector.shape_cast %161 : vector<16xf32> to vector<16x1xf32>
    %cst_44 = arith.constant 7.812500e-03 : f32
    %163 = vector.broadcast %cst_44 : f32 to vector<16x1xf32>
    %164 = arith.mulf %162, %163 : vector<16x1xf32>
    %c0_45 = arith.constant 0 : index
    %c0_46 = arith.constant 0 : index
    %c0_47 = arith.constant 0 : index
    %c0_48 = arith.constant 0 : index
    %165 = vector.load %arg7[%c0_45, %c0_46, %c0_47, %c0_48] : memref<2x2x16x1xf32, #tpu.memory_space<vmem>>, vector<1x1x16x1xf32>
    %166 = vector.shape_cast %165 : vector<1x1x16x1xf32> to vector<16x1xf32>
    %cst_49 = arith.constant 9.99999974E-6 : f32
    %167 = vector.broadcast %cst_49 : f32 to vector<16x1xf32>
    %168 = arith.addf %164, %167 : vector<16x1xf32>
    %169 = math.rsqrt %168 : vector<16x1xf32>
    %170 = arith.mulf %166, %169 : vector<16x1xf32>
    %171 = vector.broadcast %170 : vector<16x1xf32> to vector<16x128xf32>
    %172 = arith.mulf %159, %171 : vector<16x128xf32>
    %c0_50 = arith.constant 0 : index
    %c1_51 = arith.constant 1 : index
    %c0_52 = arith.constant 0 : index
    %c0_53 = arith.constant 0 : index
    %173 = vector.load %arg7[%c0_50, %c1_51, %c0_52, %c0_53] : memref<2x2x16x1xf32, #tpu.memory_space<vmem>>, vector<1x1x16x1xf32>
    %174 = vector.shape_cast %173 : vector<1x1x16x1xf32> to vector<16x1xf32>
    %175 = vector.broadcast %174 : vector<16x1xf32> to vector<16x128xf32>
    %176 = arith.addf %172, %175 : vector<16x128xf32>
    %177 = arith.truncf %176 : vector<16x128xf32> to vector<16x128xbf16>
    %178 = vector.extract_strided_slice %177 {offsets = [0, 0], sizes = [16, 32], strides = [1, 1]} : vector<16x128xbf16> to vector<16x32xbf16>
    %179 = vector.extract_strided_slice %177 {offsets = [0, 32], sizes = [16, 32], strides = [1, 1]} : vector<16x128xbf16> to vector<16x32xbf16>
    %180 = vector.extract_strided_slice %177 {offsets = [0, 64], sizes = [16, 32], strides = [1, 1]} : vector<16x128xbf16> to vector<16x32xbf16>
    %181 = vector.extract_strided_slice %177 {offsets = [0, 96], sizes = [16, 32], strides = [1, 1]} : vector<16x128xbf16> to vector<16x32xbf16>
    %182 = tpu.concatenate %178, %179, %180, %181 in 0 : vector<16x32xbf16>, vector<16x32xbf16>, vector<16x32xbf16>, vector<16x32xbf16> -> vector<64x32xbf16>
    %c0_54 = arith.constant 0 : index
    %c0_55 = arith.constant 0 : index
    %c0_56 = arith.constant 0 : index
    %183 = vector.load %arg10[%c0_54, %c0_55, %c0_56] : memref<2x128x64xbf16, #tpu.memory_space<vmem>>, vector<1x128x64xbf16>
    %184 = vector.shape_cast %183 : vector<1x128x64xbf16> to vector<128x64xbf16>
    %cst_57 = arith.constant dense<0.000000e+00> : vector<128x32xf32>
    %185 = tpu.matmul %184, %182, %cst_57 {dimension_numbers = #tpu.dot_dimension_numbers<[1], [0], [0], [1], [0, 0, 1, 1], [], []>} : vector<128x64xbf16>, vector<64x32xbf16>, vector<128x32xf32> -> vector<128x32xf32>
    %c0_58 = arith.constant 0 : index
    %c0_59 = arith.constant 0 : index
    %c0_60 = arith.constant 0 : index
    %186 = vector.load %arg11[%c0_58, %c0_59, %c0_60] : memref<2x128x1xf32, #tpu.memory_space<vmem>>, vector<1x128x1xf32>
    %187 = vector.shape_cast %186 : vector<1x128x1xf32> to vector<128x1xf32>
    %188 = vector.broadcast %187 : vector<128x1xf32> to vector<128x32xf32>
    %189 = arith.addf %185, %188 : vector<128x32xf32>
    %cst_61 = arith.constant 5.000000e-01 : f32
    %190 = vector.broadcast %cst_61 : f32 to vector<128x32xf32>
    %191 = arith.mulf %190, %189 : vector<128x32xf32>
    %cst_62 = arith.constant 4.471500e-02 : f32
    %192 = vector.broadcast %cst_62 : f32 to vector<128x32xf32>
    %193 = arith.mulf %192, %189 : vector<128x32xf32>
    %194 = arith.mulf %193, %189 : vector<128x32xf32>
    %195 = arith.mulf %194, %189 : vector<128x32xf32>
    %196 = arith.addf %189, %195 : vector<128x32xf32>
    %cst_63 = arith.constant 0.797884583 : f32
    %197 = vector.broadcast %cst_63 : f32 to vector<128x32xf32>
    %198 = arith.mulf %197, %196 : vector<128x32xf32>
    %199 = math.tanh %198 : vector<128x32xf32>
    %cst_64 = arith.constant 1.000000e+00 : f32
    %200 = vector.broadcast %cst_64 : f32 to vector<128x32xf32>
    %201 = arith.addf %200, %199 : vector<128x32xf32>
    %202 = arith.mulf %191, %201 : vector<128x32xf32>
    %c0_65 = arith.constant 0 : index
    %c0_66 = arith.constant 0 : index
    %c0_67 = arith.constant 0 : index
    %203 = vector.load %arg12[%c0_65, %c0_66, %c0_67] : memref<2x128x128xbf16, #tpu.memory_space<vmem>>, vector<1x128x128xbf16>
    %204 = vector.shape_cast %203 : vector<1x128x128xbf16> to vector<128x128xbf16>
    %205 = arith.truncf %202 : vector<128x32xf32> to vector<128x32xbf16>
    %cst_68 = arith.constant dense<0.000000e+00> : vector<128x32xf32>
    %206 = tpu.matmul %204, %205, %cst_68 {dimension_numbers = #tpu.dot_dimension_numbers<[1], [0], [0], [1], [0, 0, 1, 1], [], []>} : vector<128x128xbf16>, vector<128x32xbf16>, vector<128x32xf32> -> vector<128x32xf32>
    %c0_69 = arith.constant 0 : index
    %c0_70 = arith.constant 0 : index
    %c0_71 = arith.constant 0 : index
    %207 = vector.load %arg13[%c0_69, %c0_70, %c0_71] : memref<2x128x1xf32, #tpu.memory_space<vmem>>, vector<1x128x1xf32>
    %208 = vector.shape_cast %207 : vector<1x128x1xf32> to vector<128x1xf32>
    %209 = vector.broadcast %208 : vector<128x1xf32> to vector<128x32xf32>
    %210 = arith.addf %206, %209 : vector<128x32xf32>
    %cst_72 = arith.constant 5.000000e-01 : f32
    %211 = vector.broadcast %cst_72 : f32 to vector<128x32xf32>
    %212 = arith.mulf %211, %210 : vector<128x32xf32>
    %cst_73 = arith.constant 4.471500e-02 : f32
    %213 = vector.broadcast %cst_73 : f32 to vector<128x32xf32>
    %214 = arith.mulf %213, %210 : vector<128x32xf32>
    %215 = arith.mulf %214, %210 : vector<128x32xf32>
    %216 = arith.mulf %215, %210 : vector<128x32xf32>
    %217 = arith.addf %210, %216 : vector<128x32xf32>
    %cst_74 = arith.constant 0.797884583 : f32
    %218 = vector.broadcast %cst_74 : f32 to vector<128x32xf32>
    %219 = arith.mulf %218, %217 : vector<128x32xf32>
    %220 = math.tanh %219 : vector<128x32xf32>
    %cst_75 = arith.constant 1.000000e+00 : f32
    %221 = vector.broadcast %cst_75 : f32 to vector<128x32xf32>
    %222 = arith.addf %221, %220 : vector<128x32xf32>
    %223 = arith.mulf %212, %222 : vector<128x32xf32>
    %c0_76 = arith.constant 0 : index
    %c0_77 = arith.constant 0 : index
    %c0_78 = arith.constant 0 : index
    %224 = vector.load %arg14[%c0_76, %c0_77, %c0_78] : memref<2x64x128xbf16, #tpu.memory_space<vmem>>, vector<1x64x128xbf16>
    %225 = vector.shape_cast %224 : vector<1x64x128xbf16> to vector<64x128xbf16>
    %226 = arith.truncf %223 : vector<128x32xf32> to vector<128x32xbf16>
    %cst_79 = arith.constant dense<0.000000e+00> : vector<64x32xf32>
    %227 = tpu.matmul %225, %226, %cst_79 {dimension_numbers = #tpu.dot_dimension_numbers<[1], [0], [0], [1], [0, 0, 1, 1], [], []>} : vector<64x128xbf16>, vector<128x32xbf16>, vector<64x32xf32> -> vector<64x32xf32>
    %c0_80 = arith.constant 0 : index
    %c0_81 = arith.constant 0 : index
    %c0_82 = arith.constant 0 : index
    %228 = vector.load %arg15[%c0_80, %c0_81, %c0_82] : memref<2x64x1xf32, #tpu.memory_space<vmem>>, vector<1x64x1xf32>
    %229 = vector.shape_cast %228 : vector<1x64x1xf32> to vector<64x1xf32>
    %230 = vector.broadcast %229 : vector<64x1xf32> to vector<64x32xf32>
    %231 = arith.addf %227, %230 : vector<64x32xf32>
    %232 = vector.extract_strided_slice %231 {offsets = [0, 0], sizes = [16, 32], strides = [1, 1]} : vector<64x32xf32> to vector<16x32xf32>
    %233 = vector.extract_strided_slice %231 {offsets = [16, 0], sizes = [16, 32], strides = [1, 1]} : vector<64x32xf32> to vector<16x32xf32>
    %234 = vector.extract_strided_slice %231 {offsets = [32, 0], sizes = [16, 32], strides = [1, 1]} : vector<64x32xf32> to vector<16x32xf32>
    %235 = vector.extract_strided_slice %231 {offsets = [48, 0], sizes = [16, 32], strides = [1, 1]} : vector<64x32xf32> to vector<16x32xf32>
    %236 = tpu.concatenate %232, %233, %234, %235 in 1 : vector<16x32xf32>, vector<16x32xf32>, vector<16x32xf32>, vector<16x32xf32> -> vector<16x128xf32>
    %237 = arith.addf %90, %236 : vector<16x128xf32>
    %238 = arith.truncf %237 : vector<16x128xf32> to vector<16x128xbf16>
    %c0_83 = arith.constant 0 : index
    %c0_84 = arith.constant 0 : index
    %239 = vector.load %arg4[%c0_83, %c0_84] : memref<128x256xbf16, #tpu.memory_space<vmem>>, vector<128x256xbf16>
    %cst_85 = arith.constant dense<0.000000e+00> : vector<16x256xf32>
    %240 = tpu.matmul %238, %239, %cst_85 {dimension_numbers = #tpu.dot_dimension_numbers<[1], [0], [0], [1], [0, 0, 1, 1], [], []>} : vector<16x128xbf16>, vector<128x256xbf16>, vector<16x256xf32> -> vector<16x256xf32>
    %241 = vector.extract_strided_slice %240 {offsets = [0, 0], sizes = [16, 128], strides = [1, 1]} : vector<16x256xf32> to vector<16x128xf32>
    %242 = vector.extract_strided_slice %240 {offsets = [0, 128], sizes = [16, 128], strides = [1, 1]} : vector<16x256xf32> to vector<16x128xf32>
    %cst_86 = arith.constant 0.000000e+00 : f32
    %243 = vector.broadcast %cst_86 : f32 to vector<16x128xf32>
    %244 = arith.subf %243, %242 : vector<16x128xf32>
    %245 = tpu.concatenate %244, %241 in 1 : vector<16x128xf32>, vector<16x128xf32> -> vector<16x256xf32>
    %246 = tpu.concatenate %240, %245 in 0 : vector<16x256xf32>, vector<16x256xf32> -> vector<32x256xf32>
    %c1_87 = arith.constant 1 : index
    %c0_88 = arith.constant 0 : index
    %c0_89 = arith.constant 0 : index
    %c0_90 = arith.constant 0 : index
    %247 = vector.load %arg9[%c1_87, %c0_88, %c0_89, %c0_90] : memref<2x2x16x1xf32, #tpu.memory_space<vmem>>, vector<1x1x16x1xf32>
    %248 = vector.shape_cast %247 : vector<1x1x16x1xf32> to vector<16x1xf32>
    %249 = vector.shape_cast %248 : vector<16x1xf32> to vector<16x1xf32>
    %250 = vector.broadcast %249 : vector<16x1xf32> to vector<16x128xf32>
    %c1_91 = arith.constant 1 : index
    %c1_92 = arith.constant 1 : index
    %c0_93 = arith.constant 0 : index
    %c0_94 = arith.constant 0 : index
    %251 = vector.load %arg9[%c1_91, %c1_92, %c0_93, %c0_94] : memref<2x2x16x1xf32, #tpu.memory_space<vmem>>, vector<1x1x16x1xf32>
    %252 = vector.shape_cast %251 : vector<1x1x16x1xf32> to vector<16x1xf32>
    %253 = vector.shape_cast %252 : vector<16x1xf32> to vector<16x1xf32>
    %254 = vector.broadcast %253 : vector<16x1xf32> to vector<16x128xf32>
    %255 = tpu.concatenate %250, %254 in 1 : vector<16x128xf32>, vector<16x128xf32> -> vector<16x256xf32>
    %c1_95 = arith.constant 1 : index
    %c0_96 = arith.constant 0 : index
    %c0_97 = arith.constant 0 : index
    %256 = vector.load %arg8[%c1_95, %c0_96, %c0_97] : memref<2x16x32xf32, #tpu.memory_space<vmem>>, vector<1x16x32xf32>
    %257 = vector.shape_cast %256 : vector<1x16x32xf32> to vector<16x32xf32>
    %cst_98 = arith.constant dense<0.000000e+00> : vector<16x256xf32>
    %258 = tpu.matmul %257, %246, %cst_98 {dimension_numbers = #tpu.dot_dimension_numbers<[1], [0], [0], [1], [0, 0, 1, 1], [], []>} : vector<16x32xf32>, vector<32x256xf32>, vector<16x256xf32> -> vector<16x256xf32>
    %259 = arith.addf %258, %255 : vector<16x256xf32>
    %cst_99 = arith.constant 0.000000e+00 : f32
    %260 = vector.broadcast %cst_99 : f32 to vector<16x256xf32>
    %261 = arith.maximumf %259, %260 : vector<16x256xf32>
    %262 = arith.truncf %261 : vector<16x256xf32> to vector<16x256xbf16>
    %c0_100 = arith.constant 0 : index
    %c0_101 = arith.constant 0 : index
    %263 = vector.load %arg5[%c0_100, %c0_101] : memref<256x128xbf16, #tpu.memory_space<vmem>>, vector<256x128xbf16>
    %cst_102 = arith.constant dense<0.000000e+00> : vector<16x128xf32>
    %264 = tpu.matmul %262, %263, %cst_102 {dimension_numbers = #tpu.dot_dimension_numbers<[1], [0], [0], [1], [0, 0, 1, 1], [], []>} : vector<16x256xbf16>, vector<256x128xbf16>, vector<16x128xf32> -> vector<16x128xf32>
    %265 = arith.addf %237, %264 : vector<16x128xf32>
    %c1_103 = arith.constant 1 : index
    %c0_104 = arith.constant 0 : index
    %c0_105 = arith.constant 0 : index
    %266 = vector.load %arg6[%c1_103, %c0_104, %c0_105] : memref<2x192x8xf32, #tpu.memory_space<vmem>>, vector<1x192x8xf32>
    %267 = vector.shape_cast %266 : vector<1x192x8xf32> to vector<192x8xf32>
    %c0_106 = arith.constant 0 : index
    %c0_107 = arith.constant 0 : index
    %268 = vector.load %arg2[%c0_106, %c0_107] : memref<8x128xf32, #tpu.memory_space<vmem>>, vector<8x128xf32>
    %cst_108 = arith.constant dense<0.000000e+00> : vector<192x128xf32>
    %269 = tpu.matmul %267, %268, %cst_108 {dimension_numbers = #tpu.dot_dimension_numbers<[1], [0], [0], [1], [0, 0, 1, 1], [], []>} : vector<192x8xf32>, vector<8x128xf32>, vector<192x128xf32> -> vector<192x128xf32>
    %270 = vector.extract_strided_slice %269 {offsets = [32, 0], sizes = [16, 128], strides = [1, 1]} : vector<192x128xf32> to vector<16x128xf32>
    %271 = arith.mulf %270, %265 : vector<16x128xf32>
    %272 = vector.extract_strided_slice %269 {offsets = [96, 0], sizes = [16, 128], strides = [1, 1]} : vector<192x128xf32> to vector<16x128xf32>
    %273 = arith.mulf %272, %265 : vector<16x128xf32>
    %c126_i32_109 = arith.constant 126 : i32
    %274 = tpu.dynamic_rotate %265 by %c126_i32_109 dim 1 : vector<16x128xf32>, i32 -> vector<16x128xf32>
    %275 = vector.broadcast %41 : vector<1x128xf32> to vector<16x128xf32>
    %276 = arith.mulf %274, %275 : vector<16x128xf32>
    %277 = vector.extract_strided_slice %269 {offsets = [64, 0], sizes = [16, 128], strides = [1, 1]} : vector<192x128xf32> to vector<16x128xf32>
    %278 = arith.mulf %277, %276 : vector<16x128xf32>
    %279 = arith.addf %271, %278 : vector<16x128xf32>
    %c127_i32_110 = arith.constant 127 : i32
    %280 = tpu.dynamic_rotate %265 by %c127_i32_110 dim 1 : vector<16x128xf32>, i32 -> vector<16x128xf32>
    %281 = vector.broadcast %48 : vector<1x128xf32> to vector<16x128xf32>
    %282 = arith.mulf %280, %281 : vector<16x128xf32>
    %283 = vector.extract_strided_slice %269 {offsets = [48, 0], sizes = [16, 128], strides = [1, 1]} : vector<192x128xf32> to vector<16x128xf32>
    %284 = arith.mulf %283, %282 : vector<16x128xf32>
    %285 = arith.addf %279, %284 : vector<16x128xf32>
    %286 = vector.extract_strided_slice %269 {offsets = [112, 0], sizes = [16, 128], strides = [1, 1]} : vector<192x128xf32> to vector<16x128xf32>
    %287 = arith.mulf %286, %282 : vector<16x128xf32>
    %288 = arith.addf %273, %287 : vector<16x128xf32>
    %c1_i32_111 = arith.constant 1 : i32
    %289 = tpu.dynamic_rotate %265 by %c1_i32_111 dim 1 : vector<16x128xf32>, i32 -> vector<16x128xf32>
    %290 = vector.broadcast %55 : vector<1x128xf32> to vector<16x128xf32>
    %291 = arith.mulf %289, %290 : vector<16x128xf32>
    %292 = vector.extract_strided_slice %269 {offsets = [16, 0], sizes = [16, 128], strides = [1, 1]} : vector<192x128xf32> to vector<16x128xf32>
    %293 = arith.mulf %292, %291 : vector<16x128xf32>
    %294 = arith.addf %285, %293 : vector<16x128xf32>
    %295 = vector.extract_strided_slice %269 {offsets = [80, 0], sizes = [16, 128], strides = [1, 1]} : vector<192x128xf32> to vector<16x128xf32>
    %296 = arith.mulf %295, %291 : vector<16x128xf32>
    %297 = arith.addf %288, %296 : vector<16x128xf32>
    %c2_i32_112 = arith.constant 2 : i32
    %298 = tpu.dynamic_rotate %265 by %c2_i32_112 dim 1 : vector<16x128xf32>, i32 -> vector<16x128xf32>
    %299 = vector.broadcast %62 : vector<1x128xf32> to vector<16x128xf32>
    %300 = arith.mulf %298, %299 : vector<16x128xf32>
    %301 = vector.extract_strided_slice %269 {offsets = [0, 0], sizes = [16, 128], strides = [1, 1]} : vector<192x128xf32> to vector<16x128xf32>
    %302 = arith.mulf %301, %300 : vector<16x128xf32>
    %303 = arith.addf %294, %302 : vector<16x128xf32>
    %304 = tpu.concatenate %303, %297 in 0 : vector<16x128xf32>, vector<16x128xf32> -> vector<32x128xf32>
    %305 = arith.mulf %304, %304 : vector<32x128xf32>
    %306 = tpu.concatenate %304, %305 in 0 : vector<32x128xf32>, vector<32x128xf32> -> vector<64x128xf32>
    %c0_113 = arith.constant 0 : index
    %c0_114 = arith.constant 0 : index
    %307 = vector.load %arg3[%c0_113, %c0_114] : memref<128x8xf32, #tpu.memory_space<vmem>>, vector<128x8xf32>
    %cst_115 = arith.constant dense<0.000000e+00> : vector<64x8xf32>
    %308 = tpu.matmul %306, %307, %cst_115 {dimension_numbers = #tpu.dot_dimension_numbers<[1], [0], [0], [1], [0, 0, 1, 1], [], []>} : vector<64x128xf32>, vector<128x8xf32>, vector<64x8xf32> -> vector<64x8xf32>
    %c0_116 = arith.constant 0 : index
    %c0_117 = arith.constant 0 : index
    %309 = vector.load %arg2[%c0_116, %c0_117] : memref<8x128xf32, #tpu.memory_space<vmem>>, vector<8x128xf32>
    %cst_118 = arith.constant dense<0.000000e+00> : vector<64x128xf32>
    %310 = tpu.matmul %308, %309, %cst_118 {dimension_numbers = #tpu.dot_dimension_numbers<[1], [0], [0], [1], [0, 0, 1, 1], [], []>} : vector<64x8xf32>, vector<8x128xf32>, vector<64x128xf32> -> vector<64x128xf32>
    %cst_119 = arith.constant 3.125000e-02 : f32
    %311 = vector.broadcast %cst_119 : f32 to vector<64x128xf32>
    %312 = arith.mulf %310, %311 : vector<64x128xf32>
    %313 = vector.extract_strided_slice %312 {offsets = [0, 0], sizes = [32, 128], strides = [1, 1]} : vector<64x128xf32> to vector<32x128xf32>
    %314 = vector.extract_strided_slice %312 {offsets = [32, 0], sizes = [32, 128], strides = [1, 1]} : vector<64x128xf32> to vector<32x128xf32>
    %315 = arith.mulf %313, %313 : vector<32x128xf32>
    %316 = arith.subf %314, %315 : vector<32x128xf32>
    %317 = vector.extract_strided_slice %269 {offsets = [128, 0], sizes = [32, 128], strides = [1, 1]} : vector<192x128xf32> to vector<32x128xf32>
    %318 = vector.extract_strided_slice %269 {offsets = [160, 0], sizes = [32, 128], strides = [1, 1]} : vector<192x128xf32> to vector<32x128xf32>
    %319 = arith.subf %304, %313 : vector<32x128xf32>
    %cst_120 = arith.constant 9.99999974E-6 : f32
    %320 = vector.broadcast %cst_120 : f32 to vector<32x128xf32>
    %321 = arith.addf %316, %320 : vector<32x128xf32>
    %322 = math.rsqrt %321 : vector<32x128xf32>
    %323 = arith.mulf %317, %322 : vector<32x128xf32>
    %324 = arith.mulf %319, %323 : vector<32x128xf32>
    %325 = arith.addf %324, %318 : vector<32x128xf32>
    %326 = vector.extract_strided_slice %325 {offsets = [0, 0], sizes = [16, 128], strides = [1, 1]} : vector<32x128xf32> to vector<16x128xf32>
    %327 = vector.extract_strided_slice %325 {offsets = [16, 0], sizes = [16, 128], strides = [1, 1]} : vector<32x128xf32> to vector<16x128xf32>
    %328 = arith.addf %326, %327 : vector<16x128xf32>
    %cst_121 = arith.constant dense<0.000000e+00> : vector<16xf32>
    %329 = vector.multi_reduction <add>, %328, %cst_121 [1] : vector<16x128xf32> to vector<16xf32>
    %330 = vector.shape_cast %329 : vector<16xf32> to vector<16x1xf32>
    %cst_122 = arith.constant 7.812500e-03 : f32
    %331 = vector.broadcast %cst_122 : f32 to vector<16x1xf32>
    %332 = arith.mulf %330, %331 : vector<16x1xf32>
    %333 = vector.broadcast %332 : vector<16x1xf32> to vector<16x128xf32>
    %334 = arith.subf %328, %333 : vector<16x128xf32>
    %335 = arith.mulf %334, %334 : vector<16x128xf32>
    %cst_123 = arith.constant dense<0.000000e+00> : vector<16xf32>
    %336 = vector.multi_reduction <add>, %335, %cst_123 [1] : vector<16x128xf32> to vector<16xf32>
    %337 = vector.shape_cast %336 : vector<16xf32> to vector<16x1xf32>
    %cst_124 = arith.constant 7.812500e-03 : f32
    %338 = vector.broadcast %cst_124 : f32 to vector<16x1xf32>
    %339 = arith.mulf %337, %338 : vector<16x1xf32>
    %c1_125 = arith.constant 1 : index
    %c0_126 = arith.constant 0 : index
    %c0_127 = arith.constant 0 : index
    %c0_128 = arith.constant 0 : index
    %340 = vector.load %arg7[%c1_125, %c0_126, %c0_127, %c0_128] : memref<2x2x16x1xf32, #tpu.memory_space<vmem>>, vector<1x1x16x1xf32>
    %341 = vector.shape_cast %340 : vector<1x1x16x1xf32> to vector<16x1xf32>
    %cst_129 = arith.constant 9.99999974E-6 : f32
    %342 = vector.broadcast %cst_129 : f32 to vector<16x1xf32>
    %343 = arith.addf %339, %342 : vector<16x1xf32>
    %344 = math.rsqrt %343 : vector<16x1xf32>
    %345 = arith.mulf %341, %344 : vector<16x1xf32>
    %346 = vector.broadcast %345 : vector<16x1xf32> to vector<16x128xf32>
    %347 = arith.mulf %334, %346 : vector<16x128xf32>
    %c1_130 = arith.constant 1 : index
    %c1_131 = arith.constant 1 : index
    %c0_132 = arith.constant 0 : index
    %c0_133 = arith.constant 0 : index
    %348 = vector.load %arg7[%c1_130, %c1_131, %c0_132, %c0_133] : memref<2x2x16x1xf32, #tpu.memory_space<vmem>>, vector<1x1x16x1xf32>
    %349 = vector.shape_cast %348 : vector<1x1x16x1xf32> to vector<16x1xf32>
    %350 = vector.broadcast %349 : vector<16x1xf32> to vector<16x128xf32>
    %351 = arith.addf %347, %350 : vector<16x128xf32>
    %352 = arith.truncf %351 : vector<16x128xf32> to vector<16x128xbf16>
    %353 = vector.extract_strided_slice %352 {offsets = [0, 0], sizes = [16, 32], strides = [1, 1]} : vector<16x128xbf16> to vector<16x32xbf16>
    %354 = vector.extract_strided_slice %352 {offsets = [0, 32], sizes = [16, 32], strides = [1, 1]} : vector<16x128xbf16> to vector<16x32xbf16>
    %355 = vector.extract_strided_slice %352 {offsets = [0, 64], sizes = [16, 32], strides = [1, 1]} : vector<16x128xbf16> to vector<16x32xbf16>
    %356 = vector.extract_strided_slice %352 {offsets = [0, 96], sizes = [16, 32], strides = [1, 1]} : vector<16x128xbf16> to vector<16x32xbf16>
    %357 = tpu.concatenate %353, %354, %355, %356 in 0 : vector<16x32xbf16>, vector<16x32xbf16>, vector<16x32xbf16>, vector<16x32xbf16> -> vector<64x32xbf16>
    %c1_134 = arith.constant 1 : index
    %c0_135 = arith.constant 0 : index
    %c0_136 = arith.constant 0 : index
    %358 = vector.load %arg10[%c1_134, %c0_135, %c0_136] : memref<2x128x64xbf16, #tpu.memory_space<vmem>>, vector<1x128x64xbf16>
    %359 = vector.shape_cast %358 : vector<1x128x64xbf16> to vector<128x64xbf16>
    %cst_137 = arith.constant dense<0.000000e+00> : vector<128x32xf32>
    %360 = tpu.matmul %359, %357, %cst_137 {dimension_numbers = #tpu.dot_dimension_numbers<[1], [0], [0], [1], [0, 0, 1, 1], [], []>} : vector<128x64xbf16>, vector<64x32xbf16>, vector<128x32xf32> -> vector<128x32xf32>
    %c1_138 = arith.constant 1 : index
    %c0_139 = arith.constant 0 : index
    %c0_140 = arith.constant 0 : index
    %361 = vector.load %arg11[%c1_138, %c0_139, %c0_140] : memref<2x128x1xf32, #tpu.memory_space<vmem>>, vector<1x128x1xf32>
    %362 = vector.shape_cast %361 : vector<1x128x1xf32> to vector<128x1xf32>
    %363 = vector.broadcast %362 : vector<128x1xf32> to vector<128x32xf32>
    %364 = arith.addf %360, %363 : vector<128x32xf32>
    %cst_141 = arith.constant 5.000000e-01 : f32
    %365 = vector.broadcast %cst_141 : f32 to vector<128x32xf32>
    %366 = arith.mulf %365, %364 : vector<128x32xf32>
    %cst_142 = arith.constant 4.471500e-02 : f32
    %367 = vector.broadcast %cst_142 : f32 to vector<128x32xf32>
    %368 = arith.mulf %367, %364 : vector<128x32xf32>
    %369 = arith.mulf %368, %364 : vector<128x32xf32>
    %370 = arith.mulf %369, %364 : vector<128x32xf32>
    %371 = arith.addf %364, %370 : vector<128x32xf32>
    %cst_143 = arith.constant 0.797884583 : f32
    %372 = vector.broadcast %cst_143 : f32 to vector<128x32xf32>
    %373 = arith.mulf %372, %371 : vector<128x32xf32>
    %374 = math.tanh %373 : vector<128x32xf32>
    %cst_144 = arith.constant 1.000000e+00 : f32
    %375 = vector.broadcast %cst_144 : f32 to vector<128x32xf32>
    %376 = arith.addf %375, %374 : vector<128x32xf32>
    %377 = arith.mulf %366, %376 : vector<128x32xf32>
    %c1_145 = arith.constant 1 : index
    %c0_146 = arith.constant 0 : index
    %c0_147 = arith.constant 0 : index
    %378 = vector.load %arg12[%c1_145, %c0_146, %c0_147] : memref<2x128x128xbf16, #tpu.memory_space<vmem>>, vector<1x128x128xbf16>
    %379 = vector.shape_cast %378 : vector<1x128x128xbf16> to vector<128x128xbf16>
    %380 = arith.truncf %377 : vector<128x32xf32> to vector<128x32xbf16>
    %cst_148 = arith.constant dense<0.000000e+00> : vector<128x32xf32>
    %381 = tpu.matmul %379, %380, %cst_148 {dimension_numbers = #tpu.dot_dimension_numbers<[1], [0], [0], [1], [0, 0, 1, 1], [], []>} : vector<128x128xbf16>, vector<128x32xbf16>, vector<128x32xf32> -> vector<128x32xf32>
    %c1_149 = arith.constant 1 : index
    %c0_150 = arith.constant 0 : index
    %c0_151 = arith.constant 0 : index
    %382 = vector.load %arg13[%c1_149, %c0_150, %c0_151] : memref<2x128x1xf32, #tpu.memory_space<vmem>>, vector<1x128x1xf32>
    %383 = vector.shape_cast %382 : vector<1x128x1xf32> to vector<128x1xf32>
    %384 = vector.broadcast %383 : vector<128x1xf32> to vector<128x32xf32>
    %385 = arith.addf %381, %384 : vector<128x32xf32>
    %cst_152 = arith.constant 5.000000e-01 : f32
    %386 = vector.broadcast %cst_152 : f32 to vector<128x32xf32>
    %387 = arith.mulf %386, %385 : vector<128x32xf32>
    %cst_153 = arith.constant 4.471500e-02 : f32
    %388 = vector.broadcast %cst_153 : f32 to vector<128x32xf32>
    %389 = arith.mulf %388, %385 : vector<128x32xf32>
    %390 = arith.mulf %389, %385 : vector<128x32xf32>
    %391 = arith.mulf %390, %385 : vector<128x32xf32>
    %392 = arith.addf %385, %391 : vector<128x32xf32>
    %cst_154 = arith.constant 0.797884583 : f32
    %393 = vector.broadcast %cst_154 : f32 to vector<128x32xf32>
    %394 = arith.mulf %393, %392 : vector<128x32xf32>
    %395 = math.tanh %394 : vector<128x32xf32>
    %cst_155 = arith.constant 1.000000e+00 : f32
    %396 = vector.broadcast %cst_155 : f32 to vector<128x32xf32>
    %397 = arith.addf %396, %395 : vector<128x32xf32>
    %398 = arith.mulf %387, %397 : vector<128x32xf32>
    %c1_156 = arith.constant 1 : index
    %c0_157 = arith.constant 0 : index
    %c0_158 = arith.constant 0 : index
    %399 = vector.load %arg14[%c1_156, %c0_157, %c0_158] : memref<2x64x128xbf16, #tpu.memory_space<vmem>>, vector<1x64x128xbf16>
    %400 = vector.shape_cast %399 : vector<1x64x128xbf16> to vector<64x128xbf16>
    %401 = arith.truncf %398 : vector<128x32xf32> to vector<128x32xbf16>
    %cst_159 = arith.constant dense<0.000000e+00> : vector<64x32xf32>
    %402 = tpu.matmul %400, %401, %cst_159 {dimension_numbers = #tpu.dot_dimension_numbers<[1], [0], [0], [1], [0, 0, 1, 1], [], []>} : vector<64x128xbf16>, vector<128x32xbf16>, vector<64x32xf32> -> vector<64x32xf32>
    %c1_160 = arith.constant 1 : index
    %c0_161 = arith.constant 0 : index
    %c0_162 = arith.constant 0 : index
    %403 = vector.load %arg15[%c1_160, %c0_161, %c0_162] : memref<2x64x1xf32, #tpu.memory_space<vmem>>, vector<1x64x1xf32>
    %404 = vector.shape_cast %403 : vector<1x64x1xf32> to vector<64x1xf32>
    %405 = vector.broadcast %404 : vector<64x1xf32> to vector<64x32xf32>
    %406 = arith.addf %402, %405 : vector<64x32xf32>
    %407 = vector.extract_strided_slice %406 {offsets = [0, 0], sizes = [16, 32], strides = [1, 1]} : vector<64x32xf32> to vector<16x32xf32>
    %408 = vector.extract_strided_slice %406 {offsets = [16, 0], sizes = [16, 32], strides = [1, 1]} : vector<64x32xf32> to vector<16x32xf32>
    %409 = vector.extract_strided_slice %406 {offsets = [32, 0], sizes = [16, 32], strides = [1, 1]} : vector<64x32xf32> to vector<16x32xf32>
    %410 = vector.extract_strided_slice %406 {offsets = [48, 0], sizes = [16, 32], strides = [1, 1]} : vector<64x32xf32> to vector<16x32xf32>
    %411 = tpu.concatenate %407, %408, %409, %410 in 1 : vector<16x32xf32>, vector<16x32xf32>, vector<16x32xf32>, vector<16x32xf32> -> vector<16x128xf32>
    %412 = arith.addf %265, %411 : vector<16x128xf32>
    %413 = vector.extract_strided_slice %412 {offsets = [0, 0], sizes = [16, 16], strides = [1, 1]} : vector<16x128xf32> to vector<16x16xf32>
    %c0_163 = arith.constant 0 : index
    %c0_164 = arith.constant 0 : index
    %c0_165 = arith.constant 0 : index
    %c0_166 = arith.constant 0 : index
    %414 = vector.load %arg16[%c0_163, %c0_164, %c0_165, %c0_166] : memref<2x4x16x16xf32, #tpu.memory_space<vmem>>, vector<1x1x16x16xf32>
    %415 = vector.shape_cast %414 : vector<1x1x16x16xf32> to vector<16x16xf32>
    %416 = vector.shape_cast %413 : vector<16x16xf32> to vector<1x1x16x16xf32>
    tpu.vector_store %arg16[%c0_163, %c0_164, %c0_165, %c0_166], %416 {strides = array<i32>} : memref<2x4x16x16xf32, #tpu.memory_space<vmem>>, vector<1x1x16x16xf32>,
    %417 = vector.extract_strided_slice %412 {offsets = [0, 16], sizes = [16, 16], strides = [1, 1]} : vector<16x128xf32> to vector<16x16xf32>
    %c1_167 = arith.constant 1 : index
    %c0_168 = arith.constant 0 : index
    %c0_169 = arith.constant 0 : index
    %c0_170 = arith.constant 0 : index
    %418 = vector.load %arg16[%c1_167, %c0_168, %c0_169, %c0_170] : memref<2x4x16x16xf32, #tpu.memory_space<vmem>>, vector<1x1x16x16xf32>
    %419 = vector.shape_cast %418 : vector<1x1x16x16xf32> to vector<16x16xf32>
    %420 = vector.shape_cast %417 : vector<16x16xf32> to vector<1x1x16x16xf32>
    tpu.vector_store %arg16[%c1_167, %c0_168, %c0_169, %c0_170], %420 {strides = array<i32>} : memref<2x4x16x16xf32, #tpu.memory_space<vmem>>, vector<1x1x16x16xf32>,
    %421 = vector.extract_strided_slice %412 {offsets = [0, 32], sizes = [16, 16], strides = [1, 1]} : vector<16x128xf32> to vector<16x16xf32>
    %c0_171 = arith.constant 0 : index
    %c1_172 = arith.constant 1 : index
    %c0_173 = arith.constant 0 : index
    %c0_174 = arith.constant 0 : index
    %422 = vector.load %arg16[%c0_171, %c1_172, %c0_173, %c0_174] : memref<2x4x16x16xf32, #tpu.memory_space<vmem>>, vector<1x1x16x16xf32>
    %423 = vector.shape_cast %422 : vector<1x1x16x16xf32> to vector<16x16xf32>
    %424 = vector.shape_cast %421 : vector<16x16xf32> to vector<1x1x16x16xf32>
    tpu.vector_store %arg16[%c0_171, %c1_172, %c0_173, %c0_174], %424 {strides = array<i32>} : memref<2x4x16x16xf32, #tpu.memory_space<vmem>>, vector<1x1x16x16xf32>,
    %425 = vector.extract_strided_slice %412 {offsets = [0, 48], sizes = [16, 16], strides = [1, 1]} : vector<16x128xf32> to vector<16x16xf32>
    %c1_175 = arith.constant 1 : index
    %c1_176 = arith.constant 1 : index
    %c0_177 = arith.constant 0 : index
    %c0_178 = arith.constant 0 : index
    %426 = vector.load %arg16[%c1_175, %c1_176, %c0_177, %c0_178] : memref<2x4x16x16xf32, #tpu.memory_space<vmem>>, vector<1x1x16x16xf32>
    %427 = vector.shape_cast %426 : vector<1x1x16x16xf32> to vector<16x16xf32>
    %428 = vector.shape_cast %425 : vector<16x16xf32> to vector<1x1x16x16xf32>
    tpu.vector_store %arg16[%c1_175, %c1_176, %c0_177, %c0_178], %428 {strides = array<i32>} : memref<2x4x16x16xf32, #tpu.memory_space<vmem>>, vector<1x1x16x16xf32>,
    %429 = vector.extract_strided_slice %412 {offsets = [0, 64], sizes = [16, 16], strides = [1, 1]} : vector<16x128xf32> to vector<16x16xf32>
    %c0_179 = arith.constant 0 : index
    %c2 = arith.constant 2 : index
    %c0_180 = arith.constant 0 : index
    %c0_181 = arith.constant 0 : index
    %430 = vector.load %arg16[%c0_179, %c2, %c0_180, %c0_181] : memref<2x4x16x16xf32, #tpu.memory_space<vmem>>, vector<1x1x16x16xf32>
    %431 = vector.shape_cast %430 : vector<1x1x16x16xf32> to vector<16x16xf32>
    %432 = vector.shape_cast %429 : vector<16x16xf32> to vector<1x1x16x16xf32>
    tpu.vector_store %arg16[%c0_179, %c2, %c0_180, %c0_181], %432 {strides = array<i32>} : memref<2x4x16x16xf32, #tpu.memory_space<vmem>>, vector<1x1x16x16xf32>,
    %433 = vector.extract_strided_slice %412 {offsets = [0, 80], sizes = [16, 16], strides = [1, 1]} : vector<16x128xf32> to vector<16x16xf32>
    %c1_182 = arith.constant 1 : index
    %c2_183 = arith.constant 2 : index
    %c0_184 = arith.constant 0 : index
    %c0_185 = arith.constant 0 : index
    %434 = vector.load %arg16[%c1_182, %c2_183, %c0_184, %c0_185] : memref<2x4x16x16xf32, #tpu.memory_space<vmem>>, vector<1x1x16x16xf32>
    %435 = vector.shape_cast %434 : vector<1x1x16x16xf32> to vector<16x16xf32>
    %436 = vector.shape_cast %433 : vector<16x16xf32> to vector<1x1x16x16xf32>
    tpu.vector_store %arg16[%c1_182, %c2_183, %c0_184, %c0_185], %436 {strides = array<i32>} : memref<2x4x16x16xf32, #tpu.memory_space<vmem>>, vector<1x1x16x16xf32>,
    %437 = vector.extract_strided_slice %412 {offsets = [0, 96], sizes = [16, 16], strides = [1, 1]} : vector<16x128xf32> to vector<16x16xf32>
    %c0_186 = arith.constant 0 : index
    %c3 = arith.constant 3 : index
    %c0_187 = arith.constant 0 : index
    %c0_188 = arith.constant 0 : index
    %438 = vector.load %arg16[%c0_186, %c3, %c0_187, %c0_188] : memref<2x4x16x16xf32, #tpu.memory_space<vmem>>, vector<1x1x16x16xf32>
    %439 = vector.shape_cast %438 : vector<1x1x16x16xf32> to vector<16x16xf32>
    %440 = vector.shape_cast %437 : vector<16x16xf32> to vector<1x1x16x16xf32>
    tpu.vector_store %arg16[%c0_186, %c3, %c0_187, %c0_188], %440 {strides = array<i32>} : memref<2x4x16x16xf32, #tpu.memory_space<vmem>>, vector<1x1x16x16xf32>,
    %441 = vector.extract_strided_slice %412 {offsets = [0, 112], sizes = [16, 16], strides = [1, 1]} : vector<16x128xf32> to vector<16x16xf32>
    %c1_189 = arith.constant 1 : index
    %c3_190 = arith.constant 3 : index
    %c0_191 = arith.constant 0 : index
    %c0_192 = arith.constant 0 : index
    %442 = vector.load %arg16[%c1_189, %c3_190, %c0_191, %c0_192] : memref<2x4x16x16xf32, #tpu.memory_space<vmem>>, vector<1x1x16x16xf32>
    %443 = vector.shape_cast %442 : vector<1x1x16x16xf32> to vector<16x16xf32>
    %444 = vector.shape_cast %441 : vector<16x16xf32> to vector<1x1x16x16xf32>
    tpu.vector_store %arg16[%c1_189, %c3_190, %c0_191, %c0_192], %444 {strides = array<i32>} : memref<2x4x16x16xf32, #tpu.memory_space<vmem>>, vector<1x1x16x16xf32>,
    return
  }
  func.func @transform_0(%arg0: i32) -> (i32, i32, i32, i32) {
    %c0_i32 = arith.constant 0 : i32
    %c0_i32_0 = arith.constant 0 : i32
    %c0_i32_1 = arith.constant 0 : i32
    %c0_i32_2 = arith.constant 0 : i32
    %c0_i32_3 = arith.constant 0 : i32
    return %c0_i32, %c0_i32_0, %c0_i32_1, %c0_i32_2 : i32, i32, i32, i32
  }
  func.func @transform_1(%arg0: i32) -> (i32, i32) {
    %c0_i32 = arith.constant 0 : i32
    %c0_i32_0 = arith.constant 0 : i32
    %c0_i32_1 = arith.constant 0 : i32
    return %c0_i32, %c0_i32_0 : i32, i32
  }
  func.func @transform_2(%arg0: i32) -> (i32, i32) {
    %c0_i32 = arith.constant 0 : i32
    %c0_i32_0 = arith.constant 0 : i32
    %c0_i32_1 = arith.constant 0 : i32
    return %c0_i32, %c0_i32_0 : i32, i32
  }
  func.func @transform_3(%arg0: i32) -> (i32, i32) {
    %c0_i32 = arith.constant 0 : i32
    %c0_i32_0 = arith.constant 0 : i32
    %c0_i32_1 = arith.constant 0 : i32
    return %c0_i32, %c0_i32_0 : i32, i32
  }
  func.func @transform_4(%arg0: i32) -> (i32, i32) {
    %c0_i32 = arith.constant 0 : i32
    %c0_i32_0 = arith.constant 0 : i32
    %c0_i32_1 = arith.constant 0 : i32
    return %c0_i32, %c0_i32_0 : i32, i32
  }
  func.func @transform_5(%arg0: i32) -> (i32, i32, i32) {
    %c0_i32 = arith.constant 0 : i32
    %c0_i32_0 = arith.constant 0 : i32
    %c0_i32_1 = arith.constant 0 : i32
    %c0_i32_2 = arith.constant 0 : i32
    return %c0_i32, %c0_i32_0, %c0_i32_1 : i32, i32, i32
  }
  func.func @transform_6(%arg0: i32) -> (i32, i32, i32, i32) {
    %c0_i32 = arith.constant 0 : i32
    %c0_i32_0 = arith.constant 0 : i32
    %c0_i32_1 = arith.constant 0 : i32
    %c0_i32_2 = arith.constant 0 : i32
    %c0_i32_3 = arith.constant 0 : i32
    return %c0_i32, %c0_i32_0, %c0_i32_1, %c0_i32_2 : i32, i32, i32, i32
  }
  func.func @transform_7(%arg0: i32) -> (i32, i32, i32) {
    %c0_i32 = arith.constant 0 : i32
    %c0_i32_0 = arith.constant 0 : i32
    %c0_i32_1 = arith.constant 0 : i32
    %c0_i32_2 = arith.constant 0 : i32
    return %c0_i32, %c0_i32_0, %c0_i32_1 : i32, i32, i32
  }
  func.func @transform_8(%arg0: i32) -> (i32, i32, i32, i32) {
    %c0_i32 = arith.constant 0 : i32
    %c0_i32_0 = arith.constant 0 : i32
    %c0_i32_1 = arith.constant 0 : i32
    %c0_i32_2 = arith.constant 0 : i32
    %c0_i32_3 = arith.constant 0 : i32
    return %c0_i32, %c0_i32_0, %c0_i32_1, %c0_i32_2 : i32, i32, i32, i32
  }
  func.func @transform_9(%arg0: i32) -> (i32, i32, i32) {
    %c0_i32 = arith.constant 0 : i32
    %c0_i32_0 = arith.constant 0 : i32
    %c0_i32_1 = arith.constant 0 : i32
    %c0_i32_2 = arith.constant 0 : i32
    return %c0_i32, %c0_i32_0, %c0_i32_1 : i32, i32, i32
  }
  func.func @transform_10(%arg0: i32) -> (i32, i32, i32) {
    %c0_i32 = arith.constant 0 : i32
    %c0_i32_0 = arith.constant 0 : i32
    %c0_i32_1 = arith.constant 0 : i32
    %c0_i32_2 = arith.constant 0 : i32
    return %c0_i32, %c0_i32_0, %c0_i32_1 : i32, i32, i32
  }
  func.func @transform_11(%arg0: i32) -> (i32, i32, i32) {
    %c0_i32 = arith.constant 0 : i32
    %c0_i32_0 = arith.constant 0 : i32
    %c0_i32_1 = arith.constant 0 : i32
    %c0_i32_2 = arith.constant 0 : i32
    return %c0_i32, %c0_i32_0, %c0_i32_1 : i32, i32, i32
  }
  func.func @transform_12(%arg0: i32) -> (i32, i32, i32) {
    %c0_i32 = arith.constant 0 : i32
    %c0_i32_0 = arith.constant 0 : i32
    %c0_i32_1 = arith.constant 0 : i32
    %c0_i32_2 = arith.constant 0 : i32
    return %c0_i32, %c0_i32_0, %c0_i32_1 : i32, i32, i32
  }
  func.func @transform_13(%arg0: i32) -> (i32, i32, i32) {
    %c0_i32 = arith.constant 0 : i32
    %c0_i32_0 = arith.constant 0 : i32
    %c0_i32_1 = arith.constant 0 : i32
    %c0_i32_2 = arith.constant 0 : i32
    return %c0_i32, %c0_i32_0, %c0_i32_1 : i32, i32, i32
  }
  func.func @transform_14(%arg0: i32) -> (i32, i32, i32) {
    %c0_i32 = arith.constant 0 : i32
    %c0_i32_0 = arith.constant 0 : i32
    %c0_i32_1 = arith.constant 0 : i32
    %c0_i32_2 = arith.constant 0 : i32
    return %c0_i32, %c0_i32_0, %c0_i32_1 : i32, i32, i32
  }
  func.func @transform_15(%arg0: i32) -> (i32, i32, i32, i32) {
    %c0_i32 = arith.constant 0 : i32
    %c0_i32_0 = arith.constant 0 : i32
    %c0_i32_1 = arith.constant 0 : i32
    %c0_i32_2 = arith.constant 0 : i32
    %c0_i32_3 = arith.constant 0 : i32
    return %c0_i32, %c0_i32_0, %c0_i32_1, %c0_i32_2 : i32, i32, i32, i32
  }
}

</mosaic_0001>

<bundles_post_ra>
// kernel: stage_forward.1
= control target key start
LH: loop header
LB: loop body
LE: loop exit
PB: predicated region body
PF: predicated region fallthrough
CT: control target
= control target key end

     0   :  { %s7321_s22 = smov 16   ;;  %s5488_s23 = smov 32   ;;  %v5491_v16 = vmov 0   ;;  %s7305_s0 = inlined_call_operand.vmem [shape: f32[2,4,16,16], index: 0, kind: input, shape index: {}]   ;;  %s7306_s1 = inlined_call_operand.vmem [shape: f32[8,128], index: 1, kind: input, shape index: {}]   ;;  %s7307_s2 = inlined_call_operand.vmem [shape: f32[128,8], index: 2, kind: input, shape index: {}]   ;;  %s7308_s3 = inlined_call_operand.vmem [shape: bf16[128,256], index: 3, kind: input, shape index: {}]   ;;  %s7309_s4 = inlined_call_operand.vmem [shape: bf16[256,128], index: 4, kind: input, shape index: {}]   ;;  %s7310_s5 = inlined_call_operand.vmem [shape: f32[2,192,8], index: 5, kind: input, shape index: {}]   ;;  %s7311_s6 = inlined_call_operand.vmem [shape: f32[2,2,16,1], index: 6, kind: input, shape index: {}]   ;;  %s7312_s7 = inlined_call_operand.vmem [shape: f32[2,16,32], index: 7, kind: input, shape index: {}]   ;;  %s7313_s8 = inlined_call_operand.vmem [shape: f32[2,2,16,1], index: 8, kind: input, shape index: {}]   ;;  %s7314_s9 = inlined_call_operand.vmem [shape: bf16[2,128,64], index: 9, kind: input, shape index: {}]   ;;  %s7315_s10 = inlined_call_operand.vmem [shape: f32[2,128,1], index: 10, kind: input, shape index: {}]   ;;  %s7316_s11 = inlined_call_operand.vmem [shape: bf16[2,128,128], index: 11, kind: input, shape index: {}]   ;;  %s7317_s12 = inlined_call_operand.vmem [shape: f32[2,128,1], index: 12, kind: input, shape index: {}]   ;;  %s7318_s13 = inlined_call_operand.vmem [shape: bf16[2,64,128], index: 13, kind: input, shape index: {}]   ;;  %s7319_s14 = inlined_call_operand.vmem [shape: f32[2,64,1], index: 14, kind: input, shape index: {}]   ;;  %s7320_s15 = inlined_call_operand.hbm [shape: f32[2,4,16,16], index: 15, kind: output, shape index: {}]  }
   0x1   :  { %v60_v0 = vld [vmem:[%s7305_s0 + $0x40] sm:$0xff]  ;;  %v54_v1 = vld [vmem:[%s7305_s0 + $0x10] sm:$0xff]  ;;  %v61_v2 = vld [vmem:[%s7305_s0 + $0x48] sm:$0xff]  ;;  %s7323_s25 = smov 48   ;;  %s5490_s21 = smov 64   ;;  %308 = vmatprep.mubr.bf16.mxu0 %v5491_v16  ;;  %5183 = vset.pattern.permute.xlu1 %v5491_v16 }
   0x2   :  { %70 = vrot.lane.b32.xlu0 %v60_v0, %s7321_s22  ;;  %78 = vrot.lane.b32.xlu1 %v54_v1, %s5488_s23  ;;  %v55_v3 = vld [vmem:[%s7305_s0 + $0x18] sm:$0xff]  ;;  %v62_v4 = vld [vmem:[%s7305_s0 + $0x50] sm:$0xff]  ;;  %s7325_s26 = smov 80   ;;  %s5493_s20 = smov 96  }
   0x3   :  { %v63_v5 = vld [vmem:[%s7305_s0 + $0x58] sm:$0xff]  ;;  %v5187_v8 = vld [vmem:[%s7308_s3 + $0x64] ss:$8 sps:$4 sm:$0xff]   ;;  %v5189_v11 = vld [vmem:[%s7308_s3 + $0x60] ss:$8 sps:$4 sm:$0xff]   ;;  %5182 = vset.pattern.permute.xlu0 %v5491_v16  ;;  %s7327_s30 = smov 112  }
   0x4   :  { %v5184_v6 = vld [vmem:[%s7308_s3 + $0x74] ss:$8 sps:$4 sm:$0xff]   ;;  %v5186_v7 = vld [vmem:[%s7308_s3 + $0x70] ss:$8 sps:$4 sm:$0xff]   ;;  %v56_v9 = vld [vmem:[%s7305_s0 + $0x20] sm:$0xff] }
   0x5   :  { %276 = vmatprep.subr.bf16.mxu0 %v5184_v6  ;;  %v57_v10 = vld [vmem:[%s7305_s0 + $0x28] sm:$0xff]  ;;  %v5190_v12 = vld [vmem:[%s7308_s3 + $0x54] ss:$8 sps:$4 sm:$0xff]   ;;  %v64_v13 = vld [vmem:[%s7305_s0 + $0x60] sm:$0xff] }
   0x6   :  { %72 = vrot.lane.b32.xlu0 %v61_v2, %s7321_s22  ;;  %80 = vrot.lane.b32.xlu1 %v55_v3, %s5488_s23  ;;  %v65_v14 = vld [vmem:[%s7305_s0 + $0x68] sm:$0xff]  ;;  %v5192_v15 = vld [vmem:[%s7308_s3 + $0x50] ss:$8 sps:$4 sm:$0xff]  }
   0x7   :  { %277 = vmatpush1.bf16.msra.mxu0 %v5186_v7  ;;  %v5193_v17 = vld [vmem:[%s7308_s3 + $0x44] ss:$8 sps:$4 sm:$0xff]   ;;  %v58_v18 = vld [vmem:[%s7305_s0 + $0x30] sm:$0xff]  ;;  %v59_v19 = vld [vmem:[%s7305_s0 + $0x38] sm:$0xff] }
   0x8   :  { %278 = vmatprep.subr.bf16.mxu0 %v5187_v8  ;;  %v5195_v20 = vld [vmem:[%s7308_s3 + $0x40] ss:$8 sps:$4 sm:$0xff]   ;;  %v5196_v21 = vld [vmem:[%s7308_s3 + $0x34] ss:$8 sps:$4 sm:$0xff]   ;;  %v5198_v24 = vld [vmem:[%s7308_s3 + $0x30] ss:$8 sps:$4 sm:$0xff]  }
   0x9   :  { %v66_v22 = vld [vmem:[%s7305_s0 + $0x70] sm:$0xff]  ;;  %v67_v23 = vld [vmem:[%s7305_s0 + $0x78] sm:$0xff]  ;;  %v5199_v25 = vld [vmem:[%s7308_s3 + $0x24] ss:$8 sps:$4 sm:$0xff]  }
   0xa   :  { %86 = vrot.lane.b32.xlu0 %v62_v4, %s7323_s25  ;;  %88 = vrot.lane.b32.xlu1 %v63_v5, %s7323_s25  ;;  %v5201_v26 = vld [vmem:[%s7308_s3 + $0x20] ss:$8 sps:$4 sm:$0xff]   ;;  %v5202_v27 = vld [vmem:[%s7308_s3 + $0x14] ss:$8 sps:$4 sm:$0xff]  }
   0xb   :  { %279 = vmatpush1.bf16.msra.mxu0 %v5189_v11  ;;  %v5204_v28 = vld [vmem:[%s7308_s3 + $0x10] ss:$8 sps:$4 sm:$0xff]   ;;  %v5205_v29 = vld [vmem:[%s7308_s3 + $0x4] ss:$8 sps:$4 sm:$0xff]   ;;  %v5207_v30 = vld [vmem:[%s7308_s3] ss:$8 sps:$4 sm:$0xff]  }
   0xc   :  { %280 = vmatprep.subr.bf16.mxu0 %v5190_v12 }
   0xe   :  { %94 = vrot.lane.b32.xlu0 %v56_v9, %s5490_s21  ;;  %96 = vrot.lane.b32.xlu1 %v57_v10, %s5490_s21 }
   0xf   :  { %281 = vmatpush1.bf16.msra.mxu0 %v5192_v15 }
  0x10   :  { %282 = vmatprep.subr.bf16.mxu0 %v5193_v17 }
  0x12   :  { %102 = vrot.lane.b32.xlu0 %v64_v13, %s7325_s26  ;;  %104 = vrot.lane.b32.xlu1 %v65_v14, %s7325_s26 }
  0x13   :  { %283 = vmatpush1.bf16.msra.mxu0 %v5195_v20 }
  0x14   :  { %284 = vmatprep.subr.bf16.mxu0 %v5196_v21 }
  0x16   :  { %110 = vrot.lane.b32.xlu0 %v58_v18, %s5493_s20  ;;  %112 = vrot.lane.b32.xlu1 %v59_v19, %s5493_s20 }
  0x17   :  { %285 = vmatpush1.bf16.msra.mxu0 %v5198_v24 }
  0x18   :  { %286 = vmatprep.subr.bf16.mxu0 %v5199_v25 }
  0x1a   :  { %118 = vrot.lane.b32.xlu0 %v66_v22, %s7327_s30  ;;  %120 = vrot.lane.b32.xlu1 %v67_v23, %s7327_s30 }
  0x1b   :  { %287 = vmatpush1.bf16.msra.mxu0 %v5201_v26 }
  0x1c   :  { %288 = vmatprep.subr.bf16.mxu0 %v5202_v27 }
  0x1f   :  { %289 = vmatpush1.bf16.msra.mxu0 %v5204_v28 }
  0x20   :  { %290 = vmatprep.subr.bf16.mxu0 %v5205_v29 }
  0x23   :  { %291 = vmatpush1.bf16.msra.mxu0 %v5207_v30 }
  0x24   :  { %20 = vsyncpa [#allocation3], 0  ;;  %vm124_vm0 = vcmask 130048   ;;  %v52_v39 = vld [vmem:[%s7305_s0] sm:$0xff]  ;;  %v53_v40 = vld [vmem:[%s7305_s0 + $0x8] sm:$0xff]  ;;  %vm127_vm1 = vcmask 261120  }
  0x25   :  { %vm130_vm2 = vcmask 392192   ;;  %vm133_vm3 = vcmask 523264   ;;  %vm136_vm4 = vcmask 654336   ;;  %vm139_vm5 = vcmask 785408   ;;  %v4317_v63 = vld [vmem:[%s7313_s8 + $0x18] sm:$0xff]  ;;  %v4316_v0 = vld [vmem:[%s7313_s8 + $0x10] sm:$0xff] }
  0x26   :  { %vm142_vm6 = vcmask 916480   ;;  %v5495_v62 = vmov 0.0   ;;  %343 = vperm.xlu1 %5183, %v4317_v63   ;;  %338 = vperm.xlu0 %5182, %v4316_v0   ;;  %v321_v1 = vld [vmem:[%s7313_s8] sm:$0xff]  ;;  %v322_v2 = vld [vmem:[%s7313_s8 + $0x8] sm:$0xff]  ;;  %vm633_vm7 = vcmask 64512   ;;  %v610_v6 = vld [vmem:[%s7310_s5 + $0x10] sm:$0xff] }
  0x27   :  { %418 = vmatprep.mubr.f32.mxu1 %v5495_v62  ;;  %v632_v3 = vld [vmem:[%s7306_s1] sm:$0xff]  ;;  %v609_v5 = vld [vmem:[%s7310_s5 + $0x8] sm:$0xff]  ;;  %v611_v7 = vld [vmem:[%s7310_s5 + $0x18] sm:$0xff]  ;;  %s5496_s27 = smov 126   ;;  %s5497_s17 = smov 127  }
  0x28   :  { %v608_v4 = vld [vmem:[%s7310_s5] sm:$0xff]  ;;  %4814 = vmatprep.subr.mxu0 %v632_v3  ;;  %v5208_v14 = vld [vmem:[%s7309_s4 + $0x78] sm:$0xff]   ;;  %v5210_v18 = vld [vmem:[%s7309_s4 + $0x70] sm:$0xff]   ;;  %s5498_s28 = smov 1   ;;  %s7329_s29 = smov 2  }
  0x29   :  { %v346_v15 = vld [vmem:[%s7312_s7] sm:$0xff]  ;;  %v5209_v17 = vld [vmem:[%s7309_s4 + $0x38] sm:$0xff]   ;;  %v347_v19 = vld [vmem:[%s7312_s7 + $0x8] sm:$0xff]  ;;  %s7333_s19 = smov 80   ;;  %s7334_s30 = smov 48  }
  0x2a   :  { %325 = vperm.xlu1 %5183, %v321_v1   ;;  %330 = vperm.xlu0 %5182, %v322_v2   ;;  %v5211_v20 = vld [vmem:[%s7309_s4 + $0x30] sm:$0xff]   ;;  %v5212_v21 = vld [vmem:[%s7309_s4 + $0x68] sm:$0xff]   ;;  %v5214_v23 = vld [vmem:[%s7309_s4 + $0x60] sm:$0xff]  }
  0x2b   :  { %v5213_v22 = vld [vmem:[%s7309_s4 + $0x28] sm:$0xff]   ;;  %v5215_v24 = vld [vmem:[%s7309_s4 + $0x20] sm:$0xff]   ;;  %v5216_v25 = vld [vmem:[%s7309_s4 + $0x58] sm:$0xff]  }
  0x2c   :  { %v5217_v26 = vld [vmem:[%s7309_s4 + $0x18] sm:$0xff]   ;;  %v612_v27 = vld [vmem:[%s7310_s5 + $0x20] sm:$0xff]  ;;  %v5218_v28 = vld [vmem:[%s7309_s4 + $0x50] sm:$0xff]  }
  0x2d   :  { %v613_v29 = vld [vmem:[%s7310_s5 + $0x28] sm:$0xff]  ;;  %v5219_v30 = vld [vmem:[%s7309_s4 + $0x10] sm:$0xff]   ;;  %v962_v2 = vld [vmem:[%s7307_s2 + $0x78] sm:$0xff] }
  0x74   :  { %v71_v31 = vpop.permute.xlu0 %70  ;;  %v79_v32 = vpop.permute.xlu1 %78 }
  0x75   :  { %v125_v43 = vsel %vm124_vm0, %v52_v39, %v71_v31  ;;  %v614_v31 = vld [vmem:[%s7310_s5 + $0x30] sm:$0xff] }
  0x76   :  { %v128_v45 = vsel %vm127_vm1, %v125_v43, %v79_v32  ;;  %v5220_v32 = vld [vmem:[%s7309_s4 + $0x48] sm:$0xff]   ;;  %v618_v39 = vld [vmem:[%s7310_s5 + $0x50] sm:$0xff] }
  0x77   :  { %v622_v43 = vld [vmem:[%s7310_s5 + $0x70] sm:$0xff] }
  0x78   :  { %v73_v33 = vpop.permute.xlu0 %72  ;;  %v81_v34 = vpop.permute.xlu1 %80 }
  0x79   :  { %v126_v44 = vsel %vm124_vm0, %v53_v40, %v73_v33  ;;  %v615_v33 = vld [vmem:[%s7310_s5 + $0x38] sm:$0xff] }
  0x7a   :  { %v129_v46 = vsel %vm127_vm1, %v126_v44, %v81_v34  ;;  %v5221_v34 = vld [vmem:[%s7309_s4 + $0x8] sm:$0xff]   ;;  %v619_v40 = vld [vmem:[%s7310_s5 + $0x58] sm:$0xff] }
  0x7b   :  { %v623_v44 = vld [vmem:[%s7310_s5 + $0x78] sm:$0xff] }
  0x7c   :  { %v87_v35 = vpop.permute.xlu0 %86  ;;  %v89_v36 = vpop.permute.xlu1 %88 }
  0x7d   :  { %v131_v49 = vsel %vm130_vm2, %v128_v45, %v87_v35  ;;  %v132_v50 = vsel %vm130_vm2, %v129_v46, %v89_v36  ;;  %v616_v35 = vld [vmem:[%s7310_s5 + $0x40] sm:$0xff] }
  0x7e   :  { %v5222_v36 = vld [vmem:[%s7309_s4 + $0x40] sm:$0xff]  }
  0x80   :  { %v95_v37 = vpop.permute.xlu0 %94  ;;  %v97_v38 = vpop.permute.xlu1 %96 }
  0x81   :  { %v134_v51 = vsel %vm133_vm3, %v131_v49, %v95_v37  ;;  %v135_v52 = vsel %vm133_vm3, %v132_v50, %v97_v38  ;;  %v617_v37 = vld [vmem:[%s7310_s5 + $0x48] sm:$0xff]  ;;  %v5223_v38 = vld [vmem:[%s7309_s4] sm:$0xff]  }
  0x84   :  { %v103_v41 = vpop.permute.xlu0 %102  ;;  %v105_v42 = vpop.permute.xlu1 %104 }
  0x85   :  { %v137_v53 = vsel %vm136_vm4, %v134_v51, %v103_v41  ;;  %v138_v54 = vsel %vm136_vm4, %v135_v52, %v105_v42  ;;  %v620_v41 = vld [vmem:[%s7310_s5 + $0x60] sm:$0xff]  ;;  %v621_v42 = vld [vmem:[%s7310_s5 + $0x68] sm:$0xff] }
  0x88   :  { %v111_v47 = vpop.permute.xlu0 %110  ;;  %v113_v48 = vpop.permute.xlu1 %112 }
  0x89   :  { %v140_v55 = vsel %vm139_vm5, %v137_v53, %v111_v47  ;;  %v141_v56 = vsel %vm139_vm5, %v138_v54, %v113_v48 }
  0x8c   :  { %v119_v57 = vpop.permute.xlu0 %118  ;;  %v121_v58 = vpop.permute.xlu1 %120 }
  0x8d   :  { %v5704_v59 = vsel %vm142_vm6, %v140_v55, %v119_v57  ;;  %v5706_v60 = vsel %vm142_vm6, %v141_v56, %v121_v58 }
  0x8e   :  { %v179_v61 = vpack.c.bf16 %v5706_v60, %v5704_v59 }
  0x90   :  { %309 = vmatmul.mubr.bf16.vlgmr.msra.gmra.mxu0 %v179_v61 }
  0x91   :  { %4816 = vmatprep.mubr.msk.f32.mxu0 %vm633_vm7, %v608_v4  ;;  %4815 = vmatpush3.msra.mxu0 %v632_v3  ;;  %v960_v4 = vld [vmem:[%s7307_s2 + $0x68] sm:$0xff] }
  0x92   :  { %4896 = vmatprep.subr.mxu0 %v632_v3 }
  0x98   :  { %4817 = vmatmul.mubr.msk.f32.vlgmr.msra.gmra.mxu0 %vm633_vm7, %v609_v5  ;;  %v959_v5 = vld [vmem:[%s7307_s2 + $0x60] sm:$0xff] }
  0x99   :  { %4897 = vmatpush3.msra.mxu0 %v632_v3  ;;  %4819 = vmatprep.mubr.msk.f32.mxu0 %vm633_vm7, %v610_v6  ;;  %v961_v3 = vld [vmem:[%s7307_s2 + $0x70] sm:$0xff]  ;;  %v958_v6 = vld [vmem:[%s7307_s2 + $0x58] sm:$0xff] }
  0x9c   :  { %4820 = vmatmul.mubr.msk.f32.gmra.mxu0 %vm633_vm7, %v611_v7  ;;  %v957_v7 = vld [vmem:[%s7307_s2 + $0x50] sm:$0xff] }
  0x9d   :  { %4822 = vmatprep.mubr.msk.f32.mxu0 %vm633_vm7, %v612_v27  ;;  %v626_v27 = vld [vmem:[%s7310_s5 + $0x90] sm:$0xff] }
  0xa0   :  { %4823 = vmatmul.mubr.msk.f32.gmra.mxu0 %vm633_vm7, %v613_v29  ;;  %v628_v29 = vld [vmem:[%s7310_s5 + $0xa0] sm:$0xff] }
  0xa1   :  { %4825 = vmatprep.mubr.msk.f32.mxu0 %vm633_vm7, %v614_v31  ;;  %v339_v45 = vpop.permute.xlu0 %338  ;;  %v344_v46 = vpop.permute.xlu1 %343  ;;  %v630_v31 = vld [vmem:[%s7310_s5 + $0xb0] sm:$0xff] }
  0xa4   :  { %4826 = vmatmul.mubr.msk.f32.gmra.mxu0 %vm633_vm7, %v615_v33 }
  0xa5   :  { %4828 = vmatprep.mubr.msk.f32.mxu0 %vm633_vm7, %v616_v35  ;;  %v331_v49 = vpop.permute.xlu0 %330  ;;  %v326_v50 = vpop.permute.xlu1 %325 }
  0xa8   :  { %4829 = vmatmul.mubr.msk.f32.gmra.mxu0 %vm633_vm7, %v617_v37 }
  0xa9   :  { %4831 = vmatprep.mubr.msk.f32.mxu0 %vm633_vm7, %v618_v39 }
  0xac   :  { %4832 = vmatmul.mubr.msk.f32.gmra.mxu0 %vm633_vm7, %v619_v40 }
  0xad   :  { %4834 = vmatprep.mubr.msk.f32.mxu0 %vm633_vm7, %v620_v41  ;;  %v145_v41 = vlaneseq }
  0xb0   :  { %4835 = vmatmul.mubr.msk.f32.gmra.mxu0 %vm633_vm7, %v621_v42 }
  0xb1   :  { %4837 = vmatprep.mubr.msk.f32.mxu0 %vm633_vm7, %v622_v43  ;;  %v146_v43 = vand.u32 127, %v145_v41 }
  0xb4   :  { %4838 = vmatmul.mubr.msk.f32.gmra.mxu0 %vm633_vm7, %v623_v44 }
 0x150   :  { %v310_v8 = vpop.f32.mrf.mxu0 }
 0x152   :  { %v312_v9 = vpop.f32.mrf.mxu0 }
 0x153   :  { %v319_v13 = vsub.f32 0.0, %v312_v9 }
 0x154   :  { %v314_v10 = vpop.f32.mrf.mxu0 }
 0x155   :  { %378 = vmatprep.subr.mxu1 %v314_v10 }
 0x156   :  { %v316_v11 = vpop.f32.mrf.mxu0 }
 0x157   :  { %v320_v12 = vsub.f32 0.0, %v316_v11 }
 0x158   :  { %v5949_v33 = vpop.f32.mrf.mxu0 }
 0x159   :  { %379 = vmatpush1.msra.mxu1 %v320_v12 }
 0x15a   :  { %380 = vmatprep.subr.mxu1 %v310_v8 }
 0x15b   :  { %381 = vmatpush1.msra.mxu1 %v319_v13  ;;  %v953_v13 = vld [vmem:[%s7307_s2 + $0x30] sm:$0xff] }
 0x15c   :  { %382 = vmatprep.subr.mxu1 %v316_v11 }
 0x15d   :  { %383 = vmatpush1.msra.mxu1 %v314_v10  ;;  %v954_v10 = vld [vmem:[%s7307_s2 + $0x38] sm:$0xff] }
 0x15e   :  { %384 = vmatprep.subr.mxu1 %v312_v9  ;;  %v955_v9 = vld [vmem:[%s7307_s2 + $0x40] sm:$0xff] }
 0x15f   :  { %385 = vmatpush1.msra.mxu1 %v310_v8  ;;  %v956_v8 = vld [vmem:[%s7307_s2 + $0x48] sm:$0xff] }
 0x160   :  { %4318 = vmatmul.mubr.msk.f32.vlgmr.msra.gmra.mxu1 %vm127_vm1, %v346_v15  ;;  %4574 = vmatprep.subr.bf16.mxu1 %v5208_v14 }
 0x161   :  { %424 = vmatprep.mubr.f32.mxu1 %v5495_v62  ;;  %4575 = vmatpush3.bf16.msra.mxu1 %v5209_v17  ;;  %v952_v17 = vld [vmem:[%s7307_s2 + $0x28] sm:$0xff] }
 0x162   :  { %4576 = vmatprep.subr.bf16.mxu1 %v5210_v18 }
 0x164   :  { %4319 = vmatmul.mubr.msk.f32.gmra.mxu1 %vm127_vm1, %v347_v19 }
 0x165   :  { %4577 = vmatpush3.bf16.msra.mxu1 %v5211_v20  ;;  %v951_v20 = vld [vmem:[%s7307_s2 + $0x20] sm:$0xff] }
 0x166   :  { %4578 = vmatprep.subr.bf16.mxu1 %v5212_v21 }
 0x169   :  { %4579 = vmatpush3.bf16.msra.mxu1 %v5213_v22  ;;  %v950_v22 = vld [vmem:[%s7307_s2 + $0x18] sm:$0xff] }
 0x16a   :  { %4580 = vmatprep.subr.bf16.mxu1 %v5214_v23  ;;  %v949_v23 = vld [vmem:[%s7307_s2 + $0x10] sm:$0xff] }
 0x16d   :  { %4581 = vmatpush3.bf16.msra.mxu1 %v5215_v24  ;;  %v948_v24 = vld [vmem:[%s7307_s2 + $0x8] sm:$0xff] }
 0x16e   :  { %4582 = vmatprep.subr.bf16.mxu1 %v5216_v25  ;;  %v624_v25 = vld [vmem:[%s7310_s5 + $0x80] sm:$0xff] }
 0x16f   :  { %4840 = vmatprep.mubr.msk.f32.mxu0 %vm633_vm7, %v624_v25 }
 0x171   :  { %4583 = vmatpush3.bf16.msra.mxu1 %v5217_v26  ;;  %v625_v26 = vld [vmem:[%s7310_s5 + $0x88] sm:$0xff] }
 0x172   :  { %4584 = vmatprep.subr.bf16.mxu1 %v5218_v28  ;;  %4841 = vmatmul.mubr.msk.f32.gmra.mxu0 %vm633_vm7, %v625_v26  ;;  %v627_v28 = vld [vmem:[%s7310_s5 + $0x98] sm:$0xff] }
 0x173   :  { %4843 = vmatprep.mubr.msk.f32.mxu0 %vm633_vm7, %v626_v27 }
 0x175   :  { %4585 = vmatpush3.bf16.msra.mxu1 %v5219_v30  ;;  %v629_v30 = vld [vmem:[%s7310_s5 + $0xa8] sm:$0xff] }
 0x176   :  { %4586 = vmatprep.subr.bf16.mxu1 %v5220_v32  ;;  %4844 = vmatmul.mubr.msk.f32.gmra.mxu0 %vm633_vm7, %v627_v28  ;;  %v631_v32 = vld [vmem:[%s7310_s5 + $0xb8] sm:$0xff] }
 0x177   :  { %4846 = vmatprep.mubr.msk.f32.mxu0 %vm633_vm7, %v628_v29 }
 0x179   :  { %4587 = vmatpush3.bf16.msra.mxu1 %v5221_v34  ;;  %v772_v34 = vpop.f32.mrf.mxu0 }
 0x17a   :  { %4588 = vmatprep.subr.bf16.mxu1 %v5222_v36  ;;  %4847 = vmatmul.mubr.msk.f32.gmra.mxu0 %vm633_vm7, %v629_v30 }
 0x17b   :  { %4849 = vmatprep.mubr.msk.f32.mxu0 %vm633_vm7, %v630_v31  ;;  %v4821_v35 = vpop.f32.mrf.mxu0 }
 0x17d   :  { %4589 = vmatpush3.bf16.msra.mxu1 %v5223_v38  ;;  %v782_v36 = vpop.f32.mrf.mxu0 }
 0x17e   :  { %4852 = vmatprep.subr.mxu1 %v962_v2  ;;  %4850 = vmatmul.mubr.msk.f32.gmra.mxu0 %vm633_vm7, %v631_v32 }
 0x17f   :  { %v4824_v37 = vpop.f32.mrf.mxu0 }
 0x181   :  { %v792_v38 = vpop.f32.mrf.mxu0 }
 0x183   :  { %v4827_v39 = vpop.f32.mrf.mxu0 }
 0x185   :  { %v802_v40 = vpop.f32.mrf.mxu0 }
 0x187   :  { %v4830_v42 = vpop.f32.mrf.mxu0 }
 0x189   :  { %v812_v44 = vpop.f32.mrf.mxu0 }
 0x220   :  { %v420_v47 = vpop.f32.mrf.mxu1 }
 0x221   :  { %v421_v54 = vadd.f32 %v420_v47, %v326_v50 }
 0x222   :  { %v422_v48 = vpop.f32.mrf.mxu1 }
 0x223   :  { %v423_v52 = vadd.f32 %v422_v48, %v339_v45  ;;  %v431_v63 = vmax.f32 %v421_v54, 0.0  ;;  %v151_v45 = vand.u32 15, %v146_v43 }
 0x224   :  { %v426_v51 = vpop.f32.mrf.mxu1 }
 0x225   :  { %v427_v53 = vadd.f32 %v426_v51, %v331_v49  ;;  %v432_v58 = vmax.f32 %v423_v52, 0.0  ;;  %vm160_vm8 = vcmp.lt.s32.totalorder %v151_v45, 14  ;;  %vm165_vm9 = vcmp.lt.s32.totalorder %v151_v45, 15 }
 0x226   :  { %v428_v55 = vpop.f32.mrf.mxu1  ;;  %v5952_v48 = vsel %vm160_vm8, 1.0, %v5495_v62  ;;  %v5955_v50 = vsel %vm165_vm9, 1.0, %v5495_v62  ;;  %vm169_vm10 = vcmp.ge.s32.totalorder %v151_v45, 1  ;;  %vm174_vm11 = vcmp.ge.s32.totalorder %v151_v45, 2 }
 0x227   :  { %v429_v56 = vadd.f32 %v428_v55, %v344_v46  ;;  %v433_v57 = vmax.f32 %v427_v53, 0.0  ;;  %v4833_v46 = vpop.f32.mrf.mxu0 }
 0x229   :  { %v434_v61 = vmax.f32 %v429_v56, 0.0  ;;  %v435_v1 = vpack.c.bf16 %v433_v57, %v431_v63  ;;  %v822_v47 = vpop.f32.mrf.mxu0 }
 0x22b   :  { %v436_v0 = vpack.c.bf16 %v434_v61, %v432_v58  ;;  %v4836_v51 = vpop.f32.mrf.mxu0  ;;  %v5961_v61 = vsel %vm169_vm10, 1.0, %v5495_v62 }
 0x22d   :  { %597 = vmatprep.mubr.bf16.mxu1 %v436_v0  ;;  %v832_v56 = vpop.f32.mrf.mxu0 }
 0x22e   :  { %598 = vmatmul.mubr.bf16.vlgmr.msra.gmra.mxu1 %v435_v1 }
 0x22f   :  { %4853 = vmatpush3.msra.mxu1 %v962_v2  ;;  %v4839_v2 = vpop.f32.mrf.mxu0 }
 0x230   :  { %4854 = vmatprep.subr.mxu1 %v961_v3 }
 0x231   :  { %4855 = vmatpush3.msra.mxu1 %v961_v3 }
 0x232   :  { %4856 = vmatprep.subr.mxu1 %v960_v4 }
 0x233   :  { %4857 = vmatpush3.msra.mxu1 %v960_v4 }
 0x234   :  { %4858 = vmatprep.subr.mxu1 %v959_v5 }
 0x235   :  { %4859 = vmatpush3.msra.mxu1 %v959_v5 }
 0x236   :  { %4860 = vmatprep.subr.mxu1 %v958_v6 }
 0x237   :  { %4861 = vmatpush3.msra.mxu1 %v958_v6  ;;  %v5967_v6 = vsel %vm174_vm11, 1.0, %v5495_v62 }
 0x238   :  { %4862 = vmatprep.subr.mxu1 %v957_v7 }
 0x239   :  { %4863 = vmatpush3.msra.mxu1 %v957_v7 }
 0x23a   :  { %4864 = vmatprep.subr.mxu1 %v956_v8 }
 0x23b   :  { %4865 = vmatpush3.msra.mxu1 %v956_v8 }
 0x23c   :  { %4866 = vmatprep.subr.mxu1 %v955_v9 }
 0x23d   :  { %4867 = vmatpush3.msra.mxu1 %v955_v9 }
 0x23e   :  { %4868 = vmatprep.subr.mxu1 %v954_v10 }
 0x23f   :  { %4869 = vmatpush3.msra.mxu1 %v954_v10 }
 0x240   :  { %4870 = vmatprep.subr.mxu1 %v953_v13 }
 0x241   :  { %4871 = vmatpush3.msra.mxu1 %v953_v13 }
 0x242   :  { %4872 = vmatprep.subr.mxu1 %v952_v17 }
 0x243   :  { %4873 = vmatpush3.msra.mxu1 %v952_v17 }
 0x244   :  { %4874 = vmatprep.subr.mxu1 %v951_v20 }
 0x245   :  { %4875 = vmatpush3.msra.mxu1 %v951_v20 }
 0x246   :  { %4876 = vmatprep.subr.mxu1 %v950_v22 }
 0x247   :  { %4877 = vmatpush3.msra.mxu1 %v950_v22 }
 0x248   :  { %4878 = vmatprep.subr.mxu1 %v949_v23 }
 0x249   :  { %4879 = vmatpush3.msra.mxu1 %v949_v23 }
 0x24a   :  { %4880 = vmatprep.subr.mxu1 %v948_v24 }
 0x24b   :  { %4881 = vmatpush3.msra.mxu1 %v948_v24 }
 0x2ee   :  { %v4590_v11 = vpop.f32.mrf.mxu1 }
 0x2f0   :  { %v4591_v12 = vpop.f32.mrf.mxu1 }
 0x2f1   :  { %v4592_v14 = vadd.f32 %v4591_v12, %v4590_v11 }
 0x2f2   :  { %v4593_v15 = vpop.f32.mrf.mxu1 }
 0x2f3   :  { %v5881_v18 = vadd.f32 %v4592_v14, %v5704_v59  ;;  %v842_v14 = vpop.f32.mrf.mxu0 }
 0x2f4   :  { %v4594_v19 = vpop.f32.mrf.mxu1 }
 0x2f5   :  { %v4595_v21 = vadd.f32 %v4594_v19, %v4593_v15  ;;  %895 = vrot.lane.b32.xlu1 %v5881_v18, %s5496_s27  ;;  %v891_v1 = vmul.f32 %v792_v38, %v5881_v18  ;;  %v893_v28 = vmul.f32 %v832_v56, %v5881_v18 }
 0x2f7   :  { %v5892_v59 = vadd.f32 %v4595_v21, %v5706_v60  ;;  %v947_v60 = vld [vmem:[%s7307_s2] sm:$0xff] }
 0x2f8   :  { %4882 = vmatprep.subr.mxu1 %v947_v60 }
 0x2f9   :  { %897 = vrot.lane.b32.xlu0 %v5892_v59, %s5496_s27  ;;  %905 = vrot.lane.b32.xlu1 %v5881_v18, %s5497_s17  ;;  %v892_v9 = vmul.f32 %v4824_v37, %v5892_v59 }
 0x2fa   :  { %4883 = vmatpush3.msra.mxu1 %v947_v60 }
 0x2fd   :  { %907 = vrot.lane.b32.xlu0 %v5892_v59, %s5497_s17  ;;  %919 = vrot.lane.b32.xlu1 %v5881_v18, %s5498_s28 }
 0x301   :  { %921 = vrot.lane.b32.xlu0 %v5892_v59, %s5498_s28  ;;  %933 = vrot.lane.b32.xlu1 %v5881_v18, %s7329_s29 }
 0x305   :  { %935 = vrot.lane.b32.xlu0 %v5892_v59, %s7329_s29  ;;  %s7335_s29 = smov 16  }
 0x367   :  { %v896_v49 = vpop.permute.xlu1 %895 }
 0x368   :  { %v899_v52 = vmul.f32 %v5952_v48, %v896_v49 }
 0x36a   :  { %v901_v57 = vmul.f32 %v899_v52, %v812_v44 }
 0x36b   :  { %v898_v53 = vpop.permute.xlu0 %897  ;;  %v906_v54 = vpop.permute.xlu1 %905 }
 0x36c   :  { %v909_v55 = vmul.f32 %v5955_v50, %v906_v54  ;;  %v900_v58 = vmul.f32 %v5952_v48, %v898_v53  ;;  %v903_v7 = vadd.f32 %v901_v57, %v891_v1  ;;  %v4842_v54 = vpop.f32.mrf.mxu0 }
 0x36e   :  { %v911_v3 = vmul.f32 %v909_v55, %v802_v40  ;;  %v902_v8 = vmul.f32 %v4830_v42, %v900_v58  ;;  %v915_v24 = vmul.f32 %v909_v55, %v842_v14  ;;  %v852_v55 = vpop.f32.mrf.mxu0 }
 0x36f   :  { %v908_v63 = vpop.permute.xlu0 %907  ;;  %v920_v0 = vpop.permute.xlu1 %919 }
 0x370   :  { %v910_v4 = vmul.f32 %v5955_v50, %v908_v63  ;;  %v923_v5 = vmul.f32 %v5961_v61, %v920_v0  ;;  %v913_v13 = vadd.f32 %v911_v3, %v903_v7  ;;  %v904_v20 = vadd.f32 %v902_v8, %v892_v9  ;;  %v4845_v56 = vpop.f32.mrf.mxu0 }
 0x372   :  { %v925_v10 = vmul.f32 %v923_v5, %v782_v36  ;;  %v912_v15 = vmul.f32 %v4827_v39, %v910_v4  ;;  %v929_v29 = vmul.f32 %v923_v5, %v822_v47  ;;  %v916_v30 = vmul.f32 %v4839_v2, %v910_v4  ;;  %v862_v57 = vpop.f32.mrf.mxu0 }
 0x373   :  { %v922_v11 = vpop.permute.xlu0 %921  ;;  %v934_v12 = vpop.permute.xlu1 %933  ;;  %v917_v36 = vadd.f32 %v915_v24, %v893_v28 }
 0x374   :  { %v924_v17 = vmul.f32 %v5961_v61, %v922_v11  ;;  %v937_v19 = vmul.f32 %v5967_v6, %v934_v12  ;;  %v927_v21 = vadd.f32 %v925_v10, %v913_v13  ;;  %v914_v25 = vadd.f32 %v912_v15, %v904_v20  ;;  %v4848_v58 = vpop.f32.mrf.mxu0 }
 0x375   :  { %v5981_v38 = vadd.f32 %v929_v29, %v917_v36 }
 0x376   :  { %v926_v22 = vmul.f32 %v4821_v35, %v924_v17  ;;  %v939_v23 = vmul.f32 %v937_v19, %v772_v34  ;;  %v894_v35 = vmul.f32 %v4836_v51, %v5892_v59  ;;  %v930_v34 = vmul.f32 %v4833_v46, %v924_v17  ;;  %v872_v63 = vpop.f32.mrf.mxu0 }
 0x377   :  { %v936_v60 = vpop.permute.xlu0 %935  ;;  %v945_v42 = vmul.f32 %v5981_v38, %v5981_v38 }
 0x378   :  { %v938_v26 = vmul.f32 %v5967_v6, %v936_v60  ;;  %v5973_v27 = vadd.f32 %v939_v23, %v927_v21  ;;  %v928_v31 = vadd.f32 %v926_v22, %v914_v25  ;;  %v918_v39 = vadd.f32 %v916_v30, %v894_v35  ;;  %v4851_v0 = vpop.f32.mrf.mxu0 }
 0x37a   :  { %v940_v32 = vmul.f32 %v5949_v33, %v938_v26  ;;  %4884 = vmatprep.mubr.f32.mxu1 %v5973_v27  ;;  %v5985_v40 = vadd.f32 %v930_v34, %v918_v39  ;;  %v943_v33 = vmul.f32 %v5973_v27, %v5973_v27  ;;  %v882_v1 = vpop.f32.mrf.mxu0 }
 0x37c   :  { %v5979_v37 = vadd.f32 %v940_v32, %v928_v31  ;;  %v946_v43 = vmul.f32 %v5985_v40, %v5985_v40 }
 0x37e   :  { %4885 = vmatmul.mubr.f32.vlgmr.msra.gmra.mxu1 %v5979_v37  ;;  %v944_v41 = vmul.f32 %v5979_v37, %v5979_v37 }
 0x37f   :  { %4887 = vmatprep.mubr.f32.mxu1 %v5981_v38 }
 0x382   :  { %4888 = vmatmul.mubr.f32.gmra.mxu1 %v5985_v40 }
 0x383   :  { %4890 = vmatprep.mubr.f32.mxu1 %v943_v33 }
 0x386   :  { %4891 = vmatmul.mubr.f32.gmra.mxu1 %v944_v41 }
 0x387   :  { %4893 = vmatprep.mubr.f32.mxu1 %v945_v42 }
 0x38a   :  { %4894 = vmatmul.mubr.f32.gmra.mxu1 %v946_v43 }
 0x43e   :  { %v4886_v44 = vpop.f32.mrf.mxu1 }
 0x440   :  { %v1029_v45 = vpop.f32.mrf.mxu1 }
 0x441   :  { %4898 = vmatprep.mubr.msk.f32.mxu0 %vm633_vm7, %v1029_v45 }
 0x442   :  { %v4889_v46 = vpop.f32.mrf.mxu1  ;;  %4899 = vmatmul.mubr.msk.f32.vlgmr.msra.gmra.mxu0 %vm633_vm7, %v4886_v44 }
 0x444   :  { %v1039_v47 = vpop.f32.mrf.mxu1 }
 0x445   :  { %4901 = vmatprep.mubr.msk.f32.mxu0 %vm633_vm7, %v1039_v47 }
 0x446   :  { %v4892_v49 = vpop.f32.mrf.mxu1  ;;  %4902 = vmatmul.mubr.msk.f32.gmra.mxu0 %vm633_vm7, %v4889_v46 }
 0x448   :  { %v1049_v51 = vpop.f32.mrf.mxu1 }
 0x449   :  { %4904 = vmatprep.mubr.msk.f32.mxu0 %vm633_vm7, %v1049_v51 }
 0x44a   :  { %v4895_v52 = vpop.f32.mrf.mxu1  ;;  %4905 = vmatmul.mubr.msk.f32.gmra.mxu0 %vm633_vm7, %v4892_v49 }
 0x44c   :  { %v1059_v53 = vpop.f32.mrf.mxu1 }
 0x44d   :  { %4907 = vmatprep.mubr.msk.f32.mxu0 %vm633_vm7, %v1059_v53 }
 0x44e   :  { %4908 = vmatmul.mubr.msk.f32.gmra.mxu0 %vm633_vm7, %v4895_v52 }
 0x502   :  { %v4900_v2 = vpop.f32.mrf.mxu0 }
 0x503   :  { %v1198_v5 = vmul.f32 0.03125, %v4900_v2 }
 0x504   :  { %v1158_v3 = vpop.f32.mrf.mxu0 }
 0x505   :  { %v1197_v8 = vmul.f32 0.03125, %v1158_v3  ;;  %v1206_v10 = vmul.f32 %v1198_v5, %v1198_v5  ;;  %v1214_v39 = vsub.f32 %v5979_v37, %v1198_v5 }
 0x506   :  { %v4903_v4 = vpop.f32.mrf.mxu0 }
 0x507   :  { %v1200_v11 = vmul.f32 0.03125, %v4903_v4  ;;  %v1205_v15 = vmul.f32 %v1197_v8, %v1197_v8  ;;  %v1213_v42 = vsub.f32 %v5973_v27, %v1197_v8 }
 0x508   :  { %v1168_v7 = vpop.f32.mrf.mxu0 }
 0x509   :  { %v1199_v13 = vmul.f32 0.03125, %v1168_v7  ;;  %v1208_v21 = vmul.f32 %v1200_v11, %v1200_v11  ;;  %v1216_v43 = vsub.f32 %v5985_v40, %v1200_v11 }
 0x50a   :  { %v4906_v9 = vpop.f32.mrf.mxu0 }
 0x50b   :  { %v1202_v12 = vmul.f32 0.03125, %v4906_v9  ;;  %v1207_v60 = vmul.f32 %v1199_v13, %v1199_v13  ;;  %v1215_v47 = vsub.f32 %v5981_v38, %v1199_v13  ;;  %v1255_v13 = vld [vmem:[%s7311_s6] sm:$0xff] }
 0x50c   :  { %v1178_v14 = vpop.f32.mrf.mxu0 }
 0x50d   :  { %v1210_v17 = vsub.f32 %v1202_v12, %v1206_v10  ;;  %v1201_v19 = vmul.f32 0.03125, %v1178_v14 }
 0x50e   :  { %v4909_v20 = vpop.f32.mrf.mxu0 }
 0x50f   :  { %v1218_v22 = vadd.f32 1e-05, %v1210_v17  ;;  %v1209_v23 = vsub.f32 %v1201_v19, %v1205_v15  ;;  %v1204_v24 = vmul.f32 0.03125, %v4909_v20  ;;  %v4368_v19 = vld [vmem:[%s7311_s6 + $0x10] sm:$0xff]  ;;  %v4369_v20 = vld [vmem:[%s7311_s6 + $0x18] sm:$0xff] }
 0x510   :  { %v1188_v25 = vpop.f32.mrf.mxu0 }
 0x511   :  { %5264 = vrsqrt.f32 %v1218_v22  ;;  %v1217_v26 = vadd.f32 1e-05, %v1209_v23  ;;  %v1212_v28 = vsub.f32 %v1204_v24, %v1208_v21  ;;  %v1203_v29 = vmul.f32 0.03125, %v1188_v25 }
 0x513   :  { %5266 = vrsqrt.f32 %v1217_v26  ;;  %v1220_v30 = vadd.f32 1e-05, %v1212_v28  ;;  %v1211_v31 = vsub.f32 %v1203_v29, %v1207_v60 }
 0x515   :  { %5268 = vrsqrt.f32 %v1220_v30  ;;  %v1219_v32 = vadd.f32 1e-05, %v1211_v31  ;;  %v5224_v30 = vld [vmem:[%s7314_s9] sm:$0xff]   ;;  %v1331_v31 = vld [vmem:[%s7315_s10 + $0x70] sm:$0xff] }
 0x516   :  { %4918 = vmatprep.mubr.msk.bf16.mxu1 %vm133_vm3, %v5224_v30 }
 0x517   :  { %5270 = vrsqrt.f32 %v1219_v32  ;;  %v1329_v32 = vld [vmem:[%s7315_s10 + $0x60] sm:$0xff] }
 0x51e   :  { %v5265_v36 = vpop.eup %5264 }
 0x51f   :  { %v1226_v35 = vmul.f32 %v5265_v36, %v4842_v54  ;;  %v1332_v36 = vld [vmem:[%s7315_s10 + $0x78] sm:$0xff] }
 0x520   :  { %v5267_v34 = vpop.eup %5266 }
 0x521   :  { %v1225_v33 = vmul.f32 %v5267_v34, %v852_v55  ;;  %v1230_v45 = vmul.f32 %v1226_v35, %v1214_v39  ;;  %v1327_v35 = vld [vmem:[%s7315_s10 + $0x50] sm:$0xff]  ;;  %v1330_v34 = vld [vmem:[%s7315_s10 + $0x68] sm:$0xff]  ;;  %v1325_v39 = vld [vmem:[%s7315_s10 + $0x40] sm:$0xff] }
 0x522   :  { %v5269_v41 = vpop.eup %5268 }
 0x523   :  { %v1228_v44 = vmul.f32 %v5269_v41, %v4845_v56  ;;  %v1229_v52 = vmul.f32 %v1225_v33, %v1213_v42  ;;  %v1234_v53 = vadd.f32 %v4848_v58, %v1230_v45  ;;  %v1328_v33 = vld [vmem:[%s7315_s10 + $0x58] sm:$0xff]  ;;  %v1323_v41 = vld [vmem:[%s7315_s10 + $0x30] sm:$0xff]  ;;  %v1326_v42 = vld [vmem:[%s7315_s10 + $0x48] sm:$0xff] }
 0x524   :  { %v5271_v46 = vpop.eup %5270  ;;  %v1319_v45 = vld [vmem:[%s7315_s10 + $0x10] sm:$0xff] }
 0x525   :  { %v1232_v49 = vmul.f32 %v1228_v44, %v1216_v43  ;;  %v1227_v51 = vmul.f32 %v5271_v46, %v862_v57  ;;  %v1233_v4 = vadd.f32 %v1229_v52, %v872_v63  ;;  %v1321_v43 = vld [vmem:[%s7315_s10 + $0x20] sm:$0xff]  ;;  %v1324_v44 = vld [vmem:[%s7315_s10 + $0x38] sm:$0xff]  ;;  %v1322_v46 = vld [vmem:[%s7315_s10 + $0x28] sm:$0xff] }
 0x526   :  { %v1318_v52 = vld [vmem:[%s7315_s10 + $0x8] sm:$0xff] }
 0x527   :  { %v1236_v2 = vadd.f32 %v4851_v0, %v1232_v49  ;;  %v1231_v54 = vmul.f32 %v1227_v51, %v1215_v47  ;;  %v1317_v47 = vld [vmem:[%s7315_s10] sm:$0xff]  ;;  %v1320_v49 = vld [vmem:[%s7315_s10 + $0x18] sm:$0xff]  ;;  %v1756_v51 = vld [vmem:[%s7317_s12 + $0x70] sm:$0xff] }
 0x529   :  { %v1238_v3 = vadd.f32 %v1236_v2, %v1234_v53  ;;  %v1235_v37 = vadd.f32 %v1231_v54, %v882_v1  ;;  %v1256_v1 = vld [vmem:[%s7311_s6 + $0x8] sm:$0xff]  ;;  %v1754_v53 = vld [vmem:[%s7317_s12 + $0x60] sm:$0xff]  ;;  %v1757_v2 = vld [vmem:[%s7317_s12 + $0x78] sm:$0xff] }
 0x52a   :  { %v1752_v54 = vld [vmem:[%s7317_s12 + $0x50] sm:$0xff] }
 0x52b   :  { %1241 = vadd.xlane.f32.xlu0 %v1238_v3  ;;  %v1237_v55 = vadd.f32 %v1235_v37, %v1233_v4  ;;  %v1750_v4 = vld [vmem:[%s7317_s12 + $0x40] sm:$0xff]  ;;  %v1753_v37 = vld [vmem:[%s7317_s12 + $0x58] sm:$0xff] }
 0x52d   :  { %1239 = vadd.xlane.f32.xlu1 %v1237_v55 }
 0x5b4   :  { %v1242_v27 = vpop.xlane.xlu0 %1241 }
 0x5b5   :  { %v1244_v5 = vmul.f32 0.0078125, %v1242_v27  ;;  %v1751_v27 = vld [vmem:[%s7317_s12 + $0x48] sm:$0xff] }
 0x5b6   :  { %v1240_v40 = vpop.xlane.xlu1 %1239 }
 0x5b7   :  { %v1243_v56 = vmul.f32 0.0078125, %v1240_v40  ;;  %v1246_v7 = vsub.f32 %v1238_v3, %v1244_v5  ;;  %v1755_v3 = vld [vmem:[%s7317_s12 + $0x68] sm:$0xff]  ;;  %v1746_v5 = vld [vmem:[%s7317_s12 + $0x20] sm:$0xff]  ;;  %v1749_v40 = vld [vmem:[%s7317_s12 + $0x38] sm:$0xff] }
 0x5b9   :  { %v1248_v8 = vmul.f32 %v1246_v7, %v1246_v7  ;;  %v1245_v9 = vsub.f32 %v1237_v55, %v1243_v56  ;;  %v1748_v55 = vld [vmem:[%s7317_s12 + $0x30] sm:$0xff] }
 0x5ba   :  { %v1744_v56 = vld [vmem:[%s7317_s12 + $0x10] sm:$0xff] }
 0x5bb   :  { %1251 = vadd.xlane.f32.xlu1 %v1248_v8  ;;  %v1247_v38 = vmul.f32 %v1245_v9, %v1245_v9  ;;  %v1742_v8 = vld [vmem:[%s7317_s12] sm:$0xff] }
 0x5bd   :  { %1249 = vadd.xlane.f32.xlu0 %v1247_v38  ;;  %v2145_v38 = vld [vmem:[%s7319_s14 + $0x10] sm:$0xff] }
 0x644   :  { %v1252_v57 = vpop.xlane.xlu1 %1251 }
 0x645   :  { %v1254_v58 = vmul.f32 0.0078125, %v1252_v57  ;;  %v1743_v57 = vld [vmem:[%s7317_s12 + $0x8] sm:$0xff] }
 0x646   :  { %v1250_v0 = vpop.xlane.xlu0 %1249 }
 0x647   :  { %v1258_v10 = vadd.f32 1e-05, %v1254_v58  ;;  %v1253_v11 = vmul.f32 0.0078125, %v1250_v0  ;;  %v2147_v58 = vld [vmem:[%s7319_s14 + $0x20] sm:$0xff]  ;;  %v2146_v0 = vld [vmem:[%s7319_s14 + $0x18] sm:$0xff] }
 0x649   :  { %5272 = vrsqrt.f32 %v1258_v10  ;;  %v1257_v63 = vadd.f32 1e-05, %v1253_v11  ;;  %v2149_v10 = vld [vmem:[%s7319_s14 + $0x30] sm:$0xff]  ;;  %v2148_v11 = vld [vmem:[%s7319_s14 + $0x28] sm:$0xff] }
 0x64b   :  { %5274 = vrsqrt.f32 %v1257_v63  ;;  %v2143_v63 = vld [vmem:[%s7319_s14] sm:$0xff] }
 0x656   :  { %v5273_v12 = vpop.eup %5272 }
 0x657   :  { %v1262_v14 = vmul.f32 %v5273_v12, %v1256_v1  ;;  %v2150_v1 = vld [vmem:[%s7319_s14 + $0x38] sm:$0xff]  ;;  %v2144_v12 = vld [vmem:[%s7319_s14 + $0x8] sm:$0xff] }
 0x658   :  { %v5275_v15 = vpop.eup %5274 }
 0x659   :  { %1270 = vperm.xlu1 %5183, %v1262_v14   ;;  %v1261_v17 = vmul.f32 %v5275_v15, %v1255_v13 }
 0x65b   :  { %1265 = vperm.xlu0 %5182, %v1261_v17   ;;  %v5225_v17 = vld [vmem:[%s7314_s9 + $0x8] sm:$0xff]  }
 0x65d   :  { %1280 = vperm.xlu1 %5183, %v4368_v19   ;;  %v5226_v19 = vld [vmem:[%s7314_s9 + $0x10] sm:$0xff]  }
 0x65f   :  { %1285 = vperm.xlu0 %5182, %v4369_v20   ;;  %v5227_v20 = vld [vmem:[%s7314_s9 + $0x18] sm:$0xff]  }
 0x6d4   :  { %v1271_v21 = vpop.permute.xlu1 %1270 }
 0x6d5   :  { %v1274_v60 = vmul.f32 %v1271_v21, %v1246_v7  ;;  %v1747_v7 = vld [vmem:[%s7317_s12 + $0x28] sm:$0xff]  ;;  %v5228_v21 = vld [vmem:[%s7314_s9 + $0x20] sm:$0xff]  }
 0x6d6   :  { %v1266_v22 = vpop.permute.xlu0 %1265 }
 0x6d7   :  { %v1273_v23 = vmul.f32 %v1266_v22, %v1245_v9  ;;  %v1745_v9 = vld [vmem:[%s7317_s12 + $0x18] sm:$0xff]  ;;  %v5229_v22 = vld [vmem:[%s7314_s9 + $0x28] sm:$0xff]  }
 0x6d8   :  { %v1281_v24 = vpop.permute.xlu1 %1280 }
 0x6d9   :  { %v1288_v26 = vadd.f32 %v1281_v24, %v1273_v23  ;;  %v5230_v23 = vld [vmem:[%s7314_s9 + $0x30] sm:$0xff]   ;;  %v5231_v24 = vld [vmem:[%s7314_s9 + $0x38] sm:$0xff]  }
 0x6da   :  { %v1286_v25 = vpop.permute.xlu0 %1285 }
 0x6db   :  { %v1289_v28 = vadd.f32 %v1286_v25, %v1274_v60  ;;  %v5232_v60 = vld [vmem:[%s7316_s11] sm:$0xff]  }
 0x6dc   :  { %4950 = vmatprep.mubr.bf16.mxu0 %v5232_v60 }
 0x6dd   :  { %v6020_v29 = vpack.c.bf16 %v1289_v28, %v1288_v26 }
 0x6df   :  { %1295 = vrot.lane.b32.xlu0 %v6020_v29, %s5490_s21  ;;  %1298 = vrot.lane.b32.xlu1 %v6020_v29, %s5488_s23 }
 0x6e3   :  { %1405 = vperm.xlu0 %5182, %v1331_v31   ;;  %1292 = vrot.lane.b32.xlu1 %v6020_v29, %s5493_s20 }
 0x6e7   :  { %1395 = vperm.xlu0 %5182, %v1329_v32   ;;  %1410 = vperm.xlu1 %5183, %v1332_v36  }
 0x6eb   :  { %1385 = vperm.xlu0 %5182, %v1327_v35   ;;  %1400 = vperm.xlu1 %5183, %v1330_v34  }
 0x6ef   :  { %1375 = vperm.xlu0 %5182, %v1325_v39   ;;  %1390 = vperm.xlu1 %5183, %v1328_v33  }
 0x6f3   :  { %1365 = vperm.xlu0 %5182, %v1323_v41   ;;  %1380 = vperm.xlu1 %5183, %v1326_v42  }
 0x6f7   :  { %1355 = vperm.xlu0 %5182, %v1321_v43   ;;  %1370 = vperm.xlu1 %5183, %v1324_v44  }
 0x6fb   :  { %1345 = vperm.xlu0 %5182, %v1319_v45   ;;  %1360 = vperm.xlu1 %5183, %v1322_v46  }
 0x6ff   :  { %1335 = vperm.xlu0 %5182, %v1317_v47   ;;  %1350 = vperm.xlu1 %5183, %v1320_v49  }
 0x703   :  { %1830 = vperm.xlu0 %5182, %v1756_v51   ;;  %1340 = vperm.xlu1 %5183, %v1318_v52  }
 0x707   :  { %1820 = vperm.xlu0 %5182, %v1754_v53   ;;  %1835 = vperm.xlu1 %5183, %v1757_v2  }
 0x70b   :  { %1810 = vperm.xlu0 %5182, %v1752_v54   ;;  %1825 = vperm.xlu1 %5183, %v1755_v3  }
 0x70f   :  { %1800 = vperm.xlu0 %5182, %v1750_v4   ;;  %1815 = vperm.xlu1 %5183, %v1753_v37  }
 0x713   :  { %1790 = vperm.xlu0 %5182, %v1748_v55   ;;  %1805 = vperm.xlu1 %5183, %v1751_v27  }
 0x717   :  { %1780 = vperm.xlu0 %5182, %v1746_v5   ;;  %1795 = vperm.xlu1 %5183, %v1749_v40  }
 0x71b   :  { %1770 = vperm.xlu0 %5182, %v1744_v56   ;;  %1785 = vperm.xlu1 %5183, %v1747_v7  }
 0x71f   :  { %1760 = vperm.xlu0 %5182, %v1742_v8   ;;  %1775 = vperm.xlu1 %5183, %v1745_v9  }
 0x723   :  { %2163 = vperm.xlu0 %5182, %v2145_v38   ;;  %1765 = vperm.xlu1 %5183, %v1743_v57  }
 0x727   :  { %2173 = vperm.xlu0 %5182, %v2147_v58   ;;  %2168 = vperm.xlu1 %5183, %v2146_v0  }
 0x72b   :  { %2183 = vperm.xlu0 %5182, %v2149_v10   ;;  %2178 = vperm.xlu1 %5183, %v2148_v11  }
 0x72f   :  { %2153 = vperm.xlu0 %5182, %v2143_v63   ;;  %2188 = vperm.xlu1 %5183, %v2150_v1  }
 0x733   :  { %2158 = vperm.xlu1 %5183, %v2144_v12  }
 0x751   :  { %v1299_v13 = vpop.permute.xlu1 %1298  ;;  %v1296_v14 = vpop.permute.xlu0 %1295 }
 0x752   :  { %4910 = vmatprep.subr.bf16.mxu1 %v1299_v13 }
 0x753   :  { %4911 = vmatpush3.bf16.msra.mxu1 %v1299_v13 }
 0x754   :  { %4912 = vmatprep.subr.bf16.mxu1 %v1296_v14 }
 0x755   :  { %v1293_v15 = vpop.permute.xlu1 %1292 }
 0x757   :  { %4913 = vmatpush3.bf16.msra.mxu1 %v1296_v14 }
 0x758   :  { %4914 = vmatprep.subr.bf16.mxu1 %v1293_v15 }
 0x75b   :  { %4915 = vmatpush3.bf16.msra.mxu1 %v1293_v15 }
 0x75c   :  { %4916 = vmatprep.subr.bf16.mxu1 %v6020_v29 }
 0x75e   :  { %v1406_v25 = vpop.permute.xlu0 %1405 }
 0x75f   :  { %4917 = vmatpush3.bf16.msra.mxu1 %v6020_v29 }
 0x762   :  { %4919 = vmatmul.mubr.msk.bf16.vlgmr.msra.gmra.mxu1 %vm133_vm3, %v5225_v17  ;;  %v1411_v26 = vpop.permute.xlu1 %1410  ;;  %v1396_v28 = vpop.permute.xlu0 %1395 }
 0x763   :  { %4922 = vmatprep.mubr.msk.bf16.mxu1 %vm133_vm3, %v5226_v19 }
 0x766   :  { %v1401_v29 = vpop.permute.xlu1 %1400  ;;  %v1386_v30 = vpop.permute.xlu0 %1385 }
 0x76a   :  { %4923 = vmatmul.mubr.msk.bf16.gmra.mxu1 %vm133_vm3, %v5227_v20  ;;  %v1391_v31 = vpop.permute.xlu1 %1390  ;;  %v1376_v35 = vpop.permute.xlu0 %1375 }
 0x76b   :  { %4926 = vmatprep.mubr.msk.bf16.mxu1 %vm133_vm3, %v5228_v21 }
 0x76e   :  { %v1381_v34 = vpop.permute.xlu1 %1380  ;;  %v1366_v42 = vpop.permute.xlu0 %1365 }
 0x772   :  { %4927 = vmatmul.mubr.msk.bf16.gmra.mxu1 %vm133_vm3, %v5229_v22  ;;  %v1371_v43 = vpop.permute.xlu1 %1370  ;;  %v1356_v47 = vpop.permute.xlu0 %1355 }
 0x773   :  { %4930 = vmatprep.mubr.msk.bf16.mxu1 %vm133_vm3, %v5230_v23 }
 0x776   :  { %v1361_v49 = vpop.permute.xlu1 %1360  ;;  %v1346_v54 = vpop.permute.xlu0 %1345 }
 0x77a   :  { %4931 = vmatmul.mubr.msk.bf16.gmra.mxu1 %vm133_vm3, %v5231_v24  ;;  %v1351_v4 = vpop.permute.xlu1 %1350 }
 0x77e   :  { %v1341_v15 = vpop.permute.xlu1 %1340 }
 0x822   :  { %v4920_v32 = vpop.f32.mrf.mxu1 }
 0x823   :  { %v6194_v5 = vadd.f32 %v4920_v32, %v1346_v54 }
 0x824   :  { %v6185_v36 = vpop.f32.mrf.mxu1 }
 0x825   :  { %v6212_v1 = vmul.f32 0.044715, %v6194_v5 }
 0x826   :  { %v4921_v39 = vpop.f32.mrf.mxu1 }
 0x827   :  { %v6196_v40 = vadd.f32 %v4921_v39, %v1351_v4 }
 0x828   :  { %v1514_v33 = vpop.f32.mrf.mxu1 }
 0x829   :  { %v1593_v12 = vmul.f32 0.044715, %v6196_v40  ;;  %v6223_v23 = vadd.f32 %v1514_v33, %v1341_v15 }
 0x82a   :  { %v4924_v41 = vpop.f32.mrf.mxu1 }
 0x82b   :  { %v6207_v0 = vadd.f32 %v4924_v41, %v1366_v42 }
 0x82c   :  { %v1527_v44 = vpop.f32.mrf.mxu1 }
 0x82e   :  { %v4925_v45 = vpop.f32.mrf.mxu1 }
 0x82f   :  { %v6201_v8 = vadd.f32 %v4925_v45, %v1371_v43 }
 0x830   :  { %v1530_v46 = vpop.f32.mrf.mxu1 }
 0x831   :  { %v1597_v17 = vmul.f32 0.044715, %v6201_v8  ;;  %v6219_v19 = vadd.f32 %v1530_v46, %v1361_v49 }
 0x832   :  { %v4928_v51 = vpop.f32.mrf.mxu1 }
 0x833   :  { %v6187_v52 = vadd.f32 %v4928_v51, %v1386_v30  ;;  %v6230_v30 = vadd.f32 %v1527_v44, %v1356_v47  ;;  %v1595_v42 = vmul.f32 0.044715, %v6219_v19 }
 0x834   :  { %v1543_v53 = vpop.f32.mrf.mxu1 }
 0x835   :  { %v1600_v37 = vmul.f32 0.044715, %v6187_v52  ;;  %v6192_v55 = vadd.f32 %v1543_v53, %v1376_v35 }
 0x836   :  { %v4929_v2 = vpop.f32.mrf.mxu1 }
 0x837   :  { %v6189_v3 = vadd.f32 %v4929_v2, %v1391_v31  ;;  %v1616_v10 = vmul.f32 %v1600_v37, %v6187_v52  ;;  %v1598_v11 = vmul.f32 0.044715, %v6192_v55 }
 0x838   :  { %v1546_v27 = vpop.f32.mrf.mxu1 }
 0x839   :  { %v1601_v56 = vmul.f32 0.044715, %v6189_v3  ;;  %v6199_v7 = vadd.f32 %v1546_v27, %v1381_v34  ;;  %v1632_v31 = vmul.f32 %v1616_v10, %v6187_v52  ;;  %v1614_v32 = vmul.f32 %v1598_v11, %v6192_v55  ;;  %v1336_v10 = vpop.permute.xlu0 %1335 }
 0x83a   :  { %v4932_v9 = vpop.f32.mrf.mxu1  ;;  %v6260_v15 = vadd.f32 %v6185_v36, %v1336_v10 }
 0x83b   :  { %v1617_v38 = vmul.f32 %v1601_v56, %v6189_v3  ;;  %v1599_v57 = vmul.f32 0.044715, %v6199_v7  ;;  %v6205_v58 = vadd.f32 %v4932_v9, %v1406_v25  ;;  %v1630_v53 = vmul.f32 %v1614_v32, %v6192_v55 }
 0x83c   :  { %v1559_v63 = vpop.f32.mrf.mxu1  ;;  %v1648_v2 = vadd.f32 %v1632_v31, %v6187_v52  ;;  %v1611_v9 = vmul.f32 %v1595_v42, %v6219_v19  ;;  %v1591_v31 = vmul.f32 0.044715, %v6223_v23 }
 0x83d   :  { %v1604_v13 = vmul.f32 0.044715, %v6205_v58  ;;  %v6216_v14 = vadd.f32 %v1559_v63, %v1396_v28  ;;  %v1633_v20 = vmul.f32 %v1617_v38, %v6189_v3  ;;  %v1615_v21 = vmul.f32 %v1599_v57, %v6199_v7 }
 0x83e   :  { %v4933_v22 = vpop.f32.mrf.mxu1  ;;  %v1596_v28 = vmul.f32 0.044715, %v6207_v0  ;;  %v1627_v32 = vmul.f32 %v1611_v9, %v6219_v19 }
 0x83f   :  { %v1620_v24 = vmul.f32 %v1604_v13, %v6205_v58  ;;  %v1602_v60 = vmul.f32 0.044715, %v6216_v14  ;;  %v6227_v25 = vadd.f32 %v4933_v22, %v1411_v26  ;;  %v1613_v26 = vmul.f32 %v1597_v17, %v6201_v8 }
 0x840   :  { %v1562_v35 = vpop.f32.mrf.mxu1  ;;  %v1631_v43 = vmul.f32 %v1615_v21, %v6199_v7  ;;  %v1649_v44 = vadd.f32 %v1633_v20, %v6189_v3  ;;  %v1612_v51 = vmul.f32 %v1596_v28, %v6207_v0  ;;  %v1664_v21 = vmul.f32 0.7978846, %v1648_v2 }
 0x841   :  { %v1636_v34 = vmul.f32 %v1620_v24, %v6205_v58  ;;  %v1618_v39 = vmul.f32 %v1602_v60, %v6216_v14  ;;  %v1605_v33 = vmul.f32 0.044715, %v6227_v25  ;;  %v6237_v41 = vadd.f32 %v1562_v35, %v1401_v29 }
 0x842   :  { %v1594_v29 = vmul.f32 0.044715, %v6230_v30  ;;  %v1629_v56 = vmul.f32 %v1613_v26, %v6201_v8  ;;  %v1665_v38 = vmul.f32 0.7978846, %v1649_v44  ;;  %v1647_v57 = vadd.f32 %v1631_v43, %v6199_v7 }
 0x843   :  { %v1634_v45 = vmul.f32 %v1618_v39, %v6216_v14  ;;  %v1621_v46 = vmul.f32 %v1605_v33, %v6227_v25  ;;  %v1603_v47 = vmul.f32 0.044715, %v6237_v41  ;;  %v1652_v49 = vadd.f32 %v1636_v34, %v6205_v58 }
 0x844   :  { %v1628_v17 = vmul.f32 %v1612_v51, %v6207_v0  ;;  %v1610_v20 = vmul.f32 %v1594_v29, %v6230_v30  ;;  %v1646_v60 = vadd.f32 %v1630_v53, %v6192_v55  ;;  %v1609_v28 = vmul.f32 %v1593_v12, %v6196_v40 }
 0x845   :  { %v1637_v54 = vmul.f32 %v1621_v46, %v6227_v25  ;;  %v1619_v4 = vmul.f32 %v1603_v47, %v6237_v41  ;;  %v1668_v37 = vmul.f32 0.7978846, %v1652_v49  ;;  %v1650_v27 = vadd.f32 %v1634_v45, %v6216_v14 }
 0x846   :  { %v1663_v35 = vmul.f32 0.7978846, %v1647_v57  ;;  %v1645_v34 = vadd.f32 %v1629_v56, %v6201_v8  ;;  %v1608_v39 = vmul.f32 %v6212_v1, %v6194_v5  ;;  %v1590_v33 = vmul.f32 0.044715, %v6260_v15 }
 0x847   :  { %v1635_v11 = vmul.f32 %v1619_v4, %v6237_v41  ;;  %v1653_v63 = vadd.f32 %v1637_v54, %v6227_v25  ;;  %5276 = vtanh.f32 %v1668_v37  ;;  %v1666_v13 = vmul.f32 0.7978846, %v1650_v27 }
 0x848   :  { %v1626_v26 = vmul.f32 %v1610_v20, %v6230_v30  ;;  %v1662_v12 = vmul.f32 0.7978846, %v1646_v60  ;;  %v1644_v42 = vadd.f32 %v1628_v17, %v6207_v0  ;;  %v1625_v43 = vmul.f32 %v1609_v28, %v6196_v40 }
 0x849   :  { %v1669_v22 = vmul.f32 0.7978846, %v1653_v63  ;;  %v1651_v24 = vadd.f32 %v1635_v11, %v6237_v41  ;;  %5278 = vtanh.f32 %v1666_v13  ;;  %v1607_v44 = vmul.f32 %v1591_v31, %v6223_v23 }
 0x84a   :  { %5280 = vtanh.f32 %v1665_v38  ;;  %v1661_v45 = vmul.f32 0.7978846, %v1645_v34  ;;  %v1643_v46 = vadd.f32 %v1627_v32, %v6219_v19  ;;  %v1624_v47 = vmul.f32 %v1608_v39, %v6194_v5 }
 0x84b   :  { %5282 = vtanh.f32 %v1669_v22  ;;  %v1667_v36 = vmul.f32 0.7978846, %v1651_v24  ;;  %v1606_v1 = vmul.f32 %v1590_v33, %v6260_v15  ;;  %v1642_v49 = vadd.f32 %v1626_v26, %v6230_v30 }
 0x84c   :  { %5284 = vtanh.f32 %v1664_v21  ;;  %v1660_v51 = vmul.f32 0.7978846, %v1644_v42  ;;  %v1623_v29 = vmul.f32 %v1607_v44, %v6223_v23  ;;  %v1641_v53 = vadd.f32 %v1625_v43, %v6196_v40 }
 0x84d   :  { %5286 = vtanh.f32 %v1667_v36  ;;  %v1659_v2 = vmul.f32 0.7978846, %v1643_v46  ;;  %v1622_v4 = vmul.f32 %v1606_v1, %v6260_v15  ;;  %v1658_v37 = vmul.f32 0.7978846, %v1642_v49 }
 0x84e   :  { %5288 = vtanh.f32 %v1663_v35  ;;  %v1640_v27 = vadd.f32 %v1624_v47, %v6194_v5  ;;  %v1657_v9 = vmul.f32 0.7978846, %v1641_v53  ;;  %v1639_v38 = vadd.f32 %v1623_v29, %v6223_v23 }
 0x84f   :  { %5290 = vtanh.f32 %v1662_v12  ;;  %v1638_v13 = vadd.f32 %v1622_v4, %v6260_v15  ;;  %v1588_v20 = vmul.f32 0.5, %v6205_v58  ;;  %v1589_v21 = vmul.f32 0.5, %v6227_v25 }
 0x850   :  { %5292 = vtanh.f32 %v1661_v45  ;;  %v1656_v63 = vmul.f32 0.7978846, %v1640_v27  ;;  %v1586_v28 = vmul.f32 0.5, %v6216_v14  ;;  %v1587_v31 = vmul.f32 0.5, %v6237_v41 }
 0x851   :  { %5294 = vtanh.f32 %v1660_v51  ;;  %v1655_v32 = vmul.f32 0.7978846, %v1639_v38  ;;  %v1585_v26 = vmul.f32 0.5, %v6189_v3  ;;  %v1654_v58 = vmul.f32 0.7978846, %v1638_v13 }
 0x852   :  { %5296 = vtanh.f32 %v1659_v2  ;;  %v1584_v14 = vmul.f32 0.5, %v6187_v52  ;;  %v1583_v3 = vmul.f32 0.5, %v6199_v7  ;;  %v1582_v53 = vmul.f32 0.5, %v6192_v55 }
 0x853   :  { %5298 = vtanh.f32 %v1658_v37  ;;  %v1581_v27 = vmul.f32 0.5, %v6201_v8  ;;  %v1580_v7 = vmul.f32 0.5, %v6207_v0  ;;  %v1577_v0 = vmul.f32 0.5, %v6196_v40 }
 0x854   :  { %v5277_v54 = vpop.eup %5276  ;;  %5300 = vtanh.f32 %v1657_v9 }
 0x855   :  { %v1700_v10 = vadd.f32 1.0, %v5277_v54  ;;  %5302 = vtanh.f32 %v1656_v63  ;;  %v1579_v63 = vmul.f32 0.5, %v6219_v19 }
 0x856   :  { %v5279_v56 = vpop.eup %5278  ;;  %5304 = vtanh.f32 %v1655_v32  ;;  %v1576_v32 = vmul.f32 0.5, %v6194_v5  ;;  %v5233_v5 = vld [vmem:[%s7316_s11 + $0x8] sm:$0xff]  }
 0x857   :  { %v5281_v57 = vpop.eup %5280  ;;  %v1698_v24 = vadd.f32 1.0, %v5279_v56  ;;  %v1716_v36 = vmul.f32 %v1700_v10, %v1588_v20  ;;  %5306 = vtanh.f32 %v1654_v58  ;;  %v1578_v20 = vmul.f32 0.5, %v6230_v30 }
 0x858   :  { %v5283_v11 = vpop.eup %5282  ;;  %v1697_v39 = vadd.f32 1.0, %v5281_v57  ;;  %v1575_v30 = vmul.f32 0.5, %v6223_v23  ;;  %v5234_v23 = vld [vmem:[%s7316_s11 + $0x10] sm:$0xff]  }
 0x859   :  { %v5285_v17 = vpop.eup %5284  ;;  %v1701_v22 = vadd.f32 1.0, %v5283_v11  ;;  %v1714_v25 = vmul.f32 %v1698_v24, %v1586_v28 }
 0x85a   :  { %v5287_v60 = vpop.eup %5286  ;;  %v1696_v43 = vadd.f32 1.0, %v5285_v17  ;;  %v1713_v45 = vmul.f32 %v1697_v39, %v1585_v26 }
 0x85b   :  { %v1717_v35 = vmul.f32 %v1701_v22, %v1589_v21  ;;  %v1699_v34 = vadd.f32 1.0, %v5287_v60  ;;  %v5289_v33 = vpop.eup %5288 }
 0x85c   :  { %v5291_v44 = vpop.eup %5290  ;;  %v1695_v46 = vadd.f32 1.0, %v5289_v33  ;;  %v1712_v1 = vmul.f32 %v1696_v43, %v1584_v14  ;;  %v1574_v33 = vmul.f32 0.5, %v6260_v15  ;;  %v5416_v15 = vld [vmem:[%s7308_s3 + $0x74] ss:$8 sps:$4 sm:$0xff]   ;;  %v5236_v43 = vld [vmem:[%s7316_s11 + $0x20] sm:$0xff]  }
 0x85d   :  { %v1741_v12 = vpack.c.bf16 %v1717_v35, %v1716_v36  ;;  %v1715_v42 = vmul.f32 %v1699_v34, %v1587_v31  ;;  %v5293_v47 = vpop.eup %5292  ;;  %v1694_v49 = vadd.f32 1.0, %v5291_v44  ;;  %v5419_v44 = vld [vmem:[%s7308_s3 + $0x60] ss:$8 sps:$4 sm:$0xff]   ;;  %v5420_v14 = vld [vmem:[%s7308_s3 + $0x54] ss:$8 sps:$4 sm:$0xff]  }
 0x85e   :  { %v5295_v51 = vpop.eup %5294  ;;  %v1739_v29 = vpack.c.bf16 %v1713_v45, %v1712_v1  ;;  %v1711_v2 = vmul.f32 %v1695_v46, %v1583_v3  ;;  %v1693_v54 = vadd.f32 1.0, %v5293_v47  ;;  %v5422_v45 = vld [vmem:[%s7308_s3 + $0x44] ss:$8 sps:$4 sm:$0xff]   ;;  %v5238_v47 = vld [vmem:[%s7316_s11 + $0x30] sm:$0xff]   ;;  %v5423_v1 = vld [vmem:[%s7308_s3 + $0x40] ss:$8 sps:$4 sm:$0xff]  }
 0x85f   :  { %4934 = vmatprep.subr.bf16.mxu0 %v1741_v12  ;;  %v1740_v41 = vpack.c.bf16 %v1715_v42, %v1714_v25  ;;  %v5297_v52 = vpop.eup %5296  ;;  %v1710_v37 = vmul.f32 %v1694_v49, %v1582_v53  ;;  %v1692_v56 = vadd.f32 1.0, %v5295_v51  ;;  %v5418_v25 = vld [vmem:[%s7308_s3 + $0x64] ss:$8 sps:$4 sm:$0xff]   ;;  %v5235_v42 = vld [vmem:[%s7316_s11 + $0x18] sm:$0xff]   ;;  %v5427_v53 = vld [vmem:[%s7308_s3 + $0x20] ss:$8 sps:$4 sm:$0xff]  }
 0x860   :  { %4935 = vmatpush3.bf16.msra.mxu0 %v1741_v12  ;;  %v5299_v4 = vpop.eup %5298  ;;  %v1709_v57 = vmul.f32 %v1693_v54, %v1581_v27  ;;  %v1691_v10 = vadd.f32 1.0, %v5297_v52  ;;  %v5417_v12 = vld [vmem:[%s7308_s3 + $0x70] ss:$8 sps:$4 sm:$0xff]   ;;  %v5237_v46 = vld [vmem:[%s7316_s11 + $0x28] sm:$0xff]   ;;  %v5424_v3 = vld [vmem:[%s7308_s3 + $0x34] ss:$8 sps:$4 sm:$0xff]   ;;  %v1831_v27 = vpop.permute.xlu0 %1830 }
 0x861   :  { %4936 = vmatprep.subr.bf16.mxu0 %v1740_v41  ;;  %v5301_v9 = vpop.eup %5300  ;;  %v1738_v38 = vpack.c.bf16 %v1711_v2, %v1710_v37  ;;  %v1708_v55 = vmul.f32 %v1692_v56, %v1580_v7  ;;  %v1690_v13 = vadd.f32 1.0, %v5299_v4  ;;  %v5425_v49 = vld [vmem:[%s7308_s3 + $0x30] ss:$8 sps:$4 sm:$0xff]   ;;  %v5426_v51 = vld [vmem:[%s7308_s3 + $0x24] ss:$8 sps:$4 sm:$0xff]   ;;  %v1836_v56 = vpop.permute.xlu1 %1835 }
 0x862   :  { %v5303_v11 = vpop.eup %5302  ;;  %v1707_v21 = vmul.f32 %v1691_v10, %v1579_v63  ;;  %v1689_v22 = vadd.f32 1.0, %v5301_v9  ;;  %v5428_v2 = vld [vmem:[%s7308_s3 + $0x14] ss:$8 sps:$4 sm:$0xff]   ;;  %v5429_v54 = vld [vmem:[%s7308_s3 + $0x10] ss:$8 sps:$4 sm:$0xff]   ;;  %v6376_v37 = vld [vmem:[%s7306_s1] sm:$0xff] }
 0x863   :  { %v1737_v17 = vpack.c.bf16 %v1709_v57, %v1708_v55  ;;  %v5305_v8 = vpop.eup %5304  ;;  %v1706_v24 = vmul.f32 %v1690_v13, %v1578_v20  ;;  %v1688_v60 = vadd.f32 1.0, %v5303_v11  ;;  %v5430_v52 = vld [vmem:[%s7308_s3 + $0x4] ss:$8 sps:$4 sm:$0xff]   ;;  %v5431_v4 = vld [vmem:[%s7308_s3] ss:$8 sps:$4 sm:$0xff]  }
 0x864   :  { %4937 = vmatpush3.bf16.msra.mxu0 %v1740_v41  ;;  %v5307_v28 = vpop.eup %5306  ;;  %v1705_v36 = vmul.f32 %v1689_v22, %v1577_v0  ;;  %v1687_v35 = vadd.f32 1.0, %v5305_v8  ;;  %v5421_v41 = vld [vmem:[%s7308_s3 + $0x50] ss:$8 sps:$4 sm:$0xff]   ;;  %v1821_v9 = vpop.permute.xlu0 %1820 }
 0x865   :  { %4938 = vmatprep.subr.bf16.mxu0 %v1739_v29  ;;  %v1736_v31 = vpack.c.bf16 %v1707_v21, %v1706_v24  ;;  %v1704_v19 = vmul.f32 %v1688_v60, %v1576_v32  ;;  %v1686_v34 = vadd.f32 1.0, %v5307_v28 }
 0x866   :  { %v1703_v26 = vmul.f32 %v1687_v35, %v1575_v30 }
 0x867   :  { %v1735_v39 = vpack.c.bf16 %v1705_v36, %v1704_v19  ;;  %v1702_v40 = vmul.f32 %v1686_v34, %v1574_v33 }
 0x868   :  { %4939 = vmatpush3.bf16.msra.mxu0 %v1739_v29  ;;  %v5239_v29 = vld [vmem:[%s7316_s11 + $0x38] sm:$0xff]   ;;  %v1811_v7 = vpop.permute.xlu0 %1810 }
 0x869   :  { %4940 = vmatprep.subr.bf16.mxu0 %v1738_v38  ;;  %v1734_v58 = vpack.c.bf16 %v1703_v26, %v1702_v40 }
 0x86c   :  { %4941 = vmatpush3.bf16.msra.mxu0 %v1738_v38  ;;  %v1826_v38 = vpop.permute.xlu1 %1825  ;;  %v1801_v55 = vpop.permute.xlu0 %1800 }
 0x86d   :  { %4942 = vmatprep.subr.bf16.mxu0 %v1737_v17 }
 0x870   :  { %4943 = vmatpush3.bf16.msra.mxu0 %v1737_v17  ;;  %v1816_v57 = vpop.permute.xlu1 %1815  ;;  %v1791_v21 = vpop.permute.xlu0 %1790 }
 0x871   :  { %4944 = vmatprep.subr.bf16.mxu0 %v1736_v31 }
 0x874   :  { %4945 = vmatpush3.bf16.msra.mxu0 %v1736_v31  ;;  %v1806_v63 = vpop.permute.xlu1 %1805  ;;  %v1781_v60 = vpop.permute.xlu0 %1780 }
 0x875   :  { %4946 = vmatprep.subr.bf16.mxu0 %v1735_v39 }
 0x878   :  { %4947 = vmatpush3.bf16.msra.mxu0 %v1735_v39  ;;  %v1796_v22 = vpop.permute.xlu1 %1795  ;;  %v1771_v19 = vpop.permute.xlu0 %1770 }
 0x879   :  { %4948 = vmatprep.subr.bf16.mxu0 %v1734_v58 }
 0x87c   :  { %4949 = vmatpush3.bf16.msra.mxu0 %v1734_v58  ;;  %v1786_v28 = vpop.permute.xlu1 %1785 }
 0x87d   :  { %2313 = vmatprep.subr.bf16.mxu0 %v5416_v15 }
 0x87f   :  { %4951 = vmatmul.mubr.bf16.vlgmr.msra.gmra.mxu0 %v5233_v5 }
 0x880   :  { %4954 = vmatprep.mubr.bf16.mxu0 %v5234_v23  ;;  %2314 = vmatpush1.bf16.msra.mxu0 %v5417_v12  ;;  %v1776_v34 = vpop.permute.xlu1 %1775 }
 0x881   :  { %2315 = vmatprep.subr.bf16.mxu0 %v5418_v25 }
 0x884   :  { %2316 = vmatpush1.bf16.msra.mxu0 %v5419_v44 }
 0x885   :  { %2317 = vmatprep.subr.bf16.mxu0 %v5420_v14 }
 0x887   :  { %4955 = vmatmul.mubr.bf16.gmra.mxu0 %v5235_v42 }
 0x888   :  { %4958 = vmatprep.mubr.bf16.mxu0 %v5236_v43  ;;  %2318 = vmatpush1.bf16.msra.mxu0 %v5421_v41 }
 0x889   :  { %2319 = vmatprep.subr.bf16.mxu0 %v5422_v45 }
 0x88c   :  { %2320 = vmatpush1.bf16.msra.mxu0 %v5423_v1 }
 0x88d   :  { %2321 = vmatprep.subr.bf16.mxu0 %v5424_v3 }
 0x88f   :  { %4959 = vmatmul.mubr.bf16.gmra.mxu0 %v5237_v46 }
 0x890   :  { %4962 = vmatprep.mubr.bf16.mxu0 %v5238_v47  ;;  %2322 = vmatpush1.bf16.msra.mxu0 %v5425_v49  ;;  %v1766_v49 = vpop.permute.xlu1 %1765 }
 0x891   :  { %2323 = vmatprep.subr.bf16.mxu0 %v5426_v51 }
 0x894   :  { %2324 = vmatpush1.bf16.msra.mxu0 %v5427_v53 }
 0x895   :  { %2325 = vmatprep.subr.bf16.mxu0 %v5428_v2 }
 0x897   :  { %4963 = vmatmul.mubr.bf16.gmra.mxu0 %v5239_v29 }
 0x898   :  { %2326 = vmatpush1.bf16.msra.mxu0 %v5429_v54  ;;  %2345 = vmatprep.mubr.bf16.mxu0 %v5491_v16  ;;  %v5240_v16 = vld [vmem:[%s7318_s13] sm:$0xff]  }
 0x899   :  { %2327 = vmatprep.subr.bf16.mxu0 %v5430_v52  ;;  %4982 = vmatprep.mubr.bf16.mxu1 %v5240_v16 }
 0x89c   :  { %2328 = vmatpush1.bf16.msra.mxu0 %v5431_v4 }
 0x89d   :  { %4990 = vmatprep.subr.mxu0 %v6376_v37 }
 0x93f   :  { %v4952_v10 = vpop.f32.mrf.mxu0 }
 0x940   :  { %v6391_v40 = vadd.f32 %v4952_v10, %v1771_v19 }
 0x941   :  { %v6382_v11 = vpop.f32.mrf.mxu0 }
 0x942   :  { %v6409_v46 = vmul.f32 0.044715, %v6391_v40 }
 0x943   :  { %v4953_v13 = vpop.f32.mrf.mxu0 }
 0x944   :  { %v6393_v58 = vadd.f32 %v4953_v13, %v1776_v34 }
 0x945   :  { %v1923_v17 = vpop.f32.mrf.mxu0 }
 0x946   :  { %v2002_v47 = vmul.f32 0.044715, %v6393_v58  ;;  %v6420_v52 = vadd.f32 %v1923_v17, %v1766_v49 }
 0x947   :  { %v4956_v20 = vpop.f32.mrf.mxu0 }
 0x948   :  { %v6404_v44 = vadd.f32 %v4956_v20, %v1791_v21 }
 0x949   :  { %v1936_v8 = vpop.f32.mrf.mxu0 }
 0x94b   :  { %v4957_v24 = vpop.f32.mrf.mxu0 }
 0x94c   :  { %v6398_v15 = vadd.f32 %v4957_v24, %v1796_v22 }
 0x94d   :  { %v1939_v0 = vpop.f32.mrf.mxu0 }
 0x94e   :  { %v2006_v51 = vmul.f32 0.044715, %v6398_v15  ;;  %v6416_v29 = vadd.f32 %v1939_v0, %v1786_v28 }
 0x94f   :  { %v4960_v31 = vpop.f32.mrf.mxu0 }
 0x950   :  { %v6384_v32 = vadd.f32 %v4960_v31, %v1811_v7  ;;  %v6427_v7 = vadd.f32 %v1936_v8, %v1781_v60  ;;  %v2004_v21 = vmul.f32 0.044715, %v6416_v29 }
 0x951   :  { %v1952_v36 = vpop.f32.mrf.mxu0 }
 0x952   :  { %v2009_v39 = vmul.f32 0.044715, %v6384_v32  ;;  %v6389_v33 = vadd.f32 %v1952_v36, %v1801_v55 }
 0x953   :  { %v4961_v35 = vpop.f32.mrf.mxu0 }
 0x954   :  { %v6386_v30 = vadd.f32 %v4961_v35, %v1816_v57  ;;  %v2025_v14 = vmul.f32 %v2009_v39, %v6384_v32  ;;  %v2007_v41 = vmul.f32 0.044715, %v6389_v33 }
 0x955   :  { %v1955_v26 = vpop.f32.mrf.mxu0 }
 0x956   :  { %v2010_v5 = vmul.f32 0.044715, %v6386_v30  ;;  %v6396_v23 = vadd.f32 %v1955_v26, %v1806_v63  ;;  %v2041_v57 = vmul.f32 %v2025_v14, %v6384_v32  ;;  %v2023_v10 = vmul.f32 %v2007_v41, %v6389_v33  ;;  %v1761_v14 = vpop.permute.xlu0 %1760 }
 0x957   :  { %v4964_v12 = vpop.f32.mrf.mxu0  ;;  %v6457_v49 = vadd.f32 %v6382_v11, %v1761_v14 }
 0x958   :  { %v2026_v25 = vmul.f32 %v2010_v5, %v6386_v30  ;;  %v2008_v42 = vmul.f32 0.044715, %v6396_v23  ;;  %v6402_v43 = vadd.f32 %v4964_v12, %v1831_v27  ;;  %v2039_v36 = vmul.f32 %v2023_v10, %v6389_v33 }
 0x959   :  { %v1968_v45 = vpop.f32.mrf.mxu0  ;;  %v2057_v35 = vadd.f32 %v2041_v57, %v6384_v32  ;;  %v2020_v12 = vmul.f32 %v2004_v21, %v6416_v29  ;;  %v2000_v57 = vmul.f32 0.044715, %v6420_v52 }
 0x95a   :  { %v2013_v1 = vmul.f32 0.044715, %v6402_v43  ;;  %v6413_v3 = vadd.f32 %v1968_v45, %v1821_v9  ;;  %v2042_v53 = vmul.f32 %v2026_v25, %v6386_v30  ;;  %v2024_v2 = vmul.f32 %v2008_v42, %v6396_v23 }
 0x95b   :  { %v4965_v54 = vpop.f32.mrf.mxu0  ;;  %v2005_v9 = vmul.f32 0.044715, %v6404_v44  ;;  %v2036_v10 = vmul.f32 %v2020_v12, %v6416_v29 }
 0x95c   :  { %v2029_v4 = vmul.f32 %v2013_v1, %v6402_v43  ;;  %v2011_v16 = vmul.f32 0.044715, %v6413_v3  ;;  %v6424_v27 = vadd.f32 %v4965_v54, %v1836_v56  ;;  %v2022_v56 = vmul.f32 %v2006_v51, %v6398_v15 }
 0x95d   :  { %v1971_v55 = vpop.f32.mrf.mxu0  ;;  %v2040_v22 = vmul.f32 %v2024_v2, %v6396_v23  ;;  %v2058_v8 = vadd.f32 %v2042_v53, %v6386_v30  ;;  %v2021_v31 = vmul.f32 %v2005_v9, %v6404_v44  ;;  %v2073_v2 = vmul.f32 0.7978846, %v2057_v35 }
 0x95e   :  { %v2045_v63 = vmul.f32 %v2029_v4, %v6402_v43  ;;  %v2027_v13 = vmul.f32 %v2011_v16, %v6413_v3  ;;  %v2014_v17 = vmul.f32 0.044715, %v6424_v27  ;;  %v6434_v20 = vadd.f32 %v1971_v55, %v1826_v38 }
 0x95f   :  { %v2003_v38 = vmul.f32 0.044715, %v6427_v7  ;;  %v2038_v5 = vmul.f32 %v2022_v56, %v6398_v15  ;;  %v2074_v25 = vmul.f32 0.7978846, %v2058_v8  ;;  %v2056_v42 = vadd.f32 %v2040_v22, %v6396_v23 }
 0x960   :  { %v2043_v24 = vmul.f32 %v2027_v13, %v6413_v3  ;;  %v2030_v0 = vmul.f32 %v2014_v17, %v6424_v27  ;;  %v2012_v60 = vmul.f32 0.044715, %v6434_v20  ;;  %v2061_v28 = vadd.f32 %v2045_v63, %v6402_v43 }
 0x961   :  { %v2037_v51 = vmul.f32 %v2021_v31, %v6404_v44  ;;  %v2019_v53 = vmul.f32 %v2003_v38, %v6427_v7  ;;  %v2055_v16 = vadd.f32 %v2039_v36, %v6389_v33  ;;  %v2018_v9 = vmul.f32 %v2002_v47, %v6393_v58 }
 0x962   :  { %v2046_v19 = vmul.f32 %v2030_v0, %v6424_v27  ;;  %v2028_v34 = vmul.f32 %v2012_v60, %v6434_v20  ;;  %v2077_v39 = vmul.f32 0.7978846, %v2061_v28  ;;  %v2059_v26 = vadd.f32 %v2043_v24, %v6413_v3 }
 0x963   :  { %v2072_v55 = vmul.f32 0.7978846, %v2056_v42  ;;  %v2054_v63 = vadd.f32 %v2038_v5, %v6398_v15  ;;  %v2017_v13 = vmul.f32 %v6409_v46, %v6391_v40  ;;  %v1999_v17 = vmul.f32 0.044715, %v6457_v49 }
 0x964   :  { %v2044_v41 = vmul.f32 %v2028_v34, %v6434_v20  ;;  %v2062_v45 = vadd.f32 %v2046_v19, %v6424_v27  ;;  %5308 = vtanh.f32 %v2077_v39  ;;  %v2075_v1 = vmul.f32 0.7978846, %v2059_v26 }
 0x965   :  { %v2035_v56 = vmul.f32 %v2019_v53, %v6427_v7  ;;  %v2071_v47 = vmul.f32 0.7978846, %v2055_v16  ;;  %v2053_v21 = vadd.f32 %v2037_v51, %v6404_v44  ;;  %v2034_v22 = vmul.f32 %v2018_v9, %v6393_v58 }
 0x966   :  { %v2078_v54 = vmul.f32 0.7978846, %v2062_v45  ;;  %v2060_v4 = vadd.f32 %v2044_v41, %v6434_v20  ;;  %5310 = vtanh.f32 %v2075_v1  ;;  %v2016_v8 = vmul.f32 %v2000_v57, %v6420_v52 }
 0x967   :  { %5312 = vtanh.f32 %v2074_v25  ;;  %v2070_v24 = vmul.f32 0.7978846, %v2054_v63  ;;  %v2052_v0 = vadd.f32 %v2036_v10, %v6416_v29  ;;  %v2033_v60 = vmul.f32 %v2017_v13, %v6391_v40 }
 0x968   :  { %5314 = vtanh.f32 %v2078_v54  ;;  %v2076_v11 = vmul.f32 0.7978846, %v2060_v4  ;;  %v2015_v46 = vmul.f32 %v1999_v17, %v6457_v49  ;;  %v2051_v28 = vadd.f32 %v2035_v56, %v6427_v7 }
 0x969   :  { %5316 = vtanh.f32 %v2073_v2  ;;  %v2069_v31 = vmul.f32 0.7978846, %v2053_v21  ;;  %v2032_v38 = vmul.f32 %v2016_v8, %v6420_v52  ;;  %v2050_v36 = vadd.f32 %v2034_v22, %v6393_v58 }
 0x96a   :  { %5318 = vtanh.f32 %v2076_v11  ;;  %v2068_v35 = vmul.f32 0.7978846, %v2052_v0  ;;  %v2031_v34 = vmul.f32 %v2015_v46, %v6457_v49  ;;  %v2067_v39 = vmul.f32 0.7978846, %v2051_v28 }
 0x96b   :  { %5320 = vtanh.f32 %v2072_v55  ;;  %v2049_v26 = vadd.f32 %v2033_v60, %v6391_v40  ;;  %v2066_v12 = vmul.f32 0.7978846, %v2050_v36  ;;  %v2048_v25 = vadd.f32 %v2032_v38, %v6420_v52 }
 0x96c   :  { %5322 = vtanh.f32 %v2071_v47  ;;  %v2047_v1 = vadd.f32 %v2031_v34, %v6457_v49  ;;  %v1997_v53 = vmul.f32 0.5, %v6402_v43  ;;  %v1998_v2 = vmul.f32 0.5, %v6424_v27 }
 0x96d   :  { %5324 = vtanh.f32 %v2070_v24  ;;  %v2065_v45 = vmul.f32 0.7978846, %v2049_v26  ;;  %v1995_v9 = vmul.f32 0.5, %v6413_v3  ;;  %v1996_v57 = vmul.f32 0.5, %v6434_v20 }
 0x96e   :  { %5326 = vtanh.f32 %v2069_v31  ;;  %v2064_v10 = vmul.f32 0.7978846, %v2048_v25  ;;  %v1994_v56 = vmul.f32 0.5, %v6386_v30  ;;  %v2063_v43 = vmul.f32 0.7978846, %v2047_v1 }
 0x96f   :  { %5328 = vtanh.f32 %v2068_v35  ;;  %v1993_v3 = vmul.f32 0.5, %v6384_v32  ;;  %v1992_v30 = vmul.f32 0.5, %v6396_v23  ;;  %v1991_v36 = vmul.f32 0.5, %v6389_v33 }
 0x970   :  { %5330 = vtanh.f32 %v2067_v39  ;;  %v1990_v26 = vmul.f32 0.5, %v6398_v15  ;;  %v1989_v23 = vmul.f32 0.5, %v6404_v44  ;;  %v1986_v44 = vmul.f32 0.5, %v6393_v58 }
 0x971   :  { %v5309_v19 = vpop.eup %5308  ;;  %5332 = vtanh.f32 %v2066_v12 }
 0x972   :  { %v2109_v14 = vadd.f32 1.0, %v5309_v19  ;;  %5334 = vtanh.f32 %v2065_v45  ;;  %v1988_v45 = vmul.f32 0.5, %v6416_v29 }
 0x973   :  { %v5311_v5 = vpop.eup %5310  ;;  %5336 = vtanh.f32 %v2064_v10  ;;  %v1985_v10 = vmul.f32 0.5, %v6391_v40  ;;  %v5241_v40 = vld [vmem:[%s7318_s13 + $0x8] sm:$0xff]  }
 0x974   :  { %v5313_v42 = vpop.eup %5312  ;;  %v2107_v4 = vadd.f32 1.0, %v5311_v5  ;;  %v2125_v11 = vmul.f32 %v2109_v14, %v1997_v53  ;;  %5338 = vtanh.f32 %v2063_v43  ;;  %v1987_v53 = vmul.f32 0.5, %v6427_v7 }
 0x975   :  { %v5315_v41 = vpop.eup %5314  ;;  %v2106_v13 = vadd.f32 1.0, %v5313_v42  ;;  %v1984_v7 = vmul.f32 0.5, %v6420_v52  ;;  %v5242_v52 = vld [vmem:[%s7318_s13 + $0x10] sm:$0xff]  }
 0x976   :  { %v5317_v51 = vpop.eup %5316  ;;  %v2110_v54 = vadd.f32 1.0, %v5315_v41  ;;  %v2123_v27 = vmul.f32 %v2107_v4, %v1995_v9 }
 0x977   :  { %v5319_v16 = vpop.eup %5318  ;;  %v2105_v22 = vadd.f32 1.0, %v5317_v51  ;;  %v2122_v24 = vmul.f32 %v2106_v13, %v1994_v56 }
 0x978   :  { %v2126_v55 = vmul.f32 %v2110_v54, %v1998_v2  ;;  %v2108_v63 = vadd.f32 1.0, %v5319_v16  ;;  %v5321_v17 = vpop.eup %5320 }
 0x979   :  { %v5323_v8 = vpop.eup %5322  ;;  %v2104_v0 = vadd.f32 1.0, %v5321_v17  ;;  %v2121_v46 = vmul.f32 %v2105_v22, %v1993_v3  ;;  %v1983_v17 = vmul.f32 0.5, %v6457_v49  ;;  %v5243_v49 = vld [vmem:[%s7318_s13 + $0x18] sm:$0xff]  }
 0x97a   :  { %v2142_v47 = vpack.c.bf16 %v2126_v55, %v2125_v11  ;;  %v2124_v21 = vmul.f32 %v2108_v63, %v1996_v57  ;;  %v5325_v60 = vpop.eup %5324  ;;  %v2103_v28 = vadd.f32 1.0, %v5323_v8  ;;  %v2169_v8 = vpop.permute.xlu1 %2168 }
 0x97b   :  { %v5327_v31 = vpop.eup %5326  ;;  %v2140_v38 = vpack.c.bf16 %v2122_v24, %v2121_v46  ;;  %v2120_v35 = vmul.f32 %v2104_v0, %v1992_v30  ;;  %v2102_v19 = vadd.f32 1.0, %v5325_v60 }
 0x97c   :  { %4966 = vmatprep.subr.bf16.mxu1 %v2142_v47  ;;  %v2141_v20 = vpack.c.bf16 %v2124_v21, %v2123_v27  ;;  %v5329_v32 = vpop.eup %5328  ;;  %v2119_v39 = vmul.f32 %v2103_v28, %v1991_v36  ;;  %v2101_v5 = vadd.f32 1.0, %v5327_v31 }
 0x97d   :  { %4967 = vmatpush3.bf16.msra.mxu1 %v2142_v47  ;;  %v5331_v34 = vpop.eup %5330  ;;  %v2118_v42 = vmul.f32 %v2102_v19, %v1990_v26  ;;  %v2100_v14 = vadd.f32 1.0, %v5329_v32  ;;  %v2164_v47 = vpop.permute.xlu0 %2163  ;;  %v4398_v26 = vld [vmem:[%s7313_s8 + $0x20] sm:$0xff] }
 0x97e   :  { %4968 = vmatprep.subr.bf16.mxu1 %v2141_v20  ;;  %v5333_v12 = vpop.eup %5332  ;;  %v2139_v25 = vpack.c.bf16 %v2120_v35, %v2119_v39  ;;  %v2117_v33 = vmul.f32 %v2101_v5, %v1989_v23  ;;  %v2099_v1 = vadd.f32 1.0, %v5331_v34  ;;  %v2179_v28 = vpop.permute.xlu1 %2178  ;;  %v4400_v34 = vld [vmem:[%s7313_s8 + $0x30] sm:$0xff]  ;;  %v4401_v5 = vld [vmem:[%s7313_s8 + $0x38] sm:$0xff] }
 0x97f   :  { %v5335_v41 = vpop.eup %5334  ;;  %v2116_v2 = vmul.f32 %v2100_v14, %v1988_v45  ;;  %v2098_v54 = vadd.f32 1.0, %v5333_v12  ;;  %v4399_v12 = vld [vmem:[%s7313_s8 + $0x28] sm:$0xff] }
 0x980   :  { %v2138_v51 = vpack.c.bf16 %v2118_v42, %v2117_v33  ;;  %v5337_v15 = vpop.eup %5336  ;;  %v2115_v4 = vmul.f32 %v2099_v1, %v1987_v53  ;;  %v2097_v16 = vadd.f32 1.0, %v5335_v41 }
 0x981   :  { %4969 = vmatpush3.bf16.msra.mxu1 %v2141_v20  ;;  %v5339_v9 = vpop.eup %5338  ;;  %v2114_v11 = vmul.f32 %v2098_v54, %v1986_v44  ;;  %v2096_v55 = vadd.f32 1.0, %v5337_v15  ;;  %v2174_v0 = vpop.permute.xlu0 %2173 }
 0x982   :  { %4970 = vmatprep.subr.bf16.mxu1 %v2140_v38  ;;  %v2137_v57 = vpack.c.bf16 %v2116_v2, %v2115_v4  ;;  %v2113_v29 = vmul.f32 %v2097_v16, %v1985_v10  ;;  %v2095_v63 = vadd.f32 1.0, %v5339_v9  ;;  %v2189_v32 = vpop.permute.xlu1 %2188 }
 0x983   :  { %v2112_v56 = vmul.f32 %v2096_v55, %v1984_v7  ;;  %v4409_v55 = vld [vmem:[%s7310_s5 + $0xd8] sm:$0xff] }
 0x984   :  { %v2136_v13 = vpack.c.bf16 %v2114_v11, %v2113_v29  ;;  %v2111_v58 = vmul.f32 %v2095_v63, %v1983_v17  ;;  %v4406_v11 = vld [vmem:[%s7310_s5 + $0xc0] sm:$0xff] }
 0x985   :  { %4971 = vmatpush3.bf16.msra.mxu1 %v2140_v38  ;;  %v2184_v38 = vpop.permute.xlu0 %2183 }
 0x986   :  { %4972 = vmatprep.subr.bf16.mxu1 %v2139_v25  ;;  %v2135_v43 = vpack.c.bf16 %v2112_v56, %v2111_v58  ;;  %v2159_v23 = vpop.permute.xlu1 %2158  ;;  %v5433_v58 = vld [vmem:[%s7309_s4 + $0x78] sm:$0xff]  }
 0x989   :  { %4973 = vmatpush3.bf16.msra.mxu1 %v2139_v25  ;;  %v2154_v25 = vpop.permute.xlu0 %2153 }
 0x98a   :  { %4974 = vmatprep.subr.bf16.mxu1 %v2138_v51 }
 0x98d   :  { %4975 = vmatpush3.bf16.msra.mxu1 %v2138_v51 }
 0x98e   :  { %4976 = vmatprep.subr.bf16.mxu1 %v2137_v57 }
 0x991   :  { %4977 = vmatpush3.bf16.msra.mxu1 %v2137_v57 }
 0x992   :  { %4978 = vmatprep.subr.bf16.mxu1 %v2136_v13 }
 0x995   :  { %4979 = vmatpush3.bf16.msra.mxu1 %v2136_v13 }
 0x996   :  { %4980 = vmatprep.subr.bf16.mxu1 %v2135_v43 }
 0x999   :  { %4981 = vmatpush3.bf16.msra.mxu1 %v2135_v43  ;;  %v4403_v43 = vld [vmem:[%s7312_s7 + $0x18] sm:$0xff] }
 0x99c   :  { %4983 = vmatmul.mubr.bf16.vlgmr.msra.gmra.mxu1 %v5241_v40  ;;  %v5434_v40 = vld [vmem:[%s7309_s4 + $0x38] sm:$0xff]  }
 0x99d   :  { %4986 = vmatprep.mubr.bf16.mxu1 %v5242_v52  ;;  %v5435_v52 = vld [vmem:[%s7309_s4 + $0x70] sm:$0xff]  }
 0x9a4   :  { %4987 = vmatmul.mubr.bf16.gmra.mxu1 %v5243_v49  ;;  %v5437_v49 = vld [vmem:[%s7309_s4 + $0x68] sm:$0xff]  }
 0x9a5   :  { %2457 = vmatprep.mubr.f32.mxu1 %v5495_v62 }
 0xa5c   :  { %v4984_v27 = vpop.f32.mrf.mxu1 }
 0xa5d   :  { %v2258_v21 = vadd.f32 %v4984_v27, %v2164_v47  ;;  %v5438_v47 = vld [vmem:[%s7309_s4 + $0x28] sm:$0xff]   ;;  %v5439_v27 = vld [vmem:[%s7309_s4 + $0x60] sm:$0xff]  }
 0xa5e   :  { %v2249_v22 = vpop.f32.mrf.mxu1 }
 0xa5f   :  { %2282 = vrot.lane.b32.xlu0 %v2258_v21, %s5488_s23  ;;  %v2250_v33 = vadd.f32 %v2249_v22, %v2154_v25  ;;  %v5440_v21 = vld [vmem:[%s7309_s4 + $0x20] sm:$0xff]   ;;  %v5441_v22 = vld [vmem:[%s7309_s4 + $0x58] sm:$0xff]  }
 0xa60   :  { %v4985_v3 = vpop.f32.mrf.mxu1 }
 0xa61   :  { %v2261_v20 = vadd.f32 %v4985_v3, %v2169_v8  ;;  %v5442_v8 = vld [vmem:[%s7309_s4 + $0x18] sm:$0xff]   ;;  %v5443_v3 = vld [vmem:[%s7309_s4 + $0x50] sm:$0xff]  }
 0xa62   :  { %v2252_v24 = vpop.f32.mrf.mxu1 }
 0xa63   :  { %2284 = vrot.lane.b32.xlu1 %v2261_v20, %s5488_s23  ;;  %v2253_v51 = vadd.f32 %v2252_v24, %v2159_v23  ;;  %v5444_v20 = vld [vmem:[%s7309_s4 + $0x10] sm:$0xff]   ;;  %v5445_v24 = vld [vmem:[%s7309_s4 + $0x48] sm:$0xff]  }
 0xa64   :  { %v4988_v60 = vpop.f32.mrf.mxu1 }
 0xa65   :  { %v2274_v35 = vadd.f32 %v4988_v60, %v2184_v38  ;;  %v5447_v60 = vld [vmem:[%s7309_s4 + $0x40] sm:$0xff]   ;;  %v4412_v38 = vld [vmem:[%s7310_s5 + $0xf0] sm:$0xff] }
 0xa66   :  { %v2265_v46 = vpop.f32.mrf.mxu1 }
 0xa67   :  { %v2266_v30 = vadd.f32 %v2265_v46, %v2174_v0  ;;  %v5446_v0 = vld [vmem:[%s7309_s4 + $0x8] sm:$0xff]   ;;  %v5448_v46 = vld [vmem:[%s7309_s4] sm:$0xff]  }
 0xa68   :  { %v4989_v31 = vpop.f32.mrf.mxu1 }
 0xa69   :  { %2290 = vrot.lane.b32.xlu0 %v2266_v30, %s5490_s21  ;;  %v2277_v39 = vadd.f32 %v4989_v31, %v2189_v32  ;;  %v5449_v30 = vld [vmem:[%s7307_s2 + $0x78] sm:$0xff]  ;;  %v4411_v31 = vld [vmem:[%s7310_s5 + $0xe8] sm:$0xff]  ;;  %v4416_v32 = vld [vmem:[%s7310_s5 + $0x110] sm:$0xff] }
 0xa6a   :  { %v2268_v36 = vpop.f32.mrf.mxu1 }
 0xa6b   :  { %v2269_v19 = vadd.f32 %v2268_v36, %v2179_v28  ;;  %v4410_v28 = vld [vmem:[%s7310_s5 + $0xe0] sm:$0xff]  ;;  %v4413_v36 = vld [vmem:[%s7310_s5 + $0xf8] sm:$0xff] }
 0xa6d   :  { %2298 = vrot.lane.b32.xlu0 %v2274_v35, %s5493_s20  ;;  %2292 = vrot.lane.b32.xlu1 %v2269_v19, %s5490_s21  ;;  %v4414_v35 = vld [vmem:[%s7310_s5 + $0x100] sm:$0xff]  ;;  %v4415_v19 = vld [vmem:[%s7310_s5 + $0x108] sm:$0xff] }
 0xa71   :  { %2376 = vperm.xlu0 %5182, %v4400_v34   ;;  %2300 = vrot.lane.b32.xlu1 %v2277_v39, %s5493_s20  ;;  %v4417_v34 = vld [vmem:[%s7310_s5 + $0x118] sm:$0xff]  ;;  %v4418_v39 = vld [vmem:[%s7310_s5 + $0x120] sm:$0xff] }
 0xa75   :  { %2363 = vperm.xlu0 %5182, %v4398_v26   ;;  %2381 = vperm.xlu1 %5183, %v4401_v5   ;;  %v4419_v26 = vld [vmem:[%s7310_s5 + $0x128] sm:$0xff]  ;;  %v4420_v5 = vld [vmem:[%s7310_s5 + $0x130] sm:$0xff] }
 0xa79   :  { %2368 = vperm.xlu1 %5183, %v4399_v12   ;;  %v4421_v12 = vld [vmem:[%s7310_s5 + $0x138] sm:$0xff] }
 0xad1   :  { %v2283_v42 = vpop.permute.xlu0 %2282 }
 0xad2   :  { %v2304_v53 = vsel %vm127_vm1, %v2250_v33, %v2283_v42 }
 0xad5   :  { %v2285_v14 = vpop.permute.xlu1 %2284 }
 0xad6   :  { %v2305_v54 = vsel %vm127_vm1, %v2253_v51, %v2285_v14 }
 0xadb   :  { %v2291_v41 = vpop.permute.xlu0 %2290 }
 0xadc   :  { %v2306_v2 = vsel %vm133_vm3, %v2304_v53, %v2291_v41 }
 0xadf   :  { %v2299_v45 = vpop.permute.xlu0 %2298  ;;  %v2293_v1 = vpop.permute.xlu1 %2292 }
 0xae0   :  { %v2308_v15 = vsel %vm139_vm5, %v2306_v2, %v2299_v45  ;;  %v2307_v4 = vsel %vm133_vm3, %v2305_v54, %v2293_v1 }
 0xae1   :  { %v6535_v9 = vadd.f32 %v2308_v15, %v5881_v18  ;;  %v4407_v18 = vld [vmem:[%s7310_s5 + $0xc8] sm:$0xff] }
 0xae3   :  { %v2301_v44 = vpop.permute.xlu1 %2300 }
 0xae4   :  { %v2309_v16 = vsel %vm139_vm5, %v2307_v4, %v2301_v44 }
 0xae5   :  { %v6538_v57 = vadd.f32 %v2309_v16, %v5892_v59  ;;  %v4408_v59 = vld [vmem:[%s7310_s5 + $0xd0] sm:$0xff] }
 0xae7   :  { %v2312_v10 = vpack.c.bf16 %v6538_v57, %v6535_v9 }
 0xae9   :  { %2346 = vmatmul.mubr.bf16.vlgmr.msra.gmra.mxu0 %v2312_v10 }
 0xaea   :  { %4991 = vmatpush3.msra.mxu0 %v6376_v37  ;;  %4992 = vmatprep.mubr.msk.f32.mxu0 %vm633_vm7, %v4406_v11 }
 0xaeb   :  { %5072 = vmatprep.subr.mxu0 %v6376_v37 }
 0xaec   :  { %v2377_v23 = vpop.permute.xlu0 %2376 }
 0xaf0   :  { %v2382_v25 = vpop.permute.xlu1 %2381  ;;  %v2364_v45 = vpop.permute.xlu0 %2363 }
 0xaf1   :  { %4993 = vmatmul.mubr.msk.f32.vlgmr.msra.gmra.mxu0 %vm633_vm7, %v4407_v18  ;;  %v5450_v18 = vld [vmem:[%s7307_s2 + $0x70] sm:$0xff] }
 0xaf2   :  { %5073 = vmatpush3.msra.mxu0 %v6376_v37  ;;  %4995 = vmatprep.mubr.msk.f32.mxu0 %vm633_vm7, %v4408_v59  ;;  %v4402_v37 = vld [vmem:[%s7312_s7 + $0x10] sm:$0xff]  ;;  %v5451_v59 = vld [vmem:[%s7307_s2 + $0x68] sm:$0xff] }
 0xaf4   :  { %v2369_v41 = vpop.permute.xlu1 %2368 }
 0xaf5   :  { %4996 = vmatmul.mubr.msk.f32.gmra.mxu0 %vm633_vm7, %v4409_v55  ;;  %v5452_v55 = vld [vmem:[%s7307_s2 + $0x60] sm:$0xff] }
 0xaf6   :  { %4998 = vmatprep.mubr.msk.f32.mxu0 %vm633_vm7, %v4410_v28  ;;  %v4429_v28 = vld [vmem:[%s7310_s5 + $0x178] sm:$0xff] }
 0xaf9   :  { %4999 = vmatmul.mubr.msk.f32.gmra.mxu0 %vm633_vm7, %v4411_v31 }
 0xafa   :  { %5001 = vmatprep.mubr.msk.f32.mxu0 %vm633_vm7, %v4412_v38 }
 0xafd   :  { %5002 = vmatmul.mubr.msk.f32.gmra.mxu0 %vm633_vm7, %v4413_v36 }
 0xafe   :  { %5004 = vmatprep.mubr.msk.f32.mxu0 %vm633_vm7, %v4414_v35 }
 0xb01   :  { %5005 = vmatmul.mubr.msk.f32.gmra.mxu0 %vm633_vm7, %v4415_v19 }
 0xb02   :  { %5007 = vmatprep.mubr.msk.f32.mxu0 %vm633_vm7, %v4416_v32 }
 0xb05   :  { %5008 = vmatmul.mubr.msk.f32.gmra.mxu0 %vm633_vm7, %v4417_v34 }
 0xb06   :  { %5010 = vmatprep.mubr.msk.f32.mxu0 %vm633_vm7, %v4418_v39 }
 0xb09   :  { %5011 = vmatmul.mubr.msk.f32.gmra.mxu0 %vm633_vm7, %v4419_v26 }
 0xb0a   :  { %5013 = vmatprep.mubr.msk.f32.mxu0 %vm633_vm7, %v4420_v5 }
 0xb0d   :  { %5014 = vmatmul.mubr.msk.f32.gmra.mxu0 %vm633_vm7, %v4421_v12 }
 0xba9   :  { %v2347_v29 = vpop.f32.mrf.mxu0 }
 0xbab   :  { %v2349_v7 = vpop.f32.mrf.mxu0 }
 0xbac   :  { %v2356_v56 = vsub.f32 0.0, %v2349_v7 }
 0xbad   :  { %v2351_v63 = vpop.f32.mrf.mxu0 }
 0xbae   :  { %2417 = vmatprep.subr.mxu1 %v2351_v63 }
 0xbaf   :  { %v2353_v13 = vpop.f32.mrf.mxu0 }
 0xbb0   :  { %v2357_v17 = vsub.f32 0.0, %v2353_v13 }
 0xbb1   :  { %v4994_v31 = vpop.f32.mrf.mxu0 }
 0xbb2   :  { %2418 = vmatpush1.msra.mxu1 %v2357_v17  ;;  %v5457_v17 = vld [vmem:[%s7307_s2 + $0x38] sm:$0xff] }
 0xbb3   :  { %2419 = vmatprep.subr.mxu1 %v2347_v29  ;;  %v2682_v38 = vpop.f32.mrf.mxu0 }
 0xbb4   :  { %2420 = vmatpush1.msra.mxu1 %v2356_v56  ;;  %v5458_v56 = vld [vmem:[%s7307_s2 + $0x30] sm:$0xff] }
 0xbb5   :  { %2421 = vmatprep.subr.mxu1 %v2353_v13  ;;  %v5456_v13 = vld [vmem:[%s7307_s2 + $0x40] sm:$0xff]  ;;  %v4997_v36 = vpop.f32.mrf.mxu0 }
 0xbb6   :  { %2422 = vmatpush1.msra.mxu1 %v2351_v63  ;;  %v5455_v63 = vld [vmem:[%s7307_s2 + $0x48] sm:$0xff] }
 0xbb7   :  { %2423 = vmatprep.subr.mxu1 %v2349_v7  ;;  %v5454_v7 = vld [vmem:[%s7307_s2 + $0x50] sm:$0xff]  ;;  %v2692_v35 = vpop.f32.mrf.mxu0 }
 0xbb8   :  { %2424 = vmatpush1.msra.mxu1 %v2347_v29  ;;  %v5453_v29 = vld [vmem:[%s7307_s2 + $0x58] sm:$0xff] }
 0xbb9   :  { %4404 = vmatmul.mubr.msk.f32.vlgmr.msra.gmra.mxu1 %vm127_vm1, %v4402_v37  ;;  %4694 = vmatprep.subr.bf16.mxu1 %v5433_v58  ;;  %v5459_v37 = vld [vmem:[%s7307_s2 + $0x28] sm:$0xff]  ;;  %v5460_v58 = vld [vmem:[%s7307_s2 + $0x20] sm:$0xff]  ;;  %v5000_v19 = vpop.f32.mrf.mxu0 }
 0xbba   :  { %2463 = vmatprep.mubr.f32.mxu1 %v5495_v62  ;;  %4695 = vmatpush3.bf16.msra.mxu1 %v5434_v40  ;;  %v5436_v62 = vld [vmem:[%s7309_s4 + $0x30] sm:$0xff]  }
 0xbbb   :  { %4696 = vmatprep.subr.bf16.mxu1 %v5435_v52  ;;  %v5462_v40 = vld [vmem:[%s7307_s2 + $0x10] sm:$0xff]  ;;  %v5463_v52 = vld [vmem:[%s7307_s2 + $0x8] sm:$0xff]  ;;  %v2702_v32 = vpop.f32.mrf.mxu0 }
 0xbbd   :  { %4405 = vmatmul.mubr.msk.f32.gmra.mxu1 %vm127_vm1, %v4403_v43  ;;  %v5461_v43 = vld [vmem:[%s7307_s2 + $0x18] sm:$0xff]  ;;  %v5003_v34 = vpop.f32.mrf.mxu0 }
 0xbbe   :  { %4697 = vmatpush3.bf16.msra.mxu1 %v5436_v62  ;;  %v5464_v62 = vld [vmem:[%s7307_s2] sm:$0xff]  ;;  %s7331_s2 = smov 2  }
 0xbbf   :  { %4698 = vmatprep.subr.bf16.mxu1 %v5437_v49  ;;  %v2712_v39 = vpop.f32.mrf.mxu0 }
 0xbc1   :  { %v5006_v26 = vpop.f32.mrf.mxu0 }
 0xbc2   :  { %4699 = vmatpush3.bf16.msra.mxu1 %v5438_v47 }
 0xbc3   :  { %4700 = vmatprep.subr.bf16.mxu1 %v5439_v27  ;;  %v2722_v5 = vpop.f32.mrf.mxu0 }
 0xbc5   :  { %v5009_v12 = vpop.f32.mrf.mxu0 }
 0xbc6   :  { %4701 = vmatpush3.bf16.msra.mxu1 %v5440_v21 }
 0xbc7   :  { %4702 = vmatprep.subr.bf16.mxu1 %v5441_v22 }
 0xbca   :  { %4703 = vmatpush3.bf16.msra.mxu1 %v5442_v8 }
 0xbcb   :  { %4704 = vmatprep.subr.bf16.mxu1 %v5443_v3 }
 0xbce   :  { %4705 = vmatpush3.bf16.msra.mxu1 %v5444_v20 }
 0xbcf   :  { %4706 = vmatprep.subr.bf16.mxu1 %v5445_v24  ;;  %v4424_v24 = vld [vmem:[%s7310_s5 + $0x150] sm:$0xff] }
 0xbd2   :  { %4707 = vmatpush3.bf16.msra.mxu1 %v5446_v0  ;;  %v4425_v0 = vld [vmem:[%s7310_s5 + $0x158] sm:$0xff] }
 0xbd3   :  { %4708 = vmatprep.subr.bf16.mxu1 %v5447_v60  ;;  %v4426_v60 = vld [vmem:[%s7310_s5 + $0x160] sm:$0xff] }
 0xbd6   :  { %4709 = vmatpush3.bf16.msra.mxu1 %v5448_v46  ;;  %v4427_v46 = vld [vmem:[%s7310_s5 + $0x168] sm:$0xff] }
 0xbd7   :  { %5028 = vmatprep.subr.mxu1 %v5449_v30 }
 0xc79   :  { %v2459_v42 = vpop.f32.mrf.mxu1 }
 0xc7a   :  { %v2460_v53 = vadd.f32 %v2459_v42, %v2364_v45 }
 0xc7b   :  { %v2461_v14 = vpop.f32.mrf.mxu1 }
 0xc7c   :  { %v2462_v1 = vadd.f32 %v2461_v14, %v2377_v23  ;;  %v2470_v16 = vmax.f32 %v2460_v53, 0.0 }
 0xc7d   :  { %v2465_v33 = vpop.f32.mrf.mxu1 }
 0xc7e   :  { %v2466_v51 = vadd.f32 %v2465_v33, %v2369_v41  ;;  %v2471_v4 = vmax.f32 %v2462_v1, 0.0 }
 0xc7f   :  { %v2467_v2 = vpop.f32.mrf.mxu1 }
 0xc80   :  { %v2468_v54 = vadd.f32 %v2467_v2, %v2382_v25  ;;  %v2472_v15 = vmax.f32 %v2466_v51, 0.0  ;;  %v2732_v25 = vpop.f32.mrf.mxu0 }
 0xc82   :  { %v2473_v44 = vmax.f32 %v2468_v54, 0.0  ;;  %v2474_v11 = vpack.c.bf16 %v2472_v15, %v2470_v16  ;;  %v5012_v42 = vpop.f32.mrf.mxu0 }
 0xc84   :  { %v2475_v10 = vpack.c.bf16 %v2473_v44, %v2471_v4  ;;  %v2742_v1 = vpop.f32.mrf.mxu0 }
 0xc86   :  { %2508 = vmatprep.mubr.bf16.mxu1 %v2475_v10  ;;  %v5015_v4 = vpop.f32.mrf.mxu0 }
 0xc87   :  { %2509 = vmatmul.mubr.bf16.vlgmr.msra.gmra.mxu1 %v2474_v11 }
 0xc88   :  { %5029 = vmatpush3.msra.mxu1 %v5449_v30  ;;  %v4428_v30 = vld [vmem:[%s7310_s5 + $0x170] sm:$0xff] }
 0xc89   :  { %5030 = vmatprep.subr.mxu1 %v5450_v18 }
 0xc8a   :  { %5031 = vmatpush3.msra.mxu1 %v5450_v18 }
 0xc8b   :  { %5032 = vmatprep.subr.mxu1 %v5451_v59 }
 0xc8c   :  { %5033 = vmatpush3.msra.mxu1 %v5451_v59 }
 0xc8d   :  { %5034 = vmatprep.subr.mxu1 %v5452_v55 }
 0xc8e   :  { %5035 = vmatpush3.msra.mxu1 %v5452_v55 }
 0xc8f   :  { %5036 = vmatprep.subr.mxu1 %v5453_v29 }
 0xc90   :  { %5037 = vmatpush3.msra.mxu1 %v5453_v29 }
 0xc91   :  { %5038 = vmatprep.subr.mxu1 %v5454_v7 }
 0xc92   :  { %5039 = vmatpush3.msra.mxu1 %v5454_v7 }
 0xc93   :  { %5040 = vmatprep.subr.mxu1 %v5455_v63 }
 0xc94   :  { %5041 = vmatpush3.msra.mxu1 %v5455_v63 }
 0xc95   :  { %5042 = vmatprep.subr.mxu1 %v5456_v13 }
 0xc96   :  { %5043 = vmatpush3.msra.mxu1 %v5456_v13  ;;  %v2752_v13 = vpop.f32.mrf.mxu0 }
 0xc97   :  { %5044 = vmatprep.subr.mxu1 %v5457_v17 }
 0xc98   :  { %5045 = vmatpush3.msra.mxu1 %v5457_v17 }
 0xc99   :  { %5046 = vmatprep.subr.mxu1 %v5458_v56 }
 0xc9a   :  { %5047 = vmatpush3.msra.mxu1 %v5458_v56 }
 0xc9b   :  { %5048 = vmatprep.subr.mxu1 %v5459_v37 }
 0xc9c   :  { %5049 = vmatpush3.msra.mxu1 %v5459_v37 }
 0xc9d   :  { %5050 = vmatprep.subr.mxu1 %v5460_v58 }
 0xc9e   :  { %5051 = vmatpush3.msra.mxu1 %v5460_v58 }
 0xc9f   :  { %5052 = vmatprep.subr.mxu1 %v5461_v43 }
 0xca0   :  { %5053 = vmatpush3.msra.mxu1 %v5461_v43 }
 0xca1   :  { %5054 = vmatprep.subr.mxu1 %v5462_v40 }
 0xca2   :  { %5055 = vmatpush3.msra.mxu1 %v5462_v40 }
 0xca3   :  { %5056 = vmatprep.subr.mxu1 %v5463_v52 }
 0xca4   :  { %5057 = vmatpush3.msra.mxu1 %v5463_v52 }
 0xca5   :  { %5058 = vmatprep.subr.mxu1 %v5464_v62 }
 0xca6   :  { %5059 = vmatpush3.msra.mxu1 %v5464_v62 }
 0xd47   :  { %v4710_v49 = vpop.f32.mrf.mxu1 }
 0xd49   :  { %v4711_v47 = vpop.f32.mrf.mxu1 }
 0xd4a   :  { %v4712_v27 = vadd.f32 %v4711_v47, %v4710_v49 }
 0xd4b   :  { %v4713_v21 = vpop.f32.mrf.mxu1 }
 0xd4c   :  { %v6715_v22 = vadd.f32 %v4712_v27, %v6535_v9  ;;  %v4422_v9 = vld [vmem:[%s7310_s5 + $0x140] sm:$0xff] }
 0xd4d   :  { %v4714_v8 = vpop.f32.mrf.mxu1  ;;  %5016 = vmatprep.mubr.msk.f32.mxu0 %vm633_vm7, %v4422_v9 }
 0xd4e   :  { %v4715_v3 = vadd.f32 %v4714_v8, %v4713_v21  ;;  %2805 = vrot.lane.b32.xlu0 %v6715_v22, %s5496_s27  ;;  %v2801_v15 = vmul.f32 %v2702_v32, %v6715_v22  ;;  %v2803_v27 = vmul.f32 %v2742_v1, %v6715_v22 }
 0xd50   :  { %v6720_v20 = vadd.f32 %v4715_v3, %v6538_v57  ;;  %v4423_v57 = vld [vmem:[%s7310_s5 + $0x148] sm:$0xff] }
 0xd51   :  { %5017 = vmatmul.mubr.msk.f32.gmra.mxu0 %vm633_vm7, %v4423_v57 }
 0xd52   :  { %2807 = vrot.lane.b32.xlu1 %v6720_v20, %s5496_s27  ;;  %2815 = vrot.lane.b32.xlu0 %v6715_v22, %s5497_s17  ;;  %v2802_v59 = vmul.f32 %v5000_v19, %v6720_v20  ;;  %v2804_v57 = vmul.f32 %v5012_v42, %v6720_v20 }
 0xd53   :  { %5019 = vmatprep.mubr.msk.f32.mxu0 %vm633_vm7, %v4424_v24 }
 0xd55   :  { %5020 = vmatmul.mubr.msk.f32.gmra.mxu0 %vm633_vm7, %v4425_v0 }
 0xd56   :  { %2817 = vrot.lane.b32.xlu1 %v6720_v20, %s5497_s17  ;;  %2829 = vrot.lane.b32.xlu0 %v6715_v22, %s5498_s28 }
 0xd57   :  { %5022 = vmatprep.mubr.msk.f32.mxu0 %vm633_vm7, %v4426_v60 }
 0xd59   :  { %5023 = vmatmul.mubr.msk.f32.gmra.mxu0 %vm633_vm7, %v4427_v46 }
 0xd5a   :  { %2831 = vrot.lane.b32.xlu1 %v6720_v20, %s5498_s28  ;;  %2843 = vrot.lane.b32.xlu0 %v6715_v22, %s7331_s2 }
 0xd5b   :  { %5025 = vmatprep.mubr.msk.f32.mxu0 %vm633_vm7, %v4428_v30 }
 0xd5d   :  { %5026 = vmatmul.mubr.msk.f32.gmra.mxu0 %vm633_vm7, %v4429_v28 }
 0xd5e   :  { %2845 = vrot.lane.b32.xlu1 %v6720_v20, %s7331_s2 }
 0xdc0   :  { %v2806_v23 = vpop.permute.xlu0 %2805 }
 0xdc1   :  { %v2809_v14 = vmul.f32 %v5952_v48, %v2806_v23 }
 0xdc3   :  { %v2811_v51 = vmul.f32 %v2809_v14, %v2722_v5 }
 0xdc4   :  { %v2808_v41 = vpop.permute.xlu1 %2807  ;;  %v2816_v33 = vpop.permute.xlu0 %2815 }
 0xdc5   :  { %v2819_v45 = vmul.f32 %v5955_v50, %v2816_v33  ;;  %v2810_v53 = vmul.f32 %v5952_v48, %v2808_v41  ;;  %v2813_v11 = vadd.f32 %v2811_v51, %v2801_v15 }
 0xdc7   :  { %v2821_v44 = vmul.f32 %v2819_v45, %v2712_v39  ;;  %v2812_v18 = vmul.f32 %v5006_v26, %v2810_v53  ;;  %v2825_v40 = vmul.f32 %v2819_v45, %v2752_v13 }
 0xdc8   :  { %v2818_v2 = vpop.permute.xlu1 %2817  ;;  %v2830_v54 = vpop.permute.xlu0 %2829 }
 0xdc9   :  { %v2820_v16 = vmul.f32 %v5955_v50, %v2818_v2  ;;  %v2833_v10 = vmul.f32 %v5961_v61, %v2830_v54  ;;  %v2823_v63 = vadd.f32 %v2821_v44, %v2813_v11  ;;  %v2814_v37 = vadd.f32 %v2812_v18, %v2802_v59 }
 0xdcb   :  { %v2835_v55 = vmul.f32 %v2833_v10, %v2692_v35  ;;  %v2822_v48 = vmul.f32 %v5003_v34, %v2820_v16  ;;  %v2839_v21 = vmul.f32 %v2833_v10, %v2732_v25  ;;  %v2826_v8 = vmul.f32 %v5015_v4, %v2820_v16 }
 0xdcc   :  { %v2832_v29 = vpop.permute.xlu1 %2831  ;;  %v2844_v7 = vpop.permute.xlu0 %2843 }
 0xdcd   :  { %v2834_v17 = vmul.f32 %v5961_v61, %v2832_v29  ;;  %v2847_v56 = vmul.f32 %v5967_v6, %v2844_v7  ;;  %v2837_v58 = vadd.f32 %v2835_v55, %v2823_v63  ;;  %v2824_v62 = vadd.f32 %v2822_v48, %v2814_v37 }
 0xdce   :  { %v2827_v61 = vadd.f32 %v2825_v40, %v2803_v27  ;;  %v2828_v46 = vadd.f32 %v2826_v8, %v2804_v57 }
 0xdcf   :  { %v2836_v43 = vmul.f32 %v4997_v36, %v2834_v17  ;;  %v2849_v50 = vmul.f32 %v2847_v56, %v2682_v38  ;;  %v2840_v24 = vmul.f32 %v5009_v12, %v2834_v17 }
 0xdd0   :  { %v2846_v52 = vpop.permute.xlu1 %2845  ;;  %v6785_v60 = vadd.f32 %v2839_v21, %v2827_v61 }
 0xdd1   :  { %v2848_v49 = vmul.f32 %v5967_v6, %v2846_v52  ;;  %v6778_v47 = vadd.f32 %v2849_v50, %v2837_v58  ;;  %v2838_v3 = vadd.f32 %v2836_v43, %v2824_v62  ;;  %v6789_v6 = vadd.f32 %v2840_v24, %v2828_v46 }
 0xdd3   :  { %v2850_v9 = vmul.f32 %v4994_v31, %v2848_v49  ;;  %5060 = vmatprep.mubr.f32.mxu1 %v6778_v47  ;;  %v2853_v30 = vmul.f32 %v6778_v47, %v6778_v47  ;;  %v2855_v31 = vmul.f32 %v6785_v60, %v6785_v60  ;;  %v2856_v38 = vmul.f32 %v6789_v6, %v6789_v6 }
 0xdd5   :  { %v6783_v0 = vadd.f32 %v2850_v9, %v2838_v3 }
 0xdd7   :  { %5061 = vmatmul.mubr.f32.vlgmr.msra.gmra.mxu1 %v6783_v0  ;;  %v2854_v28 = vmul.f32 %v6783_v0, %v6783_v0 }
 0xdd8   :  { %5063 = vmatprep.mubr.f32.mxu1 %v6785_v60 }
 0xddb   :  { %5064 = vmatmul.mubr.f32.gmra.mxu1 %v6789_v6 }
 0xddc   :  { %5066 = vmatprep.mubr.f32.mxu1 %v2853_v30 }
 0xddf   :  { %5067 = vmatmul.mubr.f32.gmra.mxu1 %v2854_v28 }
 0xde0   :  { %5069 = vmatprep.mubr.f32.mxu1 %v2855_v31 }
 0xde3   :  { %5070 = vmatmul.mubr.f32.gmra.mxu1 %v2856_v38 }
 0xe11   :  { %v5018_v12 = vpop.f32.mrf.mxu0 }
 0xe13   :  { %v2762_v25 = vpop.f32.mrf.mxu0 }
 0xe15   :  { %v5021_v23 = vpop.f32.mrf.mxu0 }
 0xe17   :  { %v2772_v42 = vpop.f32.mrf.mxu0 }
 0xe19   :  { %v5024_v14 = vpop.f32.mrf.mxu0 }
 0xe1b   :  { %v2782_v41 = vpop.f32.mrf.mxu0 }
 0xe1d   :  { %v5027_v33 = vpop.f32.mrf.mxu0 }
 0xe1f   :  { %v2792_v45 = vpop.f32.mrf.mxu0 }
 0xe97   :  { %v5062_v36 = vpop.f32.mrf.mxu1 }
 0xe99   :  { %v2923_v35 = vpop.f32.mrf.mxu1 }
 0xe9a   :  { %5074 = vmatprep.mubr.msk.f32.mxu0 %vm633_vm7, %v2923_v35 }
 0xe9b   :  { %v5065_v19 = vpop.f32.mrf.mxu1  ;;  %5075 = vmatmul.mubr.msk.f32.vlgmr.msra.gmra.mxu0 %vm633_vm7, %v5062_v36 }
 0xe9d   :  { %v2933_v32 = vpop.f32.mrf.mxu1 }
 0xe9e   :  { %5077 = vmatprep.mubr.msk.f32.mxu0 %vm633_vm7, %v2933_v32 }
 0xe9f   :  { %v5068_v34 = vpop.f32.mrf.mxu1  ;;  %5078 = vmatmul.mubr.msk.f32.gmra.mxu0 %vm633_vm7, %v5065_v19 }
 0xea1   :  { %v2943_v39 = vpop.f32.mrf.mxu1 }
 0xea2   :  { %5080 = vmatprep.mubr.msk.f32.mxu0 %vm633_vm7, %v2943_v39 }
 0xea3   :  { %v5071_v26 = vpop.f32.mrf.mxu1  ;;  %5081 = vmatmul.mubr.msk.f32.gmra.mxu0 %vm633_vm7, %v5068_v34 }
 0xea5   :  { %v2953_v5 = vpop.f32.mrf.mxu1 }
 0xea6   :  { %5083 = vmatprep.mubr.msk.f32.mxu0 %vm633_vm7, %v2953_v5 }
 0xea7   :  { %5084 = vmatmul.mubr.msk.f32.gmra.mxu0 %vm633_vm7, %v5071_v26 }
 0xf5b   :  { %v5076_v1 = vpop.f32.mrf.mxu0 }
 0xf5c   :  { %v3092_v2 = vmul.f32 0.03125, %v5076_v1 }
 0xf5d   :  { %v3052_v51 = vpop.f32.mrf.mxu0 }
 0xf5e   :  { %v3091_v15 = vmul.f32 0.03125, %v3052_v51  ;;  %v3100_v44 = vmul.f32 %v3092_v2, %v3092_v2  ;;  %v3108_v8 = vsub.f32 %v6783_v0, %v3092_v2  ;;  %v4462_v2 = vld [vmem:[%s7311_s6 + $0x20] sm:$0xff] }
 0xf5f   :  { %v5079_v53 = vpop.f32.mrf.mxu0 }
 0xf60   :  { %v3094_v16 = vmul.f32 0.03125, %v5079_v53  ;;  %v3099_v59 = vmul.f32 %v3091_v15, %v3091_v15  ;;  %v3107_v61 = vsub.f32 %v6778_v47, %v3091_v15  ;;  %v4464_v47 = vld [vmem:[%s7311_s6 + $0x30] sm:$0xff] }
 0xf61   :  { %v3062_v54 = vpop.f32.mrf.mxu0 }
 0xf62   :  { %v3093_v11 = vmul.f32 0.03125, %v3062_v54  ;;  %v3102_v63 = vmul.f32 %v3094_v16, %v3094_v16  ;;  %v3110_v57 = vsub.f32 %v6789_v6, %v3094_v16  ;;  %v4465_v16 = vld [vmem:[%s7311_s6 + $0x38] sm:$0xff] }
 0xf63   :  { %v5082_v4 = vpop.f32.mrf.mxu0 }
 0xf64   :  { %v3096_v10 = vmul.f32 0.03125, %v5082_v4  ;;  %v3101_v56 = vmul.f32 %v3093_v11, %v3093_v11  ;;  %v3109_v28 = vsub.f32 %v6785_v60, %v3093_v11  ;;  %v4463_v4 = vld [vmem:[%s7311_s6 + $0x28] sm:$0xff] }
 0xf65   :  { %v3072_v18 = vpop.f32.mrf.mxu0 }
 0xf66   :  { %v3104_v55 = vsub.f32 %v3096_v10, %v3100_v44  ;;  %v3095_v29 = vmul.f32 0.03125, %v3072_v18 }
 0xf67   :  { %v5085_v7 = vpop.f32.mrf.mxu0 }
 0xf68   :  { %v3112_v13 = vadd.f32 1e-05, %v3104_v55  ;;  %v3103_v48 = vsub.f32 %v3095_v29, %v3099_v59  ;;  %v3098_v17 = vmul.f32 0.03125, %v5085_v7 }
 0xf69   :  { %v3082_v37 = vpop.f32.mrf.mxu0 }
 0xf6a   :  { %5340 = vrsqrt.f32 %v3112_v13  ;;  %v3111_v58 = vadd.f32 1e-05, %v3103_v48  ;;  %v3106_v43 = vsub.f32 %v3098_v17, %v3102_v63  ;;  %v3097_v50 = vmul.f32 0.03125, %v3082_v37  ;;  %v5244_v17 = vld [vmem:[%s7314_s9 + $0x40] sm:$0xff]  }
 0xf6b   :  { %5094 = vmatprep.mubr.msk.bf16.mxu1 %vm133_vm3, %v5244_v17  ;;  %v4494_v37 = vld [vmem:[%s7315_s10 + $0xe0] sm:$0xff] }
 0xf6c   :  { %5342 = vrsqrt.f32 %v3111_v58  ;;  %v3114_v40 = vadd.f32 1e-05, %v3106_v43  ;;  %v3105_v52 = vsub.f32 %v3097_v50, %v3101_v56  ;;  %v4496_v56 = vld [vmem:[%s7315_s10 + $0xf0] sm:$0xff]  ;;  %v4497_v58 = vld [vmem:[%s7315_s10 + $0xf8] sm:$0xff]  ;;  %v4495_v50 = vld [vmem:[%s7315_s10 + $0xe8] sm:$0xff] }
 0xf6d   :  { %v4492_v43 = vld [vmem:[%s7315_s10 + $0xd0] sm:$0xff] }
 0xf6e   :  { %5344 = vrsqrt.f32 %v3114_v40  ;;  %v3113_v62 = vadd.f32 1e-05, %v3105_v52  ;;  %v4490_v40 = vld [vmem:[%s7315_s10 + $0xc0] sm:$0xff]  ;;  %v4493_v52 = vld [vmem:[%s7315_s10 + $0xd8] sm:$0xff] }
 0xf70   :  { %5346 = vrsqrt.f32 %v3113_v62  ;;  %v4488_v62 = vld [vmem:[%s7315_s10 + $0xb0] sm:$0xff] }
 0xf77   :  { %v5341_v49 = vpop.eup %5340 }
 0xf78   :  { %v3120_v27 = vmul.f32 %v5341_v49, %v5018_v12  ;;  %v4491_v49 = vld [vmem:[%s7315_s10 + $0xc8] sm:$0xff] }
 0xf79   :  { %v5343_v21 = vpop.eup %5342 }
 0xf7a   :  { %v3119_v3 = vmul.f32 %v5343_v21, %v2762_v25  ;;  %v3124_v46 = vmul.f32 %v3120_v27, %v3108_v8  ;;  %v4486_v27 = vld [vmem:[%s7315_s10 + $0xa0] sm:$0xff]  ;;  %v4489_v21 = vld [vmem:[%s7315_s10 + $0xb8] sm:$0xff]  ;;  %v4484_v8 = vld [vmem:[%s7315_s10 + $0x90] sm:$0xff] }
 0xf7b   :  { %v5345_v9 = vpop.eup %5344 }
 0xf7c   :  { %v3122_v24 = vmul.f32 %v5345_v9, %v5021_v23  ;;  %v3123_v36 = vmul.f32 %v3119_v3, %v3107_v61  ;;  %v3128_v35 = vadd.f32 %v5024_v14, %v3124_v46  ;;  %v4487_v3 = vld [vmem:[%s7315_s10 + $0xa8] sm:$0xff]  ;;  %v4482_v9 = vld [vmem:[%s7315_s10 + $0x80] sm:$0xff]  ;;  %v4485_v61 = vld [vmem:[%s7315_s10 + $0x98] sm:$0xff] }
 0xf7d   :  { %v5347_v30 = vpop.eup %5346  ;;  %v4542_v46 = vld [vmem:[%s7317_s12 + $0xe0] sm:$0xff] }
 0xf7e   :  { %v3126_v31 = vmul.f32 %v3122_v24, %v3110_v57  ;;  %v3121_v38 = vmul.f32 %v5347_v30, %v2772_v42  ;;  %v3127_v39 = vadd.f32 %v3123_v36, %v2782_v41  ;;  %v4544_v57 = vld [vmem:[%s7317_s12 + $0xf0] sm:$0xff]  ;;  %v4483_v24 = vld [vmem:[%s7315_s10 + $0x88] sm:$0xff]  ;;  %v4545_v30 = vld [vmem:[%s7317_s12 + $0xf8] sm:$0xff] }
 0xf7f   :  { %v4541_v36 = vld [vmem:[%s7317_s12 + $0xd8] sm:$0xff] }
 0xf80   :  { %v3130_v19 = vadd.f32 %v5027_v33, %v3126_v31  ;;  %v3125_v32 = vmul.f32 %v3121_v38, %v3109_v28  ;;  %v4540_v28 = vld [vmem:[%s7317_s12 + $0xd0] sm:$0xff]  ;;  %v4543_v31 = vld [vmem:[%s7317_s12 + $0xe8] sm:$0xff]  ;;  %v4538_v38 = vld [vmem:[%s7317_s12 + $0xc0] sm:$0xff] }
 0xf82   :  { %v3132_v34 = vadd.f32 %v3130_v19, %v3128_v35  ;;  %v3129_v0 = vadd.f32 %v3125_v32, %v2792_v45  ;;  %v4536_v35 = vld [vmem:[%s7317_s12 + $0xb0] sm:$0xff]  ;;  %v4539_v19 = vld [vmem:[%s7317_s12 + $0xc8] sm:$0xff]  ;;  %v4534_v32 = vld [vmem:[%s7317_s12 + $0xa0] sm:$0xff] }
 0xf84   :  { %3135 = vadd.xlane.f32.xlu1 %v3132_v34  ;;  %v3131_v26 = vadd.f32 %v3129_v0, %v3127_v39  ;;  %v4532_v39 = vld [vmem:[%s7317_s12 + $0x90] sm:$0xff]  ;;  %v4535_v0 = vld [vmem:[%s7317_s12 + $0xa8] sm:$0xff] }
 0xf86   :  { %3133 = vadd.xlane.f32.xlu0 %v3131_v26 }
 0xf95   :  { %3175 = vperm.xlu1 %5183, %v4464_v47   ;;  %v4533_v47 = vld [vmem:[%s7317_s12 + $0x98] sm:$0xff] }
0x100d   :  { %v3136_v6 = vpop.xlane.xlu1 %3135 }
0x100e   :  { %v3138_v60 = vmul.f32 0.0078125, %v3136_v6  ;;  %v4564_v6 = vld [vmem:[%s7319_s14 + $0x50] sm:$0xff] }
0x100f   :  { %v3134_v5 = vpop.xlane.xlu0 %3133 }
0x1010   :  { %v3137_v12 = vmul.f32 0.0078125, %v3134_v5  ;;  %v3140_v23 = vsub.f32 %v3132_v34, %v3138_v60  ;;  %v4537_v34 = vld [vmem:[%s7317_s12 + $0xb8] sm:$0xff]  ;;  %v4531_v5 = vld [vmem:[%s7317_s12 + $0x88] sm:$0xff]  ;;  %v4566_v60 = vld [vmem:[%s7319_s14 + $0x60] sm:$0xff] }
0x1011   :  { %v3176_v11 = vpop.permute.xlu1 %3175 }
0x1012   :  { %v3139_v25 = vsub.f32 %v3131_v26, %v3137_v12  ;;  %v3142_v14 = vmul.f32 %v3140_v23, %v3140_v23  ;;  %v4530_v26 = vld [vmem:[%s7317_s12 + $0x80] sm:$0xff]  ;;  %v4565_v12 = vld [vmem:[%s7319_s14 + $0x58] sm:$0xff] }
0x1014   :  { %v3141_v42 = vmul.f32 %v3139_v25, %v3139_v25 }
0x1016   :  { %3143 = vadd.xlane.f32.xlu0 %v3141_v42  ;;  %v4562_v42 = vld [vmem:[%s7319_s14 + $0x40] sm:$0xff] }
0x101a   :  { %3145 = vadd.xlane.f32.xlu0 %v3142_v14  ;;  %v4569_v14 = vld [vmem:[%s7319_s14 + $0x78] sm:$0xff] }
0x109f   :  { %v3144_v41 = vpop.xlane.xlu0 %3143 }
0x10a0   :  { %v3147_v33 = vmul.f32 0.0078125, %v3144_v41  ;;  %v4563_v41 = vld [vmem:[%s7319_s14 + $0x48] sm:$0xff] }
0x10a2   :  { %v3152_v45 = vadd.f32 1e-05, %v3147_v33 }
0x10a3   :  { %v3146_v1 = vpop.xlane.xlu0 %3145 }
0x10a4   :  { %5348 = vrsqrt.f32 %v3152_v45  ;;  %v3148_v51 = vmul.f32 0.0078125, %v3146_v1 }
0x10a6   :  { %v3153_v53 = vadd.f32 1e-05, %v3148_v51  ;;  %v5245_v51 = vld [vmem:[%s7314_s9 + $0x48] sm:$0xff]  }
0x10a8   :  { %5350 = vrsqrt.f32 %v3153_v53  ;;  %v5246_v53 = vld [vmem:[%s7314_s9 + $0x50] sm:$0xff]  }
0x10b1   :  { %v5349_v54 = vpop.eup %5348 }
0x10b2   :  { %v3156_v15 = vmul.f32 %v5349_v54, %v4462_v2  ;;  %v5247_v2 = vld [vmem:[%s7314_s9 + $0x58] sm:$0xff]   ;;  %v5248_v54 = vld [vmem:[%s7314_s9 + $0x60] sm:$0xff]  }
0x10b4   :  { %3160 = vperm.xlu1 %5183, %v3156_v15   ;;  %v5249_v15 = vld [vmem:[%s7314_s9 + $0x68] sm:$0xff]  }
0x10b5   :  { %v5351_v44 = vpop.eup %5350 }
0x10b6   :  { %v3157_v10 = vmul.f32 %v5351_v44, %v4463_v4  ;;  %v5250_v4 = vld [vmem:[%s7314_s9 + $0x70] sm:$0xff]   ;;  %v5251_v44 = vld [vmem:[%s7314_s9 + $0x78] sm:$0xff]  }
0x10b8   :  { %3180 = vperm.xlu1 %5183, %v4465_v16   ;;  %3165 = vperm.xlu0 %5182, %v3157_v10   ;;  %v5252_v16 = vld [vmem:[%s7316_s11 + $0x40] sm:$0xff]  }
0x10b9   :  { %5126 = vmatprep.mubr.bf16.mxu0 %v5252_v16 }
0x112f   :  { %v3161_v18 = vpop.permute.xlu1 %3160 }
0x1130   :  { %v3168_v59 = vmul.f32 %v3161_v18, %v3139_v25  ;;  %v4568_v25 = vld [vmem:[%s7319_s14 + $0x70] sm:$0xff] }
0x1132   :  { %v3183_v63 = vadd.f32 %v3176_v11, %v3168_v59 }
0x1133   :  { %v3166_v55 = vpop.permute.xlu0 %3165  ;;  %v3181_v7 = vpop.permute.xlu1 %3180 }
0x1134   :  { %v3169_v29 = vmul.f32 %v3166_v55, %v3140_v23  ;;  %v4567_v23 = vld [vmem:[%s7319_s14 + $0x68] sm:$0xff] }
0x1136   :  { %v3184_v13 = vadd.f32 %v3181_v7, %v3169_v29 }
0x1138   :  { %v6824_v48 = vpack.c.bf16 %v3184_v13, %v3183_v63 }
0x113a   :  { %3190 = vrot.lane.b32.xlu1 %v6824_v48, %s5490_s21  ;;  %3193 = vrot.lane.b32.xlu0 %v6824_v48, %s5488_s23 }
0x113e   :  { %3302 = vperm.xlu1 %5183, %v4496_v56   ;;  %3187 = vrot.lane.b32.xlu0 %v6824_v48, %s5493_s20 }
0x1142   :  { %3292 = vperm.xlu1 %5183, %v4494_v37   ;;  %3307 = vperm.xlu0 %5182, %v4497_v58  }
0x1146   :  { %3282 = vperm.xlu1 %5183, %v4492_v43   ;;  %3297 = vperm.xlu0 %5182, %v4495_v50  }
0x114a   :  { %3272 = vperm.xlu1 %5183, %v4490_v40   ;;  %3287 = vperm.xlu0 %5182, %v4493_v52  }
0x114e   :  { %3262 = vperm.xlu1 %5183, %v4488_v62   ;;  %3277 = vperm.xlu0 %5182, %v4491_v49  }
0x1152   :  { %3252 = vperm.xlu1 %5183, %v4486_v27   ;;  %3267 = vperm.xlu0 %5182, %v4489_v21  }
0x1156   :  { %3242 = vperm.xlu1 %5183, %v4484_v8   ;;  %3257 = vperm.xlu0 %5182, %v4487_v3  }
0x115a   :  { %3232 = vperm.xlu1 %5183, %v4482_v9   ;;  %3247 = vperm.xlu0 %5182, %v4485_v61  }
0x115e   :  { %3729 = vperm.xlu1 %5183, %v4544_v57   ;;  %3237 = vperm.xlu0 %5182, %v4483_v24  }
0x1162   :  { %3719 = vperm.xlu1 %5183, %v4542_v46   ;;  %3734 = vperm.xlu0 %5182, %v4545_v30  }
0x1166   :  { %3709 = vperm.xlu1 %5183, %v4540_v28   ;;  %3724 = vperm.xlu0 %5182, %v4543_v31  }
0x116a   :  { %3699 = vperm.xlu1 %5183, %v4538_v38   ;;  %3714 = vperm.xlu0 %5182, %v4541_v36  }
0x116e   :  { %3689 = vperm.xlu1 %5183, %v4536_v35   ;;  %3704 = vperm.xlu0 %5182, %v4539_v19  }
0x1172   :  { %3679 = vperm.xlu1 %5183, %v4534_v32   ;;  %3694 = vperm.xlu0 %5182, %v4537_v34  }
0x1176   :  { %3669 = vperm.xlu1 %5183, %v4532_v39   ;;  %3684 = vperm.xlu0 %5182, %v4535_v0  }
0x117a   :  { %3659 = vperm.xlu1 %5183, %v4530_v26   ;;  %3674 = vperm.xlu0 %5182, %v4533_v47  }
0x117e   :  { %4064 = vperm.xlu1 %5183, %v4564_v6   ;;  %3664 = vperm.xlu0 %5182, %v4531_v5  }
0x1182   :  { %4074 = vperm.xlu1 %5183, %v4566_v60   ;;  %4069 = vperm.xlu0 %5182, %v4565_v12  }
0x1186   :  { %4084 = vperm.xlu1 %5183, %v4568_v25   ;;  %4079 = vperm.xlu0 %5182, %v4567_v23  }
0x118a   :  { %4054 = vperm.xlu1 %5183, %v4562_v42   ;;  %4089 = vperm.xlu0 %5182, %v4569_v14  }
0x118e   :  { %4059 = vperm.xlu0 %5182, %v4563_v41  }
0x11ac   :  { %v3194_v33 = vpop.permute.xlu0 %3193  ;;  %v3191_v45 = vpop.permute.xlu1 %3190 }
0x11ad   :  { %5086 = vmatprep.subr.bf16.mxu1 %v3194_v33 }
0x11ae   :  { %5087 = vmatpush3.bf16.msra.mxu1 %v3194_v33 }
0x11af   :  { %5088 = vmatprep.subr.bf16.mxu1 %v3191_v45 }
0x11b0   :  { %v3188_v1 = vpop.permute.xlu0 %3187 }
0x11b2   :  { %5089 = vmatpush3.bf16.msra.mxu1 %v3191_v45 }
0x11b3   :  { %5090 = vmatprep.subr.bf16.mxu1 %v3188_v1 }
0x11b6   :  { %5091 = vmatpush3.bf16.msra.mxu1 %v3188_v1 }
0x11b7   :  { %5092 = vmatprep.subr.bf16.mxu1 %v6824_v48 }
0x11b9   :  { %v3303_v10 = vpop.permute.xlu1 %3302 }
0x11ba   :  { %5093 = vmatpush3.bf16.msra.mxu1 %v6824_v48 }
0x11bd   :  { %5095 = vmatmul.mubr.msk.bf16.vlgmr.msra.gmra.mxu1 %vm133_vm3, %v5245_v51  ;;  %v3308_v11 = vpop.permute.xlu0 %3307  ;;  %v3293_v18 = vpop.permute.xlu1 %3292 }
0x11be   :  { %5098 = vmatprep.mubr.msk.bf16.mxu1 %vm133_vm3, %v5246_v53 }
0x11c1   :  { %v3298_v59 = vpop.permute.xlu0 %3297  ;;  %v3283_v55 = vpop.permute.xlu1 %3282 }
0x11c5   :  { %5099 = vmatmul.mubr.msk.bf16.gmra.mxu1 %vm133_vm3, %v5247_v2  ;;  %v3288_v29 = vpop.permute.xlu0 %3287  ;;  %v3273_v13 = vpop.permute.xlu1 %3272 }
0x11c6   :  { %5102 = vmatprep.mubr.msk.bf16.mxu1 %vm133_vm3, %v5248_v54 }
0x11c9   :  { %v3278_v48 = vpop.permute.xlu0 %3277  ;;  %v3263_v58 = vpop.permute.xlu1 %3262 }
0x11cd   :  { %5103 = vmatmul.mubr.msk.bf16.gmra.mxu1 %vm133_vm3, %v5249_v15  ;;  %v3268_v43 = vpop.permute.xlu0 %3267  ;;  %v3253_v62 = vpop.permute.xlu1 %3252 }
0x11ce   :  { %5106 = vmatprep.mubr.msk.bf16.mxu1 %vm133_vm3, %v5250_v4 }
0x11d1   :  { %v3258_v49 = vpop.permute.xlu0 %3257  ;;  %v3243_v9 = vpop.permute.xlu1 %3242 }
0x11d5   :  { %5107 = vmatmul.mubr.msk.bf16.gmra.mxu1 %vm133_vm3, %v5251_v44  ;;  %v3248_v57 = vpop.permute.xlu0 %3247 }
0x11d9   :  { %v3238_v23 = vpop.permute.xlu0 %3237 }
0x127d   :  { %v5096_v7 = vpop.f32.mrf.mxu1 }
0x127e   :  { %v6998_v28 = vadd.f32 %v5096_v7, %v3243_v9 }
0x127f   :  { %v6989_v63 = vpop.f32.mrf.mxu1 }
0x1280   :  { %v7016_v5 = vmul.f32 0.044715, %v6998_v28 }
0x1281   :  { %v5097_v17 = vpop.f32.mrf.mxu1 }
0x1282   :  { %v7000_v31 = vadd.f32 %v5097_v17, %v3248_v57 }
0x1283   :  { %v3411_v56 = vpop.f32.mrf.mxu1 }
0x1284   :  { %v3490_v60 = vmul.f32 0.044715, %v7000_v31  ;;  %v7027_v1 = vadd.f32 %v3411_v56, %v3238_v23 }
0x1285   :  { %v5100_v37 = vpop.f32.mrf.mxu1 }
0x1286   :  { %v7011_v0 = vadd.f32 %v5100_v37, %v3263_v58 }
0x1287   :  { %v3424_v50 = vpop.f32.mrf.mxu1 }
0x1288   :  { %v3493_v54 = vmul.f32 0.044715, %v7011_v0  ;;  %v7034_v15 = vadd.f32 %v3424_v50, %v3253_v62 }
0x1289   :  { %v5101_v40 = vpop.f32.mrf.mxu1 }
0x128a   :  { %v7005_v35 = vadd.f32 %v5101_v40, %v3268_v43  ;;  %v3509_v43 = vmul.f32 %v3493_v54, %v7011_v0 }
0x128b   :  { %v3427_v52 = vpop.f32.mrf.mxu1 }
0x128c   :  { %v3494_v42 = vmul.f32 0.044715, %v7005_v35  ;;  %v7023_v14 = vadd.f32 %v3427_v52, %v3258_v49 }
0x128d   :  { %v5104_v27 = vpop.f32.mrf.mxu1 }
0x128e   :  { %v6991_v21 = vadd.f32 %v5104_v27, %v3283_v55  ;;  %v3492_v7 = vmul.f32 0.044715, %v7023_v14 }
0x128f   :  { %v3440_v8 = vpop.f32.mrf.mxu1 }
0x1290   :  { %v3497_v24 = vmul.f32 0.044715, %v6991_v21  ;;  %v6996_v46 = vadd.f32 %v3440_v8, %v3273_v13 }
0x1291   :  { %v5105_v3 = vpop.f32.mrf.mxu1 }
0x1292   :  { %v6993_v61 = vadd.f32 %v5105_v3, %v3288_v29  ;;  %v3513_v26 = vmul.f32 %v3497_v24, %v6991_v21  ;;  %v3495_v47 = vmul.f32 0.044715, %v6996_v46  ;;  %v3508_v3 = vmul.f32 %v3492_v7, %v7023_v14  ;;  %v3233_v24 = vpop.permute.xlu1 %3232 }
0x1293   :  { %v3443_v30 = vpop.f32.mrf.mxu1 }
0x1294   :  { %v3498_v38 = vmul.f32 0.044715, %v6993_v61  ;;  %v7003_v36 = vadd.f32 %v3443_v30, %v3278_v48  ;;  %v3529_v4 = vmul.f32 %v3513_v26, %v6991_v21  ;;  %v3511_v44 = vmul.f32 %v3495_v47, %v6996_v46 }
0x1295   :  { %v5108_v19 = vpop.f32.mrf.mxu1 }
0x1296   :  { %v3514_v32 = vmul.f32 %v3498_v38, %v6993_v61  ;;  %v3496_v34 = vmul.f32 0.044715, %v7003_v36  ;;  %v7009_v39 = vadd.f32 %v5108_v19, %v3303_v10  ;;  %v3527_v50 = vmul.f32 %v3511_v44, %v6996_v46 }
0x1297   :  { %v3456_v6 = vpop.f32.mrf.mxu1  ;;  %v3545_v40 = vadd.f32 %v3529_v4, %v6991_v21 }
0x1298   :  { %v3501_v12 = vmul.f32 0.044715, %v7009_v39  ;;  %v7020_v25 = vadd.f32 %v3456_v6, %v3293_v18  ;;  %v3530_v41 = vmul.f32 %v3514_v32, %v6993_v61  ;;  %v3512_v33 = vmul.f32 %v3496_v34, %v7003_v36 }
0x1299   :  { %v5109_v45 = vpop.f32.mrf.mxu1  ;;  %v7064_v32 = vadd.f32 %v6989_v63, %v3233_v24  ;;  %v3525_v34 = vmul.f32 %v3509_v43, %v7011_v0  ;;  %v3561_v47 = vmul.f32 0.7978846, %v3545_v40  ;;  %v3543_v23 = vadd.f32 %v3527_v50, %v6996_v46 }
0x129a   :  { %v3517_v51 = vmul.f32 %v3501_v12, %v7009_v39  ;;  %v3499_v53 = vmul.f32 0.044715, %v7020_v25  ;;  %v7031_v2 = vadd.f32 %v5109_v45, %v3308_v11  ;;  %v3510_v11 = vmul.f32 %v3494_v42, %v7005_v35 }
0x129b   :  { %v3459_v16 = vpop.f32.mrf.mxu1  ;;  %v3528_v13 = vmul.f32 %v3512_v33, %v7003_v36  ;;  %v3546_v48 = vadd.f32 %v3530_v41, %v6993_v61  ;;  %v3506_v42 = vmul.f32 %v3490_v60, %v7000_v31  ;;  %v3488_v41 = vmul.f32 0.044715, %v7027_v1 }
0x129c   :  { %v3533_v10 = vmul.f32 %v3517_v51, %v7009_v39  ;;  %v3515_v18 = vmul.f32 %v3499_v53, %v7020_v25  ;;  %v3502_v55 = vmul.f32 0.044715, %v7031_v2  ;;  %v7041_v29 = vadd.f32 %v3459_v16, %v3298_v59 }
0x129d   :  { %v3491_v59 = vmul.f32 0.044715, %v7034_v15  ;;  %v3526_v8 = vmul.f32 %v3510_v11, %v7005_v35  ;;  %v3562_v9 = vmul.f32 0.7978846, %v3546_v48  ;;  %v3544_v57 = vadd.f32 %v3528_v13, %v7003_v36 }
0x129e   :  { %v3531_v17 = vmul.f32 %v3515_v18, %v7020_v25  ;;  %v3518_v56 = vmul.f32 %v3502_v55, %v7031_v2  ;;  %v3500_v37 = vmul.f32 0.044715, %v7041_v29  ;;  %v3549_v58 = vadd.f32 %v3533_v10, %v7009_v39 }
0x129f   :  { %v3507_v26 = vmul.f32 %v3491_v59, %v7034_v15  ;;  %v3524_v33 = vmul.f32 %v3508_v3, %v7023_v14  ;;  %v3560_v45 = vmul.f32 0.7978846, %v3544_v57  ;;  %v3542_v51 = vadd.f32 %v3526_v8, %v7005_v35 }
0x12a0   :  { %v3534_v52 = vmul.f32 %v3518_v56, %v7031_v2  ;;  %v3516_v62 = vmul.f32 %v3500_v37, %v7041_v29  ;;  %v3565_v49 = vmul.f32 0.7978846, %v3549_v58  ;;  %v3547_v27 = vadd.f32 %v3531_v17, %v7020_v25 }
0x12a1   :  { %v3505_v53 = vmul.f32 %v7016_v5, %v6998_v28  ;;  %v3487_v54 = vmul.f32 0.044715, %v7064_v32  ;;  %v3523_v4 = vmul.f32 %v3507_v26, %v7034_v15  ;;  %v3559_v60 = vmul.f32 0.7978846, %v3543_v23 }
0x12a2   :  { %v3532_v30 = vmul.f32 %v3516_v62, %v7041_v29  ;;  %v3550_v38 = vadd.f32 %v3534_v52, %v7031_v2  ;;  %5352 = vtanh.f32 %v3565_v49  ;;  %v3563_v19 = vmul.f32 0.7978846, %v3547_v27 }
0x12a3   :  { %v3541_v44 = vadd.f32 %v3525_v34, %v7011_v0  ;;  %v3522_v16 = vmul.f32 %v3506_v42, %v7000_v31  ;;  %v3504_v10 = vmul.f32 %v3488_v41, %v7027_v1  ;;  %v3558_v18 = vmul.f32 0.7978846, %v3542_v51 }
0x12a4   :  { %v3566_v6 = vmul.f32 0.7978846, %v3550_v38  ;;  %v3548_v12 = vadd.f32 %v3532_v30, %v7041_v29  ;;  %5354 = vtanh.f32 %v3563_v19  ;;  %v3540_v55 = vadd.f32 %v3524_v33, %v7023_v14 }
0x12a5   :  { %5356 = vtanh.f32 %v3562_v9  ;;  %v3521_v11 = vmul.f32 %v3505_v53, %v6998_v28  ;;  %v3503_v5 = vmul.f32 %v3487_v54, %v7064_v32  ;;  %v3539_v7 = vadd.f32 %v3523_v4, %v7034_v15 }
0x12a6   :  { %5358 = vtanh.f32 %v3566_v6  ;;  %v3564_v63 = vmul.f32 0.7978846, %v3548_v12  ;;  %v3557_v13 = vmul.f32 0.7978846, %v3541_v44  ;;  %v3520_v48 = vmul.f32 %v3504_v10, %v7027_v1 }
0x12a7   :  { %5360 = vtanh.f32 %v3561_v47  ;;  %v3538_v17 = vadd.f32 %v3522_v16, %v7000_v31  ;;  %v3556_v56 = vmul.f32 0.7978846, %v3540_v55  ;;  %v3519_v58 = vmul.f32 %v3503_v5, %v7064_v32 }
0x12a8   :  { %5362 = vtanh.f32 %v3564_v63  ;;  %v3555_v43 = vmul.f32 0.7978846, %v3539_v7  ;;  %v3537_v59 = vadd.f32 %v3521_v11, %v6998_v28  ;;  %v3536_v52 = vadd.f32 %v3520_v48, %v7027_v1 }
0x12a9   :  { %5364 = vtanh.f32 %v3560_v45  ;;  %v3554_v40 = vmul.f32 0.7978846, %v3538_v17  ;;  %v3535_v3 = vadd.f32 %v3519_v58, %v7064_v32  ;;  %v3485_v57 = vmul.f32 0.5, %v7009_v39 }
0x12aa   :  { %5366 = vtanh.f32 %v3559_v60  ;;  %v3553_v8 = vmul.f32 0.7978846, %v3537_v59  ;;  %v3486_v24 = vmul.f32 0.5, %v7031_v2  ;;  %v3483_v34 = vmul.f32 0.5, %v7020_v25 }
0x12ab   :  { %5368 = vtanh.f32 %v3558_v18  ;;  %v3484_v26 = vmul.f32 0.5, %v7041_v29  ;;  %v3552_v47 = vmul.f32 0.7978846, %v3536_v52  ;;  %v3482_v33 = vmul.f32 0.5, %v6993_v61 }
0x12ac   :  { %5370 = vtanh.f32 %v3557_v13  ;;  %v3551_v39 = vmul.f32 0.7978846, %v3535_v3  ;;  %v3481_v25 = vmul.f32 0.5, %v6991_v21  ;;  %v3480_v61 = vmul.f32 0.5, %v7003_v36 }
0x12ad   :  { %5372 = vtanh.f32 %v3556_v56  ;;  %v3479_v55 = vmul.f32 0.5, %v6996_v46  ;;  %v3478_v48 = vmul.f32 0.5, %v7005_v35  ;;  %v3477_v36 = vmul.f32 0.5, %v7011_v0 }
0x12ae   :  { %5374 = vtanh.f32 %v3555_v43  ;;  %v3474_v0 = vmul.f32 0.5, %v7000_v31 }
0x12af   :  { %v5353_v37 = vpop.eup %5352  ;;  %5376 = vtanh.f32 %v3554_v40 }
0x12b0   :  { %v3597_v49 = vadd.f32 1.0, %v5353_v37  ;;  %5378 = vtanh.f32 %v3553_v8 }
0x12b1   :  { %v5355_v50 = vpop.eup %5354  ;;  %5380 = vtanh.f32 %v3552_v47 }
0x12b2   :  { %v5357_v62 = vpop.eup %5356  ;;  %v3595_v38 = vadd.f32 1.0, %v5355_v50  ;;  %v3613_v6 = vmul.f32 %v3597_v49, %v3485_v57  ;;  %5382 = vtanh.f32 %v3551_v39  ;;  %v3476_v50 = vmul.f32 0.5, %v7023_v14  ;;  %v3730_v39 = vpop.permute.xlu1 %3729 }
0x12b3   :  { %v5359_v27 = vpop.eup %5358  ;;  %v3594_v42 = vadd.f32 1.0, %v5357_v62  ;;  %v3475_v62 = vmul.f32 0.5, %v7034_v15  ;;  %v3472_v15 = vmul.f32 0.5, %v7027_v1  ;;  %v5254_v1 = vld [vmem:[%s7316_s11 + $0x50] sm:$0xff]  }
0x12b4   :  { %v5361_v9 = vpop.eup %5360  ;;  %v3598_v30 = vadd.f32 1.0, %v5359_v27  ;;  %v3611_v2 = vmul.f32 %v3595_v38, %v3483_v34 }
0x12b5   :  { %v5363_v19 = vpop.eup %5362  ;;  %v3593_v51 = vadd.f32 1.0, %v5361_v9  ;;  %v3610_v54 = vmul.f32 %v3594_v42, %v3482_v33  ;;  %v5258_v42 = vld [vmem:[%s7316_s11 + $0x70] sm:$0xff]   ;;  %v5260_v33 = vld [vmem:[%s7318_s13 + $0x20] sm:$0xff]  }
0x12b6   :  { %v3614_v12 = vmul.f32 %v3598_v30, %v3486_v24  ;;  %v3596_v23 = vadd.f32 1.0, %v5363_v19  ;;  %v5365_v41 = vpop.eup %5364  ;;  %v3473_v24 = vmul.f32 0.5, %v6998_v28  ;;  %v5253_v28 = vld [vmem:[%s7316_s11 + $0x48] sm:$0xff]   ;;  %5158 = vmatprep.mubr.bf16.mxu1 %v5260_v33 }
0x12b7   :  { %v5367_v53 = vpop.eup %5366  ;;  %v3592_v4 = vadd.f32 1.0, %v5365_v41  ;;  %v3609_v44 = vmul.f32 %v3593_v51, %v3481_v25  ;;  %v5259_v41 = vld [vmem:[%s7316_s11 + $0x78] sm:$0xff]  }
0x12b8   :  { %v3639_v63 = vpack.c.bf16 %v3614_v12, %v3613_v6  ;;  %v3612_v45 = vmul.f32 %v3596_v23, %v3484_v26  ;;  %v5369_v60 = vpop.eup %5368  ;;  %v3591_v16 = vadd.f32 1.0, %v5367_v53  ;;  %v3471_v26 = vmul.f32 0.5, %v7064_v32  ;;  %v5255_v32 = vld [vmem:[%s7316_s11 + $0x58] sm:$0xff]   ;;  %v5256_v12 = vld [vmem:[%s7316_s11 + $0x60] sm:$0xff]   ;;  %v5257_v23 = vld [vmem:[%s7316_s11 + $0x68] sm:$0xff]  }
0x12b9   :  { %v5371_v10 = vpop.eup %5370  ;;  %v3637_v18 = vpack.c.bf16 %v3610_v54, %v3609_v44  ;;  %v3608_v11 = vmul.f32 %v3592_v4, %v3480_v61  ;;  %v3590_v5 = vadd.f32 1.0, %v5369_v60 }
0x12ba   :  { %5110 = vmatprep.subr.bf16.mxu0 %v3639_v63  ;;  %v3638_v29 = vpack.c.bf16 %v3612_v45, %v3611_v2  ;;  %v5373_v21 = vpop.eup %5372  ;;  %v3607_v13 = vmul.f32 %v3591_v16, %v3479_v55  ;;  %v3589_v17 = vadd.f32 1.0, %v5371_v10  ;;  %v3720_v2 = vpop.permute.xlu1 %3719 }
0x12bb   :  { %5111 = vmatpush3.bf16.msra.mxu0 %v3639_v63  ;;  %v5375_v7 = vpop.eup %5374  ;;  %v3606_v58 = vmul.f32 %v3590_v5, %v3478_v48  ;;  %v3588_v43 = vadd.f32 1.0, %v5373_v21  ;;  %v3735_v63 = vpop.permute.xlu0 %3734 }
0x12bc   :  { %5112 = vmatprep.subr.bf16.mxu0 %v3638_v29  ;;  %v5377_v56 = vpop.eup %5376  ;;  %v3636_v37 = vpack.c.bf16 %v3608_v11, %v3607_v13  ;;  %v3605_v46 = vmul.f32 %v3589_v17, %v3477_v36  ;;  %v3587_v40 = vadd.f32 1.0, %v5375_v7 }
0x12bd   :  { %v5379_v59 = vpop.eup %5378  ;;  %v3604_v49 = vmul.f32 %v3588_v43, %v3476_v50  ;;  %v3586_v27 = vadd.f32 1.0, %v5377_v56 }
0x12be   :  { %v3635_v52 = vpack.c.bf16 %v3606_v58, %v3605_v46  ;;  %v5381_v35 = vpop.eup %5380  ;;  %v3603_v8 = vmul.f32 %v3587_v40, %v3475_v62  ;;  %v3585_v3 = vadd.f32 1.0, %v5379_v59  ;;  %v3710_v51 = vpop.permute.xlu1 %3709 }
0x12bf   :  { %5113 = vmatpush3.bf16.msra.mxu0 %v3638_v29  ;;  %v5383_v9 = vpop.eup %5382  ;;  %v3602_v30 = vmul.f32 %v3586_v27, %v3474_v0  ;;  %v3584_v38 = vadd.f32 1.0, %v5381_v35  ;;  %v3725_v45 = vpop.permute.xlu0 %3724 }
0x12c0   :  { %5114 = vmatprep.subr.bf16.mxu0 %v3637_v18  ;;  %v3634_v57 = vpack.c.bf16 %v3604_v49, %v3603_v8  ;;  %v3601_v14 = vmul.f32 %v3585_v3, %v3473_v24  ;;  %v3583_v19 = vadd.f32 1.0, %v5383_v9 }
0x12c1   :  { %v3600_v47 = vmul.f32 %v3584_v38, %v3472_v15 }
0x12c2   :  { %v3633_v34 = vpack.c.bf16 %v3602_v30, %v3601_v14  ;;  %v3599_v31 = vmul.f32 %v3583_v19, %v3471_v26  ;;  %v3700_v54 = vpop.permute.xlu1 %3699 }
0x12c3   :  { %5115 = vmatpush3.bf16.msra.mxu0 %v3637_v18  ;;  %v3715_v53 = vpop.permute.xlu0 %3714 }
0x12c4   :  { %5116 = vmatprep.subr.bf16.mxu0 %v3636_v37  ;;  %v3632_v6 = vpack.c.bf16 %v3600_v47, %v3599_v31 }
0x12c6   :  { %v3690_v16 = vpop.permute.xlu1 %3689 }
0x12c7   :  { %5117 = vmatpush3.bf16.msra.mxu0 %v3636_v37  ;;  %v3705_v4 = vpop.permute.xlu0 %3704 }
0x12c8   :  { %5118 = vmatprep.subr.bf16.mxu0 %v3635_v52 }
0x12ca   :  { %v3680_v5 = vpop.permute.xlu1 %3679 }
0x12cb   :  { %5119 = vmatpush3.bf16.msra.mxu0 %v3635_v52  ;;  %v3695_v10 = vpop.permute.xlu0 %3694 }
0x12cc   :  { %5120 = vmatprep.subr.bf16.mxu0 %v3634_v57 }
0x12ce   :  { %v3670_v56 = vpop.permute.xlu1 %3669 }
0x12cf   :  { %5121 = vmatpush3.bf16.msra.mxu0 %v3634_v57  ;;  %v3685_v21 = vpop.permute.xlu0 %3684 }
0x12d0   :  { %5122 = vmatprep.subr.bf16.mxu0 %v3633_v34 }
0x12d3   :  { %5123 = vmatpush3.bf16.msra.mxu0 %v3633_v34  ;;  %v3675_v36 = vpop.permute.xlu0 %3674 }
0x12d4   :  { %5124 = vmatprep.subr.bf16.mxu0 %v3632_v6 }
0x12d7   :  { %5125 = vmatpush3.bf16.msra.mxu0 %v3632_v6  ;;  %v3665_v15 = vpop.permute.xlu0 %3664 }
0x12da   :  { %5127 = vmatmul.mubr.bf16.vlgmr.msra.gmra.mxu0 %v5253_v28 }
0x12db   :  { %5130 = vmatprep.mubr.bf16.mxu0 %v5254_v1 }
0x12e2   :  { %5131 = vmatmul.mubr.bf16.gmra.mxu0 %v5255_v32 }
0x12e3   :  { %5134 = vmatprep.mubr.bf16.mxu0 %v5256_v12 }
0x12ea   :  { %5135 = vmatmul.mubr.bf16.gmra.mxu0 %v5257_v23 }
0x12eb   :  { %5138 = vmatprep.mubr.bf16.mxu0 %v5258_v42 }
0x12f2   :  { %5139 = vmatmul.mubr.bf16.gmra.mxu0 %v5259_v41 }
0x139a   :  { %v5128_v25 = vpop.f32.mrf.mxu0 }
0x139b   :  { %v7140_v46 = vadd.f32 %v5128_v25, %v3670_v56 }
0x139c   :  { %v7131_v29 = vpop.f32.mrf.mxu0 }
0x139d   :  { %v7158_v24 = vmul.f32 0.044715, %v7140_v46 }
0x139e   :  { %v5129_v60 = vpop.f32.mrf.mxu0 }
0x139f   :  { %v7142_v50 = vadd.f32 %v5129_v60, %v3675_v36 }
0x13a0   :  { %v3822_v44 = vpop.f32.mrf.mxu0 }
0x13a1   :  { %v3901_v30 = vmul.f32 0.044715, %v7142_v50  ;;  %v7169_v6 = vadd.f32 %v3822_v44, %v3665_v15 }
0x13a2   :  { %v5132_v61 = vpop.f32.mrf.mxu0 }
0x13a3   :  { %v7153_v0 = vadd.f32 %v5132_v61, %v3690_v16 }
0x13a4   :  { %v3835_v18 = vpop.f32.mrf.mxu0 }
0x13a5   :  { %v3904_v12 = vmul.f32 0.044715, %v7153_v0  ;;  %v7176_v23 = vadd.f32 %v3835_v18, %v3680_v5 }
0x13a6   :  { %v5133_v55 = vpop.f32.mrf.mxu0 }
0x13a7   :  { %v7147_v62 = vadd.f32 %v5133_v55, %v3695_v10  ;;  %v3920_v10 = vmul.f32 %v3904_v12, %v7153_v0 }
0x13a8   :  { %v3838_v11 = vpop.f32.mrf.mxu0 }
0x13a9   :  { %v3905_v19 = vmul.f32 0.044715, %v7147_v62  ;;  %v7165_v34 = vadd.f32 %v3838_v11, %v3685_v21 }
0x13aa   :  { %v5136_v7 = vpop.f32.mrf.mxu0 }
0x13ab   :  { %v7133_v13 = vadd.f32 %v5136_v7, %v3710_v51  ;;  %v3903_v25 = vmul.f32 0.044715, %v7165_v34 }
0x13ac   :  { %v3851_v48 = vpop.f32.mrf.mxu0 }
0x13ad   :  { %v3908_v58 = vmul.f32 0.044715, %v7133_v13  ;;  %v7138_v43 = vadd.f32 %v3851_v48, %v3700_v54 }
0x13ae   :  { %v5137_v17 = vpop.f32.mrf.mxu0 }
0x13af   :  { %v7135_v37 = vadd.f32 %v5137_v17, %v3715_v53  ;;  %v3924_v3 = vmul.f32 %v3908_v58, %v7133_v13  ;;  %v3906_v9 = vmul.f32 0.044715, %v7138_v43  ;;  %v3919_v17 = vmul.f32 %v3903_v25, %v7165_v34  ;;  %v3660_v58 = vpop.permute.xlu1 %3659 }
0x13b0   :  { %v3854_v59 = vpop.f32.mrf.mxu0 }
0x13b1   :  { %v3909_v40 = vmul.f32 0.044715, %v7135_v37  ;;  %v7145_v52 = vadd.f32 %v3854_v59, %v3705_v4  ;;  %v3940_v42 = vmul.f32 %v3924_v3, %v7133_v13  ;;  %v3922_v41 = vmul.f32 %v3906_v9, %v7138_v43 }
0x13b2   :  { %v5140_v49 = vpop.f32.mrf.mxu0 }
0x13b3   :  { %v3925_v27 = vmul.f32 %v3909_v40, %v7135_v37  ;;  %v3907_v35 = vmul.f32 0.044715, %v7145_v52  ;;  %v7151_v8 = vadd.f32 %v5140_v49, %v3730_v39  ;;  %v3938_v18 = vmul.f32 %v3922_v41, %v7138_v43 }
0x13b4   :  { %v3867_v57 = vpop.f32.mrf.mxu0  ;;  %v3956_v55 = vadd.f32 %v3940_v42, %v7133_v13 }
0x13b5   :  { %v3912_v38 = vmul.f32 0.044715, %v7151_v8  ;;  %v7162_v14 = vadd.f32 %v3867_v57, %v3720_v2  ;;  %v3941_v26 = vmul.f32 %v3925_v27, %v7135_v37  ;;  %v3923_v47 = vmul.f32 %v3907_v35, %v7145_v52 }
0x13b6   :  { %v5141_v31 = vpop.f32.mrf.mxu0  ;;  %v7206_v27 = vadd.f32 %v7131_v29, %v3660_v58  ;;  %v3936_v35 = vmul.f32 %v3920_v10, %v7153_v0  ;;  %v3972_v9 = vmul.f32 0.7978846, %v3956_v55  ;;  %v3954_v15 = vadd.f32 %v3938_v18, %v7138_v43 }
0x13b7   :  { %v3928_v28 = vmul.f32 %v3912_v38, %v7151_v8  ;;  %v3910_v1 = vmul.f32 0.044715, %v7162_v14  ;;  %v7173_v32 = vadd.f32 %v5141_v31, %v3735_v63  ;;  %v3921_v63 = vmul.f32 %v3905_v19, %v7147_v62 }
0x13b8   :  { %v3870_v33 = vpop.f32.mrf.mxu0  ;;  %v3939_v54 = vmul.f32 %v3923_v47, %v7145_v52  ;;  %v3957_v4 = vadd.f32 %v3941_v26, %v7135_v37  ;;  %v3917_v19 = vmul.f32 %v3901_v30, %v7142_v50  ;;  %v3899_v26 = vmul.f32 0.044715, %v7169_v6 }
0x13b9   :  { %v3944_v39 = vmul.f32 %v3928_v28, %v7151_v8  ;;  %v3926_v2 = vmul.f32 %v3910_v1, %v7162_v14  ;;  %v3913_v51 = vmul.f32 0.044715, %v7173_v32  ;;  %v7183_v53 = vadd.f32 %v3870_v33, %v3725_v45 }
0x13ba   :  { %v3902_v45 = vmul.f32 0.044715, %v7176_v23  ;;  %v3937_v48 = vmul.f32 %v3921_v63, %v7147_v62  ;;  %v3973_v56 = vmul.f32 0.7978846, %v3957_v4  ;;  %v3955_v36 = vadd.f32 %v3939_v54, %v7145_v52 }
0x13bb   :  { %v3942_v60 = vmul.f32 %v3926_v2, %v7162_v14  ;;  %v3929_v44 = vmul.f32 %v3913_v51, %v7173_v32  ;;  %v3911_v61 = vmul.f32 0.044715, %v7183_v53  ;;  %v3960_v16 = vadd.f32 %v3944_v39, %v7151_v8 }
0x13bc   :  { %v3918_v3 = vmul.f32 %v3902_v45, %v7176_v23  ;;  %v3935_v47 = vmul.f32 %v3919_v17, %v7165_v34  ;;  %v3971_v31 = vmul.f32 0.7978846, %v3955_v36  ;;  %v3953_v28 = vadd.f32 %v3937_v48, %v7147_v62 }
0x13bd   :  { %v3945_v11 = vmul.f32 %v3929_v44, %v7173_v32  ;;  %v3927_v5 = vmul.f32 %v3911_v61, %v7183_v53  ;;  %v3976_v21 = vmul.f32 0.7978846, %v3960_v16  ;;  %v3958_v7 = vadd.f32 %v3942_v60, %v7162_v14 }
0x13be   :  { %v3916_v1 = vmul.f32 %v7158_v24, %v7140_v46  ;;  %v3898_v12 = vmul.f32 0.044715, %v7206_v27  ;;  %v3934_v42 = vmul.f32 %v3918_v3, %v7176_v23  ;;  %v3970_v30 = vmul.f32 0.7978846, %v3954_v15 }
0x13bf   :  { %v3943_v59 = vmul.f32 %v3927_v5, %v7183_v53  ;;  %v3961_v40 = vadd.f32 %v3945_v11, %v7173_v32  ;;  %5384 = vtanh.f32 %v3976_v21  ;;  %v3974_v49 = vmul.f32 0.7978846, %v3958_v7 }
0x13c0   :  { %v3952_v41 = vadd.f32 %v3936_v35, %v7153_v0  ;;  %v3933_v33 = vmul.f32 %v3917_v19, %v7142_v50  ;;  %v3915_v39 = vmul.f32 %v3899_v26, %v7169_v6  ;;  %v3969_v2 = vmul.f32 0.7978846, %v3953_v28 }
0x13c1   :  { %v3977_v57 = vmul.f32 0.7978846, %v3961_v40  ;;  %v3959_v38 = vadd.f32 %v3943_v59, %v7183_v53  ;;  %5386 = vtanh.f32 %v3974_v49  ;;  %v3951_v51 = vadd.f32 %v3935_v47, %v7165_v34 }
0x13c2   :  { %5388 = vtanh.f32 %v3973_v56  ;;  %v3932_v63 = vmul.f32 %v3916_v1, %v7140_v46  ;;  %v3914_v24 = vmul.f32 %v3898_v12, %v7206_v27  ;;  %v3950_v25 = vadd.f32 %v3934_v42, %v7176_v23 }
0x13c3   :  { %5390 = vtanh.f32 %v3977_v57  ;;  %v3975_v29 = vmul.f32 0.7978846, %v3959_v38  ;;  %v3968_v54 = vmul.f32 0.7978846, %v3952_v41  ;;  %v3931_v4 = vmul.f32 %v3915_v39, %v7169_v6 }
0x13c4   :  { %5392 = vtanh.f32 %v3972_v9  ;;  %v3949_v60 = vadd.f32 %v3933_v33, %v7142_v50  ;;  %v3967_v44 = vmul.f32 0.7978846, %v3951_v51  ;;  %v3930_v16 = vmul.f32 %v3914_v24, %v7206_v27 }
0x13c5   :  { %5394 = vtanh.f32 %v3975_v29  ;;  %v3966_v10 = vmul.f32 0.7978846, %v3950_v25  ;;  %v3948_v45 = vadd.f32 %v3932_v63, %v7140_v46  ;;  %v3947_v11 = vadd.f32 %v3931_v4, %v7169_v6 }
0x13c6   :  { %5396 = vtanh.f32 %v3971_v31  ;;  %v3965_v55 = vmul.f32 0.7978846, %v3949_v60  ;;  %v3946_v17 = vadd.f32 %v3930_v16, %v7206_v27  ;;  %v3896_v36 = vmul.f32 0.5, %v7151_v8 }
0x13c7   :  { %5398 = vtanh.f32 %v3970_v30  ;;  %v3964_v48 = vmul.f32 0.7978846, %v3948_v45  ;;  %v3897_v58 = vmul.f32 0.5, %v7173_v32  ;;  %v3894_v35 = vmul.f32 0.5, %v7162_v14 }
0x13c8   :  { %5400 = vtanh.f32 %v3969_v2  ;;  %v3895_v3 = vmul.f32 0.5, %v7183_v53  ;;  %v3963_v9 = vmul.f32 0.7978846, %v3947_v11  ;;  %v3893_v47 = vmul.f32 0.5, %v7135_v37 }
0x13c9   :  { %5402 = vtanh.f32 %v3968_v54  ;;  %v3962_v8 = vmul.f32 0.7978846, %v3946_v17  ;;  %v3892_v14 = vmul.f32 0.5, %v7133_v13  ;;  %v3891_v37 = vmul.f32 0.5, %v7145_v52 }
0x13ca   :  { %5404 = vtanh.f32 %v3967_v44  ;;  %v3890_v51 = vmul.f32 0.5, %v7138_v43  ;;  %v3889_v4 = vmul.f32 0.5, %v7147_v62  ;;  %v3888_v52 = vmul.f32 0.5, %v7153_v0 }
0x13cb   :  { %5406 = vtanh.f32 %v3966_v10  ;;  %v3885_v0 = vmul.f32 0.5, %v7142_v50 }
0x13cc   :  { %v5385_v61 = vpop.eup %5384  ;;  %5408 = vtanh.f32 %v3965_v55 }
0x13cd   :  { %v4008_v21 = vadd.f32 1.0, %v5385_v61  ;;  %5410 = vtanh.f32 %v3964_v48 }
0x13ce   :  { %v5387_v18 = vpop.eup %5386  ;;  %5412 = vtanh.f32 %v3963_v9 }
0x13cf   :  { %v5389_v5 = vpop.eup %5388  ;;  %v4006_v40 = vadd.f32 1.0, %v5387_v18  ;;  %v4024_v57 = vmul.f32 %v4008_v21, %v3896_v36  ;;  %5414 = vtanh.f32 %v3962_v8  ;;  %v3887_v18 = vmul.f32 0.5, %v7165_v34 }
0x13d0   :  { %v5391_v7 = vpop.eup %5390  ;;  %v4005_v19 = vadd.f32 1.0, %v5389_v5  ;;  %v3886_v5 = vmul.f32 0.5, %v7176_v23  ;;  %v3883_v23 = vmul.f32 0.5, %v7169_v6  ;;  %v5262_v6 = vld [vmem:[%s7318_s13 + $0x30] sm:$0xff]  }
0x13d1   :  { %v5393_v56 = vpop.eup %5392  ;;  %v4009_v59 = vadd.f32 1.0, %v5391_v7  ;;  %v4022_v32 = vmul.f32 %v4006_v40, %v3894_v35 }
0x13d2   :  { %v5395_v49 = vpop.eup %5394  ;;  %v4004_v28 = vadd.f32 1.0, %v5393_v56  ;;  %v4021_v12 = vmul.f32 %v4005_v19, %v3893_v47  ;;  %v4070_v47 = vpop.permute.xlu0 %4069 }
0x13d3   :  { %v4025_v38 = vmul.f32 %v4009_v59, %v3897_v58  ;;  %v4007_v15 = vadd.f32 1.0, %v5395_v49  ;;  %v5397_v26 = vpop.eup %5396  ;;  %v3884_v58 = vmul.f32 0.5, %v7140_v46  ;;  %v5261_v46 = vld [vmem:[%s7318_s13 + $0x28] sm:$0xff]  }
0x13d4   :  { %v5399_v1 = vpop.eup %5398  ;;  %v4003_v42 = vadd.f32 1.0, %v5397_v26  ;;  %v4020_v41 = vmul.f32 %v4004_v28, %v3892_v14 }
0x13d5   :  { %v4042_v29 = vpack.c.bf16 %v4025_v38, %v4024_v57  ;;  %v4023_v31 = vmul.f32 %v4007_v15, %v3895_v3  ;;  %v5401_v30 = vpop.eup %5400  ;;  %v4002_v33 = vadd.f32 1.0, %v5399_v1  ;;  %v3882_v3 = vmul.f32 0.5, %v7206_v27  ;;  %v5263_v27 = vld [vmem:[%s7318_s13 + $0x38] sm:$0xff]   ;;  %v4065_v38 = vpop.permute.xlu1 %4064  ;;  %s7332_s13 = smov 112  }
0x13d6   :  { %v5403_v39 = vpop.eup %5402  ;;  %v4040_v2 = vpack.c.bf16 %v4021_v12, %v4020_v41  ;;  %v4019_v63 = vmul.f32 %v4003_v42, %v3891_v37  ;;  %v4001_v24 = vadd.f32 1.0, %v5401_v30 }
0x13d7   :  { %5142 = vmatprep.subr.bf16.mxu1 %v4042_v29  ;;  %v4041_v53 = vpack.c.bf16 %v4023_v31, %v4022_v32  ;;  %v5405_v13 = vpop.eup %5404  ;;  %v4018_v54 = vmul.f32 %v4002_v33, %v3890_v51  ;;  %v4000_v60 = vadd.f32 1.0, %v5403_v39 }
0x13d8   :  { %5143 = vmatpush3.bf16.msra.mxu1 %v4042_v29  ;;  %v5407_v25 = vpop.eup %5406  ;;  %v4017_v16 = vmul.f32 %v4001_v24, %v3889_v4  ;;  %v3999_v10 = vadd.f32 1.0, %v5405_v13 }
0x13d9   :  { %5144 = vmatprep.subr.bf16.mxu1 %v4041_v53  ;;  %v5409_v44 = vpop.eup %5408  ;;  %v4039_v61 = vpack.c.bf16 %v4019_v63, %v4018_v54  ;;  %v4016_v43 = vmul.f32 %v4000_v60, %v3888_v52  ;;  %v3998_v55 = vadd.f32 1.0, %v5407_v25  ;;  %v4075_v31 = vpop.permute.xlu1 %4074 }
0x13da   :  { %v5411_v45 = vpop.eup %5410  ;;  %v4015_v21 = vmul.f32 %v3999_v10, %v3887_v18  ;;  %v3997_v7 = vadd.f32 1.0, %v5409_v44 }
0x13db   :  { %v4038_v11 = vpack.c.bf16 %v4017_v16, %v4016_v43  ;;  %v5413_v62 = vpop.eup %5412  ;;  %v4014_v48 = vmul.f32 %v3998_v55, %v3886_v5  ;;  %v3996_v17 = vadd.f32 1.0, %v5411_v45 }
0x13dc   :  { %5145 = vmatpush3.bf16.msra.mxu1 %v4041_v53  ;;  %v5415_v56 = vpop.eup %5414  ;;  %v4013_v59 = vmul.f32 %v3997_v7, %v3885_v0  ;;  %v3995_v40 = vadd.f32 1.0, %v5413_v62  ;;  %v4080_v53 = vpop.permute.xlu0 %4079 }
0x13dd   :  { %5146 = vmatprep.subr.bf16.mxu1 %v4040_v2  ;;  %v4037_v36 = vpack.c.bf16 %v4015_v21, %v4014_v48  ;;  %v4012_v34 = vmul.f32 %v3996_v17, %v3884_v58  ;;  %v3994_v49 = vadd.f32 1.0, %v5415_v56  ;;  %v4085_v42 = vpop.permute.xlu1 %4084 }
0x13de   :  { %v4011_v9 = vmul.f32 %v3995_v40, %v3883_v23 }
0x13df   :  { %v4036_v35 = vpack.c.bf16 %v4013_v59, %v4012_v34  ;;  %v4010_v50 = vmul.f32 %v3994_v49, %v3882_v3 }
0x13e0   :  { %5147 = vmatpush3.bf16.msra.mxu1 %v4040_v2  ;;  %v4090_v33 = vpop.permute.xlu0 %4089 }
0x13e1   :  { %5148 = vmatprep.subr.bf16.mxu1 %v4039_v61  ;;  %v4035_v57 = vpack.c.bf16 %v4011_v9, %v4010_v50  ;;  %v4055_v2 = vpop.permute.xlu1 %4054 }
0x13e4   :  { %5149 = vmatpush3.bf16.msra.mxu1 %v4039_v61  ;;  %v4060_v51 = vpop.permute.xlu0 %4059 }
0x13e5   :  { %5150 = vmatprep.subr.bf16.mxu1 %v4038_v11 }
0x13e8   :  { %5151 = vmatpush3.bf16.msra.mxu1 %v4038_v11 }
0x13e9   :  { %5152 = vmatprep.subr.bf16.mxu1 %v4037_v36 }
0x13ec   :  { %5153 = vmatpush3.bf16.msra.mxu1 %v4037_v36 }
0x13ed   :  { %5154 = vmatprep.subr.bf16.mxu1 %v4036_v35 }
0x13f0   :  { %5155 = vmatpush3.bf16.msra.mxu1 %v4036_v35 }
0x13f1   :  { %5156 = vmatprep.subr.bf16.mxu1 %v4035_v57 }
0x13f4   :  { %5157 = vmatpush3.bf16.msra.mxu1 %v4035_v57 }
0x13f7   :  { %5159 = vmatmul.mubr.bf16.vlgmr.msra.gmra.mxu1 %v5261_v46 }
0x13f8   :  { %5162 = vmatprep.mubr.bf16.mxu1 %v5262_v6 }
0x13ff   :  { %5163 = vmatmul.mubr.bf16.gmra.mxu1 %v5263_v27 }
0x14b7   :  { %v5160_v15 = vpop.f32.mrf.mxu1 }
0x14b8   :  { %v4159_v19 = vadd.f32 %v5160_v15, %v4065_v38 }
0x14b9   :  { %v4150_v26 = vpop.f32.mrf.mxu1 }
0x14ba   :  { %4183 = vrot.lane.b32.xlu1 %v4159_v19, %s5488_s23  ;;  %v4151_v25 = vadd.f32 %v4150_v26, %v4055_v2 }
0x14bb   :  { %v5161_v8 = vpop.f32.mrf.mxu1 }
0x14bc   :  { %v4162_v29 = vadd.f32 %v5161_v8, %v4070_v47 }
0x14bd   :  { %v4153_v32 = vpop.f32.mrf.mxu1 }
0x14be   :  { %4185 = vrot.lane.b32.xlu0 %v4162_v29, %s5488_s23  ;;  %v4154_v61 = vadd.f32 %v4153_v32, %v4060_v51 }
0x14bf   :  { %v5164_v28 = vpop.f32.mrf.mxu1 }
0x14c0   :  { %v4175_v41 = vadd.f32 %v5164_v28, %v4085_v42 }
0x14c1   :  { %v4166_v1 = vpop.f32.mrf.mxu1 }
0x14c2   :  { %v4167_v14 = vadd.f32 %v4166_v1, %v4075_v31 }
0x14c3   :  { %v5165_v12 = vpop.f32.mrf.mxu1 }
0x14c4   :  { %4191 = vrot.lane.b32.xlu1 %v4167_v14, %s5490_s21  ;;  %v4178_v39 = vadd.f32 %v5165_v12, %v4090_v33 }
0x14c5   :  { %v4169_v30 = vpop.f32.mrf.mxu1 }
0x14c6   :  { %v4170_v37 = vadd.f32 %v4169_v30, %v4080_v53 }
0x14c8   :  { %4199 = vrot.lane.b32.xlu1 %v4175_v41, %s5493_s20  ;;  %4193 = vrot.lane.b32.xlu0 %v4170_v37, %s5490_s21 }
0x14cc   :  { %4201 = vrot.lane.b32.xlu0 %v4178_v39, %s5493_s20 }
0x152c   :  { %v4184_v63 = vpop.permute.xlu1 %4183 }
0x152d   :  { %v4205_v54 = vsel %vm127_vm1, %v4151_v25, %v4184_v63 }
0x1530   :  { %v4186_v24 = vpop.permute.xlu0 %4185 }
0x1531   :  { %v4206_v10 = vsel %vm127_vm1, %v4154_v61, %v4186_v24 }
0x1536   :  { %v4192_v13 = vpop.permute.xlu1 %4191 }
0x1537   :  { %v4207_v4 = vsel %vm133_vm3, %v4205_v54, %v4192_v13 }
0x153a   :  { %v4200_v60 = vpop.permute.xlu1 %4199  ;;  %v4194_v44 = vpop.permute.xlu0 %4193 }
0x153b   :  { %v4209_v52 = vsel %vm139_vm5, %v4207_v4, %v4200_v60  ;;  %v4208_v45 = vsel %vm133_vm3, %v4206_v10, %v4194_v44 }
0x153c   :  { %v4211_v16 = vadd.f32 %v4209_v52, %v6715_v22 }
0x153e   :  { %4213 = vst.msk [vmem:[#allocation2] sm:$0xff] %vm124_vm0, %v4211_v16  ;;  %4217 = vrot.lane.b32.xlu1 %v4211_v16, %s7332_s13  ;;  %v4202_v43 = vpop.permute.xlu0 %4201 }
0x153f   :  { %v4210_v18 = vsel %vm139_vm5, %v4208_v45, %v4202_v43 }
0x1540   :  { %v4212_v55 = vadd.f32 %v4210_v18, %v6720_v20 }
0x1542   :  { %4214 = vst.msk [vmem:[#allocation2 + $0x8] sm:$0xff] %vm124_vm0, %v4212_v55  ;;  %4226 = vrot.lane.b32.xlu1 %v4211_v16, %s5493_s20  ;;  %4219 = vrot.lane.b32.xlu0 %v4212_v55, %s7332_s13 }
0x1546   :  { %4235 = vrot.lane.b32.xlu1 %v4211_v16, %s7333_s19  ;;  %4228 = vrot.lane.b32.xlu0 %v4212_v55, %s5493_s20 }
0x154a   :  { %4244 = vrot.lane.b32.xlu1 %v4211_v16, %s5490_s21  ;;  %4237 = vrot.lane.b32.xlu0 %v4212_v55, %s7333_s19 }
0x154e   :  { %4253 = vrot.lane.b32.xlu1 %v4211_v16, %s7334_s30  ;;  %4246 = vrot.lane.b32.xlu0 %v4212_v55, %s5490_s21 }
0x1552   :  { %4262 = vrot.lane.b32.xlu1 %v4211_v16, %s5488_s23  ;;  %4255 = vrot.lane.b32.xlu0 %v4212_v55, %s7334_s30 }
0x1556   :  { %4271 = vrot.lane.b32.xlu1 %v4211_v16, %s7335_s29  ;;  %4264 = vrot.lane.b32.xlu0 %v4212_v55, %s5488_s23  ;;  %s5500_s23 = smov [#allocation2]  }
0x1557   :  { %s4285_s21 = sshll.u32 %s5500_s23, 4  ;;  %s4286_s21 = int_to_ptr.vmem [resolvable:$true] %s4285_s21 }
0x1558   :  { %s5465_s20 = scalar_lea.vmem %s4286_s21, 2048  ;;  %p5470_p1 = scmp.lt.s32.totalorder %s4286_s21, %s4286_s21 }
0x1559   :  { %p5466_p0 = scmp.ne.s32.totalorder %s4286_s21, %s5465_s20  ;;  %p5471_p2 = scmp.lt.s32.totalorder %s5465_s20, %s5465_s20 }
0x155a   :  { %4273 = vrot.lane.b32.xlu0 %v4212_v55, %s7335_s29 }
0x155b   :  { %p5472_p3 = por %p5471_p2, %p5470_p1 }
0x155d   :  { %p5473_p4 = pnand %p5472_p3, %p5466_p0 }
0x15b0   :  { %v4218_v22 = vpop.permute.xlu1 %4217 }
0x15b1   :  { %4224 = vst.msk [vmem:[#allocation2 + $0x40] sm:$0xff] %vm124_vm0, %v4218_v22 }
0x15b4   :  { %v4227_v20 = vpop.permute.xlu1 %4226  ;;  %v4220_v11 = vpop.permute.xlu0 %4219 }
0x15b5   :  { %4233 = vst.msk [vmem:[#allocation2 + $0x10] sm:$0xff] %vm124_vm0, %v4227_v20  ;;  %4225 = vst.msk [vmem:[#allocation2 + $0x48] sm:$0xff] %vm124_vm0, %v4220_v11 }
0x15b8   :  { %v4236_v5 = vpop.permute.xlu1 %4235  ;;  %v4229_v21 = vpop.permute.xlu0 %4228 }
0x15b9   :  { %4242 = vst.msk [vmem:[#allocation2 + $0x50] sm:$0xff] %vm124_vm0, %v4236_v5  ;;  %4234 = vst.msk [vmem:[#allocation2 + $0x18] sm:$0xff] %vm124_vm0, %v4229_v21 }
0x15bc   :  { %v4245_v7 = vpop.permute.xlu1 %4244  ;;  %v4238_v62 = vpop.permute.xlu0 %4237 }
0x15bd   :  { %4251 = vst.msk [vmem:[#allocation2 + $0x20] sm:$0xff] %vm124_vm0, %v4245_v7  ;;  %4243 = vst.msk [vmem:[#allocation2 + $0x58] sm:$0xff] %vm124_vm0, %v4238_v62 }
0x15c0   :  { %v4254_v48 = vpop.permute.xlu1 %4253  ;;  %v4247_v0 = vpop.permute.xlu0 %4246 }
0x15c1   :  { %4260 = vst.msk [vmem:[#allocation2 + $0x60] sm:$0xff] %vm124_vm0, %v4254_v48  ;;  %4252 = vst.msk [vmem:[#allocation2 + $0x28] sm:$0xff] %vm124_vm0, %v4247_v0 }
0x15c4   :  { %v4263_v17 = vpop.permute.xlu1 %4262  ;;  %v4256_v56 = vpop.permute.xlu0 %4255 }
0x15c5   :  { %4269 = vst.msk [vmem:[#allocation2 + $0x30] sm:$0xff] %vm124_vm0, %v4263_v17  ;;  %4261 = vst.msk [vmem:[#allocation2 + $0x68] sm:$0xff] %vm124_vm0, %v4256_v56 }
0x15c8   :  { %v4272_v36 = vpop.permute.xlu1 %4271  ;;  %v4265_v58 = vpop.permute.xlu0 %4264 }
0x15c9   :  { %4278 = vst.msk [vmem:[#allocation2 + $0x70] sm:$0xff] %vm124_vm0, %v4272_v36  ;;  %4270 = vst.msk [vmem:[#allocation2 + $0x38] sm:$0xff] %vm124_vm0, %v4265_v58 }
0x15cc   :  { %v4274_v59 = vpop.permute.xlu0 %4273 }
0x15cd   :  { %4279 = vst.msk [vmem:[#allocation2 + $0x78] sm:$0xff] %vm124_vm0, %v4274_v59 }
0x15ce   :  { %5476 = shalt.err (!%p5473_p4)
}
0x15cf   :  { %s5501_s0 = smov 128   ;;  %s5502_s9 = smov 8  }
0x15d0   :  { %4291 = dma.vmem_to_hbm [thread:$0]  %s4286_s21, 2048, %s7320_s15, [#allocation3], %s5501_s0, %s5501_s0, %s5502_s9  }
0x15d1   :  { %5485 = dma.done.wait [#allocation3], 2048  }
0x15d2   :  { %5486 = vsyncadd [#allocation3], 4294965248 }
0x15d3   :  { %4295 = vsyncpa [#allocation3], 1 }

</bundles_post_ra>
